<compile_context>
chip_gen: v5e
topology: v5e:2x2
jax: 0.10.0
libtpu: 0.0.40
codegen_flags: <defaults>
</compile_context>

<pallas_src>
import functools
import math

import jax
import jax.numpy as jnp
import numpy as np
from jax import lax
from jax.experimental import pallas as pl
from jax.experimental.pallas import tpu as pltpu

# Budgeted for v7x's 64 MiB physical VMEM; trivially fits v5e/v6e's 128 MiB.
_VMEM_LIMIT = 48 * 1024 * 1024


def _pick_tile(dim, target, align):
    """Largest `align`-aligned divisor of `dim` that is <= target, else the full dim."""
    if dim <= target:
        return dim
    t = (target // align) * align
    while t >= align:
        if dim % t == 0:
            return t
        t -= align
    return dim


# ----------------------------- tiled linear (bf16 MXU, f32 acc) -----------------------------


def _matmul_kernel(x_ref, w_ref, o_ref, acc_ref):
    @pl.when(pl.program_id(2) == 0)
    def _init():
        acc_ref[...] = jnp.zeros_like(acc_ref)

    acc_ref[...] += jnp.dot(x_ref[...], w_ref[...], preferred_element_type=jnp.float32)

    @pl.when(pl.program_id(2) == pl.num_programs(2) - 1)
    def _done():
        o_ref[...] = acc_ref[...].astype(o_ref.dtype)


def _matmul_res_kernel(x_ref, w_ref, r_ref, o_ref, acc_ref):
    @pl.when(pl.program_id(2) == 0)
    def _init():
        acc_ref[...] = jnp.zeros_like(acc_ref)

    acc_ref[...] += jnp.dot(x_ref[...], w_ref[...], preferred_element_type=jnp.float32)

    @pl.when(pl.program_id(2) == pl.num_programs(2) - 1)
    def _done():
        # Fused residual add: saves a full (M, N) HBM read+write pass per call.
        o_ref[...] = (acc_ref[...] + r_ref[...].astype(jnp.float32)).astype(o_ref.dtype)


def linear(x2d, wt, out_dtype=jnp.bfloat16, residual=None):
    """(M, K) bf16 @ (K, N) bf16, f32 accumulate, optional fused residual add."""
    M, K = x2d.shape
    K2, N = wt.shape
    assert K == K2
    tm = _pick_tile(M, 512, 16)
    tn = _pick_tile(N, 512, 128)   # NOTE(v7x): at decode keep N//tn >= 2 so both TCs get blocks
    tk = _pick_tile(K, 1024, 128)
    grid = (M // tm, N // tn, K // tk)
    cost = pl.CostEstimate(flops=2 * M * N * K, transcendentals=0,
                           bytes_accessed=M * K * 2 + K * N * 2 + M * N * 2)
    x_spec = pl.BlockSpec((tm, tk), lambda i, j, k: (i, k))
    w_spec = pl.BlockSpec((tk, tn), lambda i, j, k: (k, j))
    o_spec = pl.BlockSpec((tm, tn), lambda i, j, k: (i, j))
    params = pltpu.CompilerParams(
        dimension_semantics=("parallel", "parallel", "arbitrary"),
        vmem_limit_bytes=_VMEM_LIMIT)
    if residual is None:
        return pl.pallas_call(
            _matmul_kernel, grid=grid,
            in_specs=[x_spec, w_spec], out_specs=o_spec,
            out_shape=jax.ShapeDtypeStruct((M, N), out_dtype),
            scratch_shapes=[pltpu.VMEM((tm, tn), jnp.float32)],
            compiler_params=params, cost_estimate=cost,
        )(x2d, wt)
    r_spec = pl.BlockSpec((tm, tn), lambda i, j, k: (i, j))
    return pl.pallas_call(
        _matmul_res_kernel, grid=grid,
        in_specs=[x_spec, w_spec, r_spec], out_specs=o_spec,
        out_shape=jax.ShapeDtypeStruct((M, N), out_dtype),
        scratch_shapes=[pltpu.VMEM((tm, tn), jnp.float32)],
        compiler_params=params, cost_estimate=cost,
    )(x2d, wt, residual)


# ------------------------------ fused gate/up + SiLU (LlamaMLP) -----------------------------


def _gate_up_kernel(x_ref, wg_ref, wu_ref, o_ref, accg_ref, accu_ref):
    @pl.when(pl.program_id(2) == 0)
    def _init():
        accg_ref[...] = jnp.zeros_like(accg_ref)
        accu_ref[...] = jnp.zeros_like(accu_ref)

    x = x_ref[...]
    accg_ref[...] += jnp.dot(x, wg_ref[...], preferred_element_type=jnp.float32)
    accu_ref[...] += jnp.dot(x, wu_ref[...], preferred_element_type=jnp.float32)

    @pl.when(pl.program_id(2) == pl.num_programs(2) - 1)
    def _done():
        o_ref[...] = (jax.nn.silu(accg_ref[...]) * accu_ref[...]).astype(o_ref.dtype)


def gate_up_silu(x2d, wg_t, wu_t):
    M, K = x2d.shape
    _, N = wg_t.shape
    tm = _pick_tile(M, 512, 16)
    tn = _pick_tile(N, 512, 128)
    tk = _pick_tile(K, 1024, 128)
    grid = (M // tm, N // tn, K // tk)
    return pl.pallas_call(
        _gate_up_kernel, grid=grid,
        in_specs=[pl.BlockSpec((tm, tk), lambda i, j, k: (i, k)),
                  pl.BlockSpec((tk, tn), lambda i, j, k: (k, j)),
                  pl.BlockSpec((tk, tn), lambda i, j, k: (k, j))],
        out_specs=pl.BlockSpec((tm, tn), lambda i, j, k: (i, j)),
        out_shape=jax.ShapeDtypeStruct((M, N), jnp.bfloat16),
        scratch_shapes=[pltpu.VMEM((tm, tn), jnp.float32),
                        pltpu.VMEM((tm, tn), jnp.float32)],
        compiler_params=pltpu.CompilerParams(
            dimension_semantics=("parallel", "parallel", "arbitrary"),
            vmem_limit_bytes=_VMEM_LIMIT),
    )(x2d, wg_t, wu_t)


# ----------------------------------------- RMSNorm ------------------------------------------


def _rmsnorm_kernel(x_ref, w_ref, o_ref, *, eps):
    x = x_ref[...]
    ms = jnp.mean(x * x, axis=-1, keepdims=True)
    o_ref[...] = (x * lax.rsqrt(ms + eps) * w_ref[...]).astype(o_ref.dtype)


def rmsnorm(x2d, w, eps):
    """f32 residual in, bf16 out (directly consumable by the bf16 matmuls)."""
    M, H = x2d.shape
    tm = _pick_tile(M, 256, 8)    # 256-row target keeps v7x (64 MiB VMEM) comfortable at big H
    w2d = w.reshape(1, H).astype(jnp.float32)
    return pl.pallas_call(
        functools.partial(_rmsnorm_kernel, eps=eps),
        grid=(M // tm,),
        in_specs=[pl.BlockSpec((tm, H), lambda i: (i, 0)),
                  pl.BlockSpec((1, H), lambda i: (0, 0))],
        out_specs=pl.BlockSpec((tm, H), lambda i: (i, 0)),
        out_shape=jax.ShapeDtypeStruct((M, H), jnp.bfloat16),
        compiler_params=pltpu.CompilerParams(
            dimension_semantics=("parallel",),
            vmem_limit_bytes=_VMEM_LIMIT),
    )(x2d.astype(jnp.float32), w2d)


# ------------- flash attention (RoPE folded in, online softmax, slab layout) ----------------


def _flash_attn_kernel(q_ref, k_ref, v_ref, cq_ref, sq_ref, ck_ref, sk_ref,
                       o_ref, m_ref, l_ref, acc_ref, *,
                       nh, nkv, repeats, hd, mask_coef):
    ki = pl.program_id(2)
    half = hd // 2

    @pl.when(ki == 0)
    def _init():
        m_ref[...] = jnp.full(m_ref.shape, -jnp.inf, jnp.float32)
        l_ref[...] = jnp.zeros(l_ref.shape, jnp.float32)
        acc_ref[...] = jnp.zeros(acc_ref.shape, jnp.float32)

    q = q_ref[...].astype(jnp.float32)        # (tq,  nh*hd)   q pre-scaled by hd**-0.5
    k = k_ref[...].astype(jnp.float32)        # (tkv, nkv*hd)
    v = v_ref[...]                            # (tkv, nkv*hd)  bf16
    cq, sq = cq_ref[...], sq_ref[...]         # (tq,  hd//2)   f32
    ck, sk = ck_ref[...], sk_ref[...]         # (tkv, hd//2)   f32
    tq, tkv = q.shape[0], k.shape[0]

    bias = None
    if mask_coef is not None:
        # LlamaModel.create_causal_mask: -1e-9 * i * j, built as a rank-1 outer product.
        qi = pl.program_id(1)
        row = (lax.broadcasted_iota(jnp.int32, (tq, 1), 0) + qi * tq).astype(jnp.float32)
        col = (lax.broadcasted_iota(jnp.int32, (1, tkv), 1) + ki * tkv).astype(jnp.float32)
        bias = mask_coef * row * col

    # Rotate K once per KV head (shared by the query heads of its GQA group).
    rks, vhs = [], []
    for g in range(nkv):
        ko = g * hd
        k1, k2 = k[:, ko:ko + half], k[:, ko + half:ko + hd]
        rks.append(jnp.concatenate([k1 * ck - k2 * sk, k1 * sk + k2 * ck],
                                   axis=-1).astype(jnp.bfloat16))
        vhs.append(v[:, ko:ko + hd])

    dims_qk = (((1,), (1,)), ((), ()))        # contract last dims directly: no K transpose
    dims_pv = (((1,), (0,)), ((), ()))

    for h in range(nh):
        g = h // repeats
        qo = h * hd
        q1, q2 = q[:, qo:qo + half], q[:, qo + half:qo + hd]
        rq = jnp.concatenate([q1 * cq - q2 * sq, q1 * sq + q2 * cq],
                             axis=-1).astype(jnp.bfloat16)

        s = lax.dot_general(rq, rks[g], dims_qk, preferred_element_type=jnp.float32)
        if bias is not None:
            s = s + bias

        m_prev = m_ref[h]
        m_new = jnp.maximum(m_prev, jnp.max(s, axis=-1, keepdims=True))
        alpha = jnp.exp(m_prev - m_new)
        p = jnp.exp(s - m_new)
        l_ref[h] = alpha * l_ref[h] + jnp.sum(p, axis=-1, keepdims=True)
        acc_ref[h] = alpha * acc_ref[h] + lax.dot_general(
            p.astype(jnp.bfloat16), vhs[g], dims_pv, preferred_element_type=jnp.float32)
        m_ref[h] = m_new

    @pl.when(ki == pl.num_programs(2) - 1)
    def _done():
        outs = [acc_ref[h] * pl.reciprocal(l_ref[h], approx=True) for h in range(nh)]
        # Single lane-dense store in the (B*L, nh*hd) layout o_proj consumes.
        o_ref[...] = jnp.concatenate(outs, axis=-1).astype(o_ref.dtype)


def flash_attention(qkv3, cos, sin, *, nh, nkv, hd, use_mask):
    """qkv3: (B, L, (nh+2*nkv)*hd) bf16 slab straight from the fused QKV matmul.
    Returns (B, L, nh*hd) bf16 attention output (no head transposes anywhere)."""
    B, L, W = qkv3.shape
    qw, kw = nh * hd, nkv * hd
    assert W == qw + 2 * kw
    assert qw % 128 == 0 and kw % 128 == 0, "head-group width must be lane-dense"
    assert qw % kw == 0
    repeats = nh // nkv
    tq = _pick_tile(L, 256, 16)
    tkv = _pick_tile(L, 512, 16)   # wide KV tiles amortize per-step overhead / rescales
    grid = (B, L // tq, L // tkv)

    q_spec = pl.BlockSpec((None, tq, qw), lambda b, qi, ki: (b, qi, 0))
    k_spec = pl.BlockSpec((None, tkv, kw), lambda b, qi, ki: (b, ki, repeats))
    v_spec = pl.BlockSpec((None, tkv, kw), lambda b, qi, ki: (b, ki, repeats + 1))
    cq_spec = pl.BlockSpec((tq, hd // 2), lambda b, qi, ki: (qi, 0))
    ck_spec = pl.BlockSpec((tkv, hd // 2), lambda b, qi, ki: (ki, 0))
    o_spec = pl.BlockSpec((None, tq, qw), lambda b, qi, ki: (b, qi, 0))

    kernel = functools.partial(_flash_attn_kernel, nh=nh, nkv=nkv, repeats=repeats,
                               hd=hd, mask_coef=(-1e-9 if use_mask else None))
    return pl.pallas_call(
        kernel, grid=grid,
        in_specs=[q_spec, k_spec, v_spec, cq_spec, cq_spec, ck_spec, ck_spec],
        out_specs=o_spec,
        out_shape=jax.ShapeDtypeStruct((B, L, qw), jnp.bfloat16),
        scratch_shapes=[pltpu.VMEM((nh, tq, 1), jnp.float32),
                        pltpu.VMEM((nh, tq, 1), jnp.float32),
                        pltpu.VMEM((nh, tq, hd), jnp.float32)],
        compiler_params=pltpu.CompilerParams(
            dimension_semantics=("parallel", "parallel", "arbitrary"),
            vmem_limit_bytes=_VMEM_LIMIT),
    )(qkv3, qkv3, qkv3, cos, sin, cos, sin)


# ------------------------------------- model glue (JAX) -------------------------------------


def rope_tables(L, head_dim, base, linear_scale, offset=0):
    half = head_dim // 2
    dim_pos = jnp.arange(half, dtype=jnp.float32)
    pos = jnp.arange(offset, L + offset, dtype=jnp.float32) / linear_scale
    dim_freq = jnp.exp(-dim_pos * (math.log(base) / half))
    m_theta = pos[:, None] * dim_freq[None, :]
    return jnp.cos(m_theta), jnp.sin(m_theta)


def _repeat_kv(t, repeats):
    if repeats == 1:
        return t
    b, nk, s, d = t.shape
    return jnp.broadcast_to(t[:, None], (b, repeats, nk, s, d)).reshape(b, repeats * nk, s, d)


def attention_block(xn2d, res2d, layer, cfg, cos, sin, B, L, use_mask):
    H = res2d.shape[1]
    nh = cfg["num_attention_heads"]
    nkv = cfg["num_key_value_heads"]
    hd = H // nh
    repeats = nh // nkv
    qw, kw = nh * hd, nkv * hd

    qkv = linear(xn2d, layer["wqkv_t"], out_dtype=jnp.bfloat16)   # fused QKV, q pre-scaled
    qkv3 = qkv.reshape(B, L, qw + 2 * kw)

    attn = flash_attention(qkv3, cos, sin, nh=nh, nkv=nkv, hd=hd, use_mask=use_mask)
    h2d = linear(attn.reshape(B * L, qw), layer["wo_t"],
                 out_dtype=jnp.float32, residual=res2d)            # o_proj + residual fused

    # Cache (matches the PyTorch module: post-RoPE keys, raw values, repeated to nh heads).
    # Plain-JAX glue for the returned cache only; not on the logits path.
    half = hd // 2
    k4 = qkv3[:, :, qw:qw + kw].reshape(B, L, nkv, hd).transpose(0, 2, 1, 3).astype(jnp.float32)
    v4 = qkv3[:, :, qw + kw:].reshape(B, L, nkv, hd).transpose(0, 2, 1, 3).astype(jnp.float32)
    k1, k2 = k4[..., :half], k4[..., half:]
    k_rot = jnp.concatenate([k1 * cos - k2 * sin, k1 * sin + k2 * cos], axis=-1)
    cache = (_repeat_kv(k_rot, repeats), _repeat_kv(v4, repeats))
    return h2d, cache


def deepseek_forward(tokens, prepared, cfg):
    x = jnp.take(prepared["embed"], tokens, axis=0)        # embedding gather in plain JAX
    B, L, H = x.shape
    hd = H // cfg["num_attention_heads"]
    eps = cfg["rms_norm_eps"]
    use_mask = L > 1
    cos, sin = rope_tables(L, hd, cfg["rope_theta"], cfg["rope_scaling_factor"])

    x2d = x.reshape(B * L, H)                               # f32 residual stream
    caches = []
    for layer in prepared["layers"]:
        xn = rmsnorm(x2d, layer["ln1_w"], eps)                                   # bf16
        h2d, cache = attention_block(xn, x2d, layer, cfg, cos, sin, B, L, use_mask)
        hn = rmsnorm(h2d, layer["ln2_w"], eps)                                   # bf16
        mlp_in = gate_up_silu(hn, layer["wg_t"], layer["wu_t"])                  # bf16
        x2d = linear(mlp_in, layer["wd_t"], out_dtype=jnp.float32, residual=h2d)
        caches.append(cache)

    xn = rmsnorm(x2d, prepared["norm_w"], eps)
    logits = linear(xn, prepared["lm_t"], out_dtype=jnp.float32)
    return logits.reshape(B, L, cfg["vocab_size"]), caches


# ------------------------------- params (PyTorch weight layout) ------------------------------


def init_params(key, cfg):
    H, I, V = cfg["hidden_size"], cfg["intermediate_size"], cfg["vocab_size"]
    nh, nkv = cfg["num_attention_heads"], cfg["num_key_value_heads"]
    hd = H // nh
    nlayer = cfg["num_hidden_layers"]
    keys = jax.random.split(key, 2 + 9 * nlayer)
    embed = jax.random.normal(keys[0], (V, H), jnp.float32) * 0.1
    lm_w = jax.random.normal(keys[1], (V, H), jnp.float32) * 0.02
    layers = []
    for li in range(nlayer):
        kq, kk, kv, ko, kg, ku, kd, k1, k2 = keys[2 + 9 * li: 2 + 9 * (li + 1)]
        layers.append(dict(
            q_w=jax.random.normal(kq, (nh * hd, H), jnp.float32) * 0.02,
            k_w=jax.random.normal(kk, (nkv * hd, H), jnp.float32) * 0.02,
            v_w=jax.random.normal(kv, (nkv * hd, H), jnp.float32) * 0.02,
            o_w=jax.random.normal(ko, (H, nkv * hd), jnp.float32) * 0.02,
            gate_w=jax.random.normal(kg, (I, H), jnp.float32) * 0.02,
            up_w=jax.random.normal(ku, (I, H), jnp.float32) * 0.02,
            down_w=jax.random.normal(kd, (H, I), jnp.float32) * 0.02,
            ln1_w=1.0 + 0.1 * jax.random.normal(k1, (H,), jnp.float32),
            ln2_w=1.0 + 0.1 * jax.random.normal(k2, (H,), jnp.float32),
        ))
    return dict(embed=embed, layers=layers,
                norm_w=jnp.ones((H,), jnp.float32), lm_w=lm_w)


def prepare_params(params, cfg):
    """One-time weight prep: fuse QKV (with head_dim**-0.5 baked into the Q rows),
    transpose to (in, out), cast to bf16 for the MXU."""
    H = cfg["hidden_size"]
    nh = cfg["num_attention_heads"]
    scale = (H // nh) ** (-0.5)
    layers = []
    for lp in params["layers"]:
        wqkv = jnp.concatenate([lp["q_w"] * scale, lp["k_w"], lp["v_w"]], axis=0)
        layers.append(dict(
            wqkv_t=wqkv.T.astype(jnp.bfloat16),
            wo_t=lp["o_w"].T.astype(jnp.bfloat16),
            wg_t=lp["gate_w"].T.astype(jnp.bfloat16),
            wu_t=lp["up_w"].T.astype(jnp.bfloat16),
            wd_t=lp["down_w"].T.astype(jnp.bfloat16),
            ln1_w=lp["ln1_w"], ln2_w=lp["ln2_w"],
        ))
    return dict(embed=params["embed"], layers=layers, norm_w=params["norm_w"],
                lm_t=params["lm_w"].T.astype(jnp.bfloat16))


# --------------------------- pure-JAX reference (mirrors bf16 use) ---------------------------


def _ref_linear(x2d, w):
    return jnp.dot(x2d.astype(jnp.bfloat16), w.T.astype(jnp.bfloat16),
                   preferred_element_type=jnp.float32)


def reference_forward(tokens, params, cfg):
    H = cfg["hidden_size"]
    nh, nkv = cfg["num_attention_heads"], cfg["num_key_value_heads"]
    hd = H // nh
    repeats = nh // nkv
    scale = hd ** (-0.5)
    eps = cfg["rms_norm_eps"]

    x = params["embed"][tokens]
    B, L, _ = x.shape
    cos, sin = rope_tables(L, hd, cfg["rope_theta"], cfg["rope_scaling_factor"])
    pos = jnp.arange(L, dtype=jnp.float32)
    mask = (-1e-9) * pos[:, None] * pos[None, :] if L > 1 else None

    def rmsn(t, w):
        return t * lax.rsqrt(jnp.mean(t * t, axis=-1, keepdims=True) + eps) * w

    def rope(t):
        t1, t2 = t[..., : hd // 2], t[..., hd // 2:]
        return jnp.concatenate([t1 * cos - t2 * sin, t1 * sin + t2 * cos], axis=-1)

    caches = []
    for lp in params["layers"]:
        xn = rmsn(x, lp["ln1_w"])
        x2d = xn.reshape(B * L, H)
        q = _ref_linear(x2d, lp["q_w"]).reshape(B, L, nh, hd).transpose(0, 2, 1, 3)
        k = _ref_linear(x2d, lp["k_w"]).reshape(B, L, nkv, hd).transpose(0, 2, 1, 3)
        v = _ref_linear(x2d, lp["v_w"]).reshape(B, L, nkv, hd).transpose(0, 2, 1, 3)
        rq = scale * rope(q)
        rk = rope(k)
        rk_r, v_r = _repeat_kv(rk, repeats), _repeat_kv(v, repeats)
        s = jnp.einsum("bhqd,bhkd->bhqk", rq.astype(jnp.bfloat16), rk_r.astype(jnp.bfloat16),
                       preferred_element_type=jnp.float32)
        if mask is not None:
            s = s + mask
        p = jax.nn.softmax(s, axis=-1)
        attn = jnp.einsum("bhqk,bhkd->bhqd", p.astype(jnp.bfloat16), v_r.astype(jnp.bfloat16),
                          preferred_element_type=jnp.float32)
        v_hat = attn.transpose(0, 2, 1, 3).reshape(B * L, nh * hd)
        h = x + _ref_linear(v_hat, lp["o_w"]).reshape(B, L, H)
        hn = rmsn(h, lp["ln2_w"]).reshape(B * L, H)
        g = _ref_linear(hn, lp["gate_w"])
        u = _ref_linear(hn, lp["up_w"])
        mlp = _ref_linear(jax.nn.silu(g) * u, lp["down_w"]).reshape(B, L, H)
        x = h + mlp
        caches.append((rk_r, v_r))

    xn = rmsn(x, params["norm_w"])
    logits = _ref_linear(xn.reshape(B * L, H), params["lm_w"]).reshape(B, L, cfg["vocab_size"])
    return logits, caches


# ----------------------------------------- main ---------------------------------------------


if __name__ == "__main__":
    cfg = dict(
        hidden_size=128,
        num_attention_heads=4,
        num_key_value_heads=4,   # o_proj shape in the PyTorch module requires nkv == nh
        num_hidden_layers=2,
        intermediate_size=256,
        vocab_size=256,
        max_position_embeddings=16384,
        rms_norm_eps=1e-6,
        rope_theta=100000.0,
        rope_scaling_factor=4.0,
    )
    B, L = 2, 16

    key = jax.random.PRNGKey(0)
    k_tok, k_par = jax.random.split(key)
    tokens = jax.random.randint(k_tok, (B, L), 0, cfg["vocab_size"], dtype=jnp.int32)
    params = init_params(k_par, cfg)
    prepared = prepare_params(params, cfg)

    fwd = jax.jit(functools.partial(deepseek_forward, cfg=cfg))
    logits, caches = fwd(tokens, prepared)
    jax.block_until_ready((logits, caches))

    ref_logits, ref_caches = jax.jit(functools.partial(reference_forward, cfg=cfg))(tokens, params)
    jax.block_until_ready((ref_logits, ref_caches))

    np.testing.assert_allclose(np.asarray(logits), np.asarray(ref_logits), rtol=2e-2, atol=2e-2)
    for (kc, vc), (rkc, rvc) in zip(caches, ref_caches):
        np.testing.assert_allclose(np.asarray(kc), np.asarray(rkc), rtol=2e-2, atol=2e-2)
        np.testing.assert_allclose(np.asarray(vc), np.asarray(rvc), rtol=2e-2, atol=2e-2)

    print("KERNEL_OK")
</pallas_src>

<mosaic_0001>
module attributes {stable_mosaic.version = 11 : i64} {
  func.func @_flash_attn_kernel(%arg0: i32, %arg1: i32, %arg2: i32, %arg3: memref<1x16x128xbf16, #tpu.memory_space<vmem>>, %arg4: memref<1x16x128xbf16, #tpu.memory_space<vmem>>, %arg5: memref<1x16x128xbf16, #tpu.memory_space<vmem>>, %arg6: memref<16x16xf32, #tpu.memory_space<vmem>>, %arg7: memref<16x16xf32, #tpu.memory_space<vmem>>, %arg8: memref<16x16xf32, #tpu.memory_space<vmem>>, %arg9: memref<16x16xf32, #tpu.memory_space<vmem>>, %arg10: memref<1x16x128xbf16, #tpu.memory_space<vmem>>, %arg11: memref<4x16x1xf32, #tpu.memory_space<vmem>>, %arg12: memref<4x16x1xf32, #tpu.memory_space<vmem>>, %arg13: memref<4x16x32xf32, #tpu.memory_space<vmem>>) attributes {dimension_semantics = [#tpu.dimension_semantics<parallel>, #tpu.dimension_semantics<parallel>, #tpu.dimension_semantics<arbitrary>], iteration_bounds = array<i64: 2, 1, 1>, scalar_prefetch = 0 : i64, scratch_operands = 3 : i64, tpu.core_type = #tpu.core_type<tc>, window_params = [{transform_indices = @transform_0, window_bounds = array<i64: 1, 16, 128>}, {transform_indices = @transform_1, window_bounds = array<i64: 1, 16, 128>}, {transform_indices = @transform_2, window_bounds = array<i64: 1, 16, 128>}, {transform_indices = @transform_3, window_bounds = array<i64: 16, 16>}, {transform_indices = @transform_4, window_bounds = array<i64: 16, 16>}, {transform_indices = @transform_5, window_bounds = array<i64: 16, 16>}, {transform_indices = @transform_6, window_bounds = array<i64: 16, 16>}, {transform_indices = @transform_7, window_bounds = array<i64: 1, 16, 128>}]} {
    %c0_i32 = arith.constant 0 : i32
    %0 = arith.cmpi eq, %arg2, %c0_i32 : i32
    %1 = arith.extui %0 : i1 to i32
    %c0_i32_0 = arith.constant 0 : i32
    %2 = arith.cmpi ne, %1, %c0_i32_0 : i32
    scf.if %2 {
      %cst_105 = arith.constant 0xFF800000 : f32
      %253 = vector.broadcast %cst_105 : f32 to vector<4x16x1xf32>
      %c0_106 = arith.constant 0 : index
      %c0_107 = arith.constant 0 : index
      %c0_108 = arith.constant 0 : index
      %254 = vector.load %arg11[%c0_106, %c0_107, %c0_108] : memref<4x16x1xf32, #tpu.memory_space<vmem>>, vector<4x16x1xf32>
      tpu.vector_store %arg11[%c0_106, %c0_107, %c0_108], %253 {strides = array<i32>} : memref<4x16x1xf32, #tpu.memory_space<vmem>>, vector<4x16x1xf32>,
      %cst_109 = arith.constant 0.000000e+00 : f32
      %255 = vector.broadcast %cst_109 : f32 to vector<4x16x1xf32>
      %c0_110 = arith.constant 0 : index
      %c0_111 = arith.constant 0 : index
      %c0_112 = arith.constant 0 : index
      %256 = vector.load %arg12[%c0_110, %c0_111, %c0_112] : memref<4x16x1xf32, #tpu.memory_space<vmem>>, vector<4x16x1xf32>
      tpu.vector_store %arg12[%c0_110, %c0_111, %c0_112], %255 {strides = array<i32>} : memref<4x16x1xf32, #tpu.memory_space<vmem>>, vector<4x16x1xf32>,
      %cst_113 = arith.constant 0.000000e+00 : f32
      %257 = vector.broadcast %cst_113 : f32 to vector<4x16x32xf32>
      %c0_114 = arith.constant 0 : index
      %c0_115 = arith.constant 0 : index
      %c0_116 = arith.constant 0 : index
      %258 = vector.load %arg13[%c0_114, %c0_115, %c0_116] : memref<4x16x32xf32, #tpu.memory_space<vmem>>, vector<4x16x32xf32>
      tpu.vector_store %arg13[%c0_114, %c0_115, %c0_116], %257 {strides = array<i32>} : memref<4x16x32xf32, #tpu.memory_space<vmem>>, vector<4x16x32xf32>,
    } else {
    }
    %c0 = arith.constant 0 : index
    %c0_1 = arith.constant 0 : index
    %c0_2 = arith.constant 0 : index
    %3 = vector.load %arg3[%c0, %c0_1, %c0_2] : memref<1x16x128xbf16, #tpu.memory_space<vmem>>, vector<1x16x128xbf16>
    %4 = vector.shape_cast %3 : vector<1x16x128xbf16> to vector<16x128xbf16>
    %5 = arith.extf %4 : vector<16x128xbf16> to vector<16x128xf32>
    %c0_3 = arith.constant 0 : index
    %c0_4 = arith.constant 0 : index
    %c0_5 = arith.constant 0 : index
    %6 = vector.load %arg4[%c0_3, %c0_4, %c0_5] : memref<1x16x128xbf16, #tpu.memory_space<vmem>>, vector<1x16x128xbf16>
    %7 = vector.shape_cast %6 : vector<1x16x128xbf16> to vector<16x128xbf16>
    %8 = arith.extf %7 : vector<16x128xbf16> to vector<16x128xf32>
    %c0_6 = arith.constant 0 : index
    %c0_7 = arith.constant 0 : index
    %c0_8 = arith.constant 0 : index
    %9 = vector.load %arg5[%c0_6, %c0_7, %c0_8] : memref<1x16x128xbf16, #tpu.memory_space<vmem>>, vector<1x16x128xbf16>
    %10 = vector.shape_cast %9 : vector<1x16x128xbf16> to vector<16x128xbf16>
    %c0_9 = arith.constant 0 : index
    %c0_10 = arith.constant 0 : index
    %11 = vector.load %arg6[%c0_9, %c0_10] : memref<16x16xf32, #tpu.memory_space<vmem>>, vector<16x16xf32>
    %c0_11 = arith.constant 0 : index
    %c0_12 = arith.constant 0 : index
    %12 = vector.load %arg7[%c0_11, %c0_12] : memref<16x16xf32, #tpu.memory_space<vmem>>, vector<16x16xf32>
    %c0_13 = arith.constant 0 : index
    %c0_14 = arith.constant 0 : index
    %13 = vector.load %arg8[%c0_13, %c0_14] : memref<16x16xf32, #tpu.memory_space<vmem>>, vector<16x16xf32>
    %c0_15 = arith.constant 0 : index
    %c0_16 = arith.constant 0 : index
    %14 = vector.load %arg9[%c0_15, %c0_16] : memref<16x16xf32, #tpu.memory_space<vmem>>, vector<16x16xf32>
    %15 = tpu.iota {dimensions = array<i32: 0>} : vector<16x1xi32>
    %c16_i32 = arith.constant 16 : i32
    %16 = arith.muli %arg1, %c16_i32 : i32
    %17 = vector.broadcast %16 : i32 to vector<16x1xi32>
    %18 = arith.addi %15, %17 : vector<16x1xi32>
    %19 = arith.sitofp %18 : vector<16x1xi32> to vector<16x1xf32>
    %20 = tpu.iota {dimensions = array<i32: 1>} : vector<1x16xi32>
    %c16_i32_17 = arith.constant 16 : i32
    %21 = arith.muli %arg2, %c16_i32_17 : i32
    %22 = vector.broadcast %21 : i32 to vector<1x16xi32>
    %23 = arith.addi %20, %22 : vector<1x16xi32>
    %24 = arith.sitofp %23 : vector<1x16xi32> to vector<1x16xf32>
    %cst = arith.constant -9.99999971E-10 : f32
    %25 = vector.broadcast %cst : f32 to vector<16x1xf32>
    %26 = arith.mulf %25, %19 : vector<16x1xf32>
    %27 = vector.broadcast %26 : vector<16x1xf32> to vector<16x16xf32>
    %28 = vector.broadcast %24 : vector<1x16xf32> to vector<16x16xf32>
    %29 = arith.mulf %27, %28 : vector<16x16xf32>
    %30 = vector.extract_strided_slice %8 {offsets = [0, 0], sizes = [16, 16], strides = [1, 1]} : vector<16x128xf32> to vector<16x16xf32>
    %31 = vector.extract_strided_slice %8 {offsets = [0, 16], sizes = [16, 16], strides = [1, 1]} : vector<16x128xf32> to vector<16x16xf32>
    %32 = arith.mulf %30, %13 : vector<16x16xf32>
    %33 = arith.mulf %31, %14 : vector<16x16xf32>
    %34 = arith.subf %32, %33 : vector<16x16xf32>
    %35 = arith.mulf %30, %14 : vector<16x16xf32>
    %36 = arith.mulf %31, %13 : vector<16x16xf32>
    %37 = arith.addf %35, %36 : vector<16x16xf32>
    %38 = tpu.concatenate %34, %37 in 1 : vector<16x16xf32>, vector<16x16xf32> -> vector<16x32xf32>
    %39 = arith.truncf %38 : vector<16x32xf32> to vector<16x32xbf16>
    %40 = vector.extract_strided_slice %10 {offsets = [0, 0], sizes = [16, 32], strides = [1, 1]} : vector<16x128xbf16> to vector<16x32xbf16>
    %41 = vector.extract_strided_slice %8 {offsets = [0, 32], sizes = [16, 16], strides = [1, 1]} : vector<16x128xf32> to vector<16x16xf32>
    %42 = vector.extract_strided_slice %8 {offsets = [0, 48], sizes = [16, 16], strides = [1, 1]} : vector<16x128xf32> to vector<16x16xf32>
    %43 = arith.mulf %41, %13 : vector<16x16xf32>
    %44 = arith.mulf %42, %14 : vector<16x16xf32>
    %45 = arith.subf %43, %44 : vector<16x16xf32>
    %46 = arith.mulf %41, %14 : vector<16x16xf32>
    %47 = arith.mulf %42, %13 : vector<16x16xf32>
    %48 = arith.addf %46, %47 : vector<16x16xf32>
    %49 = tpu.concatenate %45, %48 in 1 : vector<16x16xf32>, vector<16x16xf32> -> vector<16x32xf32>
    %50 = arith.truncf %49 : vector<16x32xf32> to vector<16x32xbf16>
    %51 = vector.extract_strided_slice %10 {offsets = [0, 32], sizes = [16, 32], strides = [1, 1]} : vector<16x128xbf16> to vector<16x32xbf16>
    %52 = vector.extract_strided_slice %8 {offsets = [0, 64], sizes = [16, 16], strides = [1, 1]} : vector<16x128xf32> to vector<16x16xf32>
    %53 = vector.extract_strided_slice %8 {offsets = [0, 80], sizes = [16, 16], strides = [1, 1]} : vector<16x128xf32> to vector<16x16xf32>
    %54 = arith.mulf %52, %13 : vector<16x16xf32>
    %55 = arith.mulf %53, %14 : vector<16x16xf32>
    %56 = arith.subf %54, %55 : vector<16x16xf32>
    %57 = arith.mulf %52, %14 : vector<16x16xf32>
    %58 = arith.mulf %53, %13 : vector<16x16xf32>
    %59 = arith.addf %57, %58 : vector<16x16xf32>
    %60 = tpu.concatenate %56, %59 in 1 : vector<16x16xf32>, vector<16x16xf32> -> vector<16x32xf32>
    %61 = arith.truncf %60 : vector<16x32xf32> to vector<16x32xbf16>
    %62 = vector.extract_strided_slice %10 {offsets = [0, 64], sizes = [16, 32], strides = [1, 1]} : vector<16x128xbf16> to vector<16x32xbf16>
    %63 = vector.extract_strided_slice %8 {offsets = [0, 96], sizes = [16, 16], strides = [1, 1]} : vector<16x128xf32> to vector<16x16xf32>
    %64 = vector.extract_strided_slice %8 {offsets = [0, 112], sizes = [16, 16], strides = [1, 1]} : vector<16x128xf32> to vector<16x16xf32>
    %65 = arith.mulf %63, %13 : vector<16x16xf32>
    %66 = arith.mulf %64, %14 : vector<16x16xf32>
    %67 = arith.subf %65, %66 : vector<16x16xf32>
    %68 = arith.mulf %63, %14 : vector<16x16xf32>
    %69 = arith.mulf %64, %13 : vector<16x16xf32>
    %70 = arith.addf %68, %69 : vector<16x16xf32>
    %71 = tpu.concatenate %67, %70 in 1 : vector<16x16xf32>, vector<16x16xf32> -> vector<16x32xf32>
    %72 = arith.truncf %71 : vector<16x32xf32> to vector<16x32xbf16>
    %73 = vector.extract_strided_slice %10 {offsets = [0, 96], sizes = [16, 32], strides = [1, 1]} : vector<16x128xbf16> to vector<16x32xbf16>
    %74 = vector.extract_strided_slice %5 {offsets = [0, 0], sizes = [16, 16], strides = [1, 1]} : vector<16x128xf32> to vector<16x16xf32>
    %75 = vector.extract_strided_slice %5 {offsets = [0, 16], sizes = [16, 16], strides = [1, 1]} : vector<16x128xf32> to vector<16x16xf32>
    %76 = arith.mulf %74, %11 : vector<16x16xf32>
    %77 = arith.mulf %75, %12 : vector<16x16xf32>
    %78 = arith.subf %76, %77 : vector<16x16xf32>
    %79 = arith.mulf %74, %12 : vector<16x16xf32>
    %80 = arith.mulf %75, %11 : vector<16x16xf32>
    %81 = arith.addf %79, %80 : vector<16x16xf32>
    %82 = tpu.concatenate %78, %81 in 1 : vector<16x16xf32>, vector<16x16xf32> -> vector<16x32xf32>
    %83 = arith.truncf %82 : vector<16x32xf32> to vector<16x32xbf16>
    %cst_18 = arith.constant dense<0.000000e+00> : vector<16x16xf32>
    %84 = tpu.matmul %83, %39, %cst_18 {dimension_numbers = #tpu.dot_dimension_numbers<[1], [1], [0], [0], [0, 0, 1, 0], [], []>} : vector<16x32xbf16>, vector<16x32xbf16>, vector<16x16xf32> -> vector<16x16xf32>
    %85 = arith.addf %84, %29 : vector<16x16xf32>
    %c0_19 = arith.constant 0 : index
    %c0_20 = arith.constant 0 : index
    %c0_21 = arith.constant 0 : index
    %86 = vector.load %arg11[%c0_19, %c0_20, %c0_21] : memref<4x16x1xf32, #tpu.memory_space<vmem>>, vector<1x16x1xf32>
    %87 = vector.shape_cast %86 : vector<1x16x1xf32> to vector<16x1xf32>
    %cst_22 = arith.constant dense<0xFF800000> : vector<16xf32>
    %88 = vector.multi_reduction <maximumf>, %85, %cst_22 [1] : vector<16x16xf32> to vector<16xf32>
    %89 = vector.shape_cast %88 : vector<16xf32> to vector<16x1xf32>
    %90 = arith.maximumf %87, %89 : vector<16x1xf32>
    %91 = arith.subf %87, %90 : vector<16x1xf32>
    %92 = math.exp %91 : vector<16x1xf32>
    %93 = vector.broadcast %90 : vector<16x1xf32> to vector<16x16xf32>
    %94 = arith.subf %85, %93 : vector<16x16xf32>
    %95 = math.exp %94 : vector<16x16xf32>
    %c0_23 = arith.constant 0 : index
    %c0_24 = arith.constant 0 : index
    %c0_25 = arith.constant 0 : index
    %96 = vector.load %arg12[%c0_23, %c0_24, %c0_25] : memref<4x16x1xf32, #tpu.memory_space<vmem>>, vector<1x16x1xf32>
    %97 = vector.shape_cast %96 : vector<1x16x1xf32> to vector<16x1xf32>
    %98 = arith.mulf %92, %97 : vector<16x1xf32>
    %cst_26 = arith.constant dense<0.000000e+00> : vector<16xf32>
    %99 = vector.multi_reduction <add>, %95, %cst_26 [1] : vector<16x16xf32> to vector<16xf32>
    %100 = vector.shape_cast %99 : vector<16xf32> to vector<16x1xf32>
    %101 = arith.addf %98, %100 : vector<16x1xf32>
    %c0_27 = arith.constant 0 : index
    %c0_28 = arith.constant 0 : index
    %c0_29 = arith.constant 0 : index
    %102 = vector.load %arg12[%c0_27, %c0_28, %c0_29] : memref<4x16x1xf32, #tpu.memory_space<vmem>>, vector<1x16x1xf32>
    %103 = vector.shape_cast %102 : vector<1x16x1xf32> to vector<16x1xf32>
    %104 = vector.shape_cast %101 : vector<16x1xf32> to vector<1x16x1xf32>
    tpu.vector_store %arg12[%c0_27, %c0_28, %c0_29], %104 {strides = array<i32>} : memref<4x16x1xf32, #tpu.memory_space<vmem>>, vector<1x16x1xf32>,
    %c0_30 = arith.constant 0 : index
    %c0_31 = arith.constant 0 : index
    %c0_32 = arith.constant 0 : index
    %105 = vector.load %arg13[%c0_30, %c0_31, %c0_32] : memref<4x16x32xf32, #tpu.memory_space<vmem>>, vector<1x16x32xf32>
    %106 = vector.shape_cast %105 : vector<1x16x32xf32> to vector<16x32xf32>
    %107 = vector.broadcast %92 : vector<16x1xf32> to vector<16x32xf32>
    %108 = arith.mulf %107, %106 : vector<16x32xf32>
    %109 = arith.truncf %95 : vector<16x16xf32> to vector<16x16xbf16>
    %cst_33 = arith.constant dense<0.000000e+00> : vector<16x32xf32>
    %110 = tpu.matmul %109, %40, %cst_33 {dimension_numbers = #tpu.dot_dimension_numbers<[1], [0], [0], [1], [0, 0, 1, 1], [], []>} : vector<16x16xbf16>, vector<16x32xbf16>, vector<16x32xf32> -> vector<16x32xf32>
    %111 = arith.addf %108, %110 : vector<16x32xf32>
    %c0_34 = arith.constant 0 : index
    %c0_35 = arith.constant 0 : index
    %c0_36 = arith.constant 0 : index
    %112 = vector.load %arg13[%c0_34, %c0_35, %c0_36] : memref<4x16x32xf32, #tpu.memory_space<vmem>>, vector<1x16x32xf32>
    %113 = vector.shape_cast %112 : vector<1x16x32xf32> to vector<16x32xf32>
    %114 = vector.shape_cast %111 : vector<16x32xf32> to vector<1x16x32xf32>
    tpu.vector_store %arg13[%c0_34, %c0_35, %c0_36], %114 {strides = array<i32>} : memref<4x16x32xf32, #tpu.memory_space<vmem>>, vector<1x16x32xf32>,
    %c0_37 = arith.constant 0 : index
    %c0_38 = arith.constant 0 : index
    %c0_39 = arith.constant 0 : index
    %115 = vector.load %arg11[%c0_37, %c0_38, %c0_39] : memref<4x16x1xf32, #tpu.memory_space<vmem>>, vector<1x16x1xf32>
    %116 = vector.shape_cast %115 : vector<1x16x1xf32> to vector<16x1xf32>
    %117 = vector.shape_cast %90 : vector<16x1xf32> to vector<1x16x1xf32>
    tpu.vector_store %arg11[%c0_37, %c0_38, %c0_39], %117 {strides = array<i32>} : memref<4x16x1xf32, #tpu.memory_space<vmem>>, vector<1x16x1xf32>,
    %118 = vector.extract_strided_slice %5 {offsets = [0, 32], sizes = [16, 16], strides = [1, 1]} : vector<16x128xf32> to vector<16x16xf32>
    %119 = vector.extract_strided_slice %5 {offsets = [0, 48], sizes = [16, 16], strides = [1, 1]} : vector<16x128xf32> to vector<16x16xf32>
    %120 = arith.mulf %118, %11 : vector<16x16xf32>
    %121 = arith.mulf %119, %12 : vector<16x16xf32>
    %122 = arith.subf %120, %121 : vector<16x16xf32>
    %123 = arith.mulf %118, %12 : vector<16x16xf32>
    %124 = arith.mulf %119, %11 : vector<16x16xf32>
    %125 = arith.addf %123, %124 : vector<16x16xf32>
    %126 = tpu.concatenate %122, %125 in 1 : vector<16x16xf32>, vector<16x16xf32> -> vector<16x32xf32>
    %127 = arith.truncf %126 : vector<16x32xf32> to vector<16x32xbf16>
    %cst_40 = arith.constant dense<0.000000e+00> : vector<16x16xf32>
    %128 = tpu.matmul %127, %50, %cst_40 {dimension_numbers = #tpu.dot_dimension_numbers<[1], [1], [0], [0], [0, 0, 1, 0], [], []>} : vector<16x32xbf16>, vector<16x32xbf16>, vector<16x16xf32> -> vector<16x16xf32>
    %129 = arith.addf %128, %29 : vector<16x16xf32>
    %c1 = arith.constant 1 : index
    %c0_41 = arith.constant 0 : index
    %c0_42 = arith.constant 0 : index
    %130 = vector.load %arg11[%c1, %c0_41, %c0_42] : memref<4x16x1xf32, #tpu.memory_space<vmem>>, vector<1x16x1xf32>
    %131 = vector.shape_cast %130 : vector<1x16x1xf32> to vector<16x1xf32>
    %cst_43 = arith.constant dense<0xFF800000> : vector<16xf32>
    %132 = vector.multi_reduction <maximumf>, %129, %cst_43 [1] : vector<16x16xf32> to vector<16xf32>
    %133 = vector.shape_cast %132 : vector<16xf32> to vector<16x1xf32>
    %134 = arith.maximumf %131, %133 : vector<16x1xf32>
    %135 = arith.subf %131, %134 : vector<16x1xf32>
    %136 = math.exp %135 : vector<16x1xf32>
    %137 = vector.broadcast %134 : vector<16x1xf32> to vector<16x16xf32>
    %138 = arith.subf %129, %137 : vector<16x16xf32>
    %139 = math.exp %138 : vector<16x16xf32>
    %c1_44 = arith.constant 1 : index
    %c0_45 = arith.constant 0 : index
    %c0_46 = arith.constant 0 : index
    %140 = vector.load %arg12[%c1_44, %c0_45, %c0_46] : memref<4x16x1xf32, #tpu.memory_space<vmem>>, vector<1x16x1xf32>
    %141 = vector.shape_cast %140 : vector<1x16x1xf32> to vector<16x1xf32>
    %142 = arith.mulf %136, %141 : vector<16x1xf32>
    %cst_47 = arith.constant dense<0.000000e+00> : vector<16xf32>
    %143 = vector.multi_reduction <add>, %139, %cst_47 [1] : vector<16x16xf32> to vector<16xf32>
    %144 = vector.shape_cast %143 : vector<16xf32> to vector<16x1xf32>
    %145 = arith.addf %142, %144 : vector<16x1xf32>
    %c1_48 = arith.constant 1 : index
    %c0_49 = arith.constant 0 : index
    %c0_50 = arith.constant 0 : index
    %146 = vector.load %arg12[%c1_48, %c0_49, %c0_50] : memref<4x16x1xf32, #tpu.memory_space<vmem>>, vector<1x16x1xf32>
    %147 = vector.shape_cast %146 : vector<1x16x1xf32> to vector<16x1xf32>
    %148 = vector.shape_cast %145 : vector<16x1xf32> to vector<1x16x1xf32>
    tpu.vector_store %arg12[%c1_48, %c0_49, %c0_50], %148 {strides = array<i32>} : memref<4x16x1xf32, #tpu.memory_space<vmem>>, vector<1x16x1xf32>,
    %c1_51 = arith.constant 1 : index
    %c0_52 = arith.constant 0 : index
    %c0_53 = arith.constant 0 : index
    %149 = vector.load %arg13[%c1_51, %c0_52, %c0_53] : memref<4x16x32xf32, #tpu.memory_space<vmem>>, vector<1x16x32xf32>
    %150 = vector.shape_cast %149 : vector<1x16x32xf32> to vector<16x32xf32>
    %151 = vector.broadcast %136 : vector<16x1xf32> to vector<16x32xf32>
    %152 = arith.mulf %151, %150 : vector<16x32xf32>
    %153 = arith.truncf %139 : vector<16x16xf32> to vector<16x16xbf16>
    %cst_54 = arith.constant dense<0.000000e+00> : vector<16x32xf32>
    %154 = tpu.matmul %153, %51, %cst_54 {dimension_numbers = #tpu.dot_dimension_numbers<[1], [0], [0], [1], [0, 0, 1, 1], [], []>} : vector<16x16xbf16>, vector<16x32xbf16>, vector<16x32xf32> -> vector<16x32xf32>
    %155 = arith.addf %152, %154 : vector<16x32xf32>
    %c1_55 = arith.constant 1 : index
    %c0_56 = arith.constant 0 : index
    %c0_57 = arith.constant 0 : index
    %156 = vector.load %arg13[%c1_55, %c0_56, %c0_57] : memref<4x16x32xf32, #tpu.memory_space<vmem>>, vector<1x16x32xf32>
    %157 = vector.shape_cast %156 : vector<1x16x32xf32> to vector<16x32xf32>
    %158 = vector.shape_cast %155 : vector<16x32xf32> to vector<1x16x32xf32>
    tpu.vector_store %arg13[%c1_55, %c0_56, %c0_57], %158 {strides = array<i32>} : memref<4x16x32xf32, #tpu.memory_space<vmem>>, vector<1x16x32xf32>,
    %c1_58 = arith.constant 1 : index
    %c0_59 = arith.constant 0 : index
    %c0_60 = arith.constant 0 : index
    %159 = vector.load %arg11[%c1_58, %c0_59, %c0_60] : memref<4x16x1xf32, #tpu.memory_space<vmem>>, vector<1x16x1xf32>
    %160 = vector.shape_cast %159 : vector<1x16x1xf32> to vector<16x1xf32>
    %161 = vector.shape_cast %134 : vector<16x1xf32> to vector<1x16x1xf32>
    tpu.vector_store %arg11[%c1_58, %c0_59, %c0_60], %161 {strides = array<i32>} : memref<4x16x1xf32, #tpu.memory_space<vmem>>, vector<1x16x1xf32>,
    %162 = vector.extract_strided_slice %5 {offsets = [0, 64], sizes = [16, 16], strides = [1, 1]} : vector<16x128xf32> to vector<16x16xf32>
    %163 = vector.extract_strided_slice %5 {offsets = [0, 80], sizes = [16, 16], strides = [1, 1]} : vector<16x128xf32> to vector<16x16xf32>
    %164 = arith.mulf %162, %11 : vector<16x16xf32>
    %165 = arith.mulf %163, %12 : vector<16x16xf32>
    %166 = arith.subf %164, %165 : vector<16x16xf32>
    %167 = arith.mulf %162, %12 : vector<16x16xf32>
    %168 = arith.mulf %163, %11 : vector<16x16xf32>
    %169 = arith.addf %167, %168 : vector<16x16xf32>
    %170 = tpu.concatenate %166, %169 in 1 : vector<16x16xf32>, vector<16x16xf32> -> vector<16x32xf32>
    %171 = arith.truncf %170 : vector<16x32xf32> to vector<16x32xbf16>
    %cst_61 = arith.constant dense<0.000000e+00> : vector<16x16xf32>
    %172 = tpu.matmul %171, %61, %cst_61 {dimension_numbers = #tpu.dot_dimension_numbers<[1], [1], [0], [0], [0, 0, 1, 0], [], []>} : vector<16x32xbf16>, vector<16x32xbf16>, vector<16x16xf32> -> vector<16x16xf32>
    %173 = arith.addf %172, %29 : vector<16x16xf32>
    %c2 = arith.constant 2 : index
    %c0_62 = arith.constant 0 : index
    %c0_63 = arith.constant 0 : index
    %174 = vector.load %arg11[%c2, %c0_62, %c0_63] : memref<4x16x1xf32, #tpu.memory_space<vmem>>, vector<1x16x1xf32>
    %175 = vector.shape_cast %174 : vector<1x16x1xf32> to vector<16x1xf32>
    %cst_64 = arith.constant dense<0xFF800000> : vector<16xf32>
    %176 = vector.multi_reduction <maximumf>, %173, %cst_64 [1] : vector<16x16xf32> to vector<16xf32>
    %177 = vector.shape_cast %176 : vector<16xf32> to vector<16x1xf32>
    %178 = arith.maximumf %175, %177 : vector<16x1xf32>
    %179 = arith.subf %175, %178 : vector<16x1xf32>
    %180 = math.exp %179 : vector<16x1xf32>
    %181 = vector.broadcast %178 : vector<16x1xf32> to vector<16x16xf32>
    %182 = arith.subf %173, %181 : vector<16x16xf32>
    %183 = math.exp %182 : vector<16x16xf32>
    %c2_65 = arith.constant 2 : index
    %c0_66 = arith.constant 0 : index
    %c0_67 = arith.constant 0 : index
    %184 = vector.load %arg12[%c2_65, %c0_66, %c0_67] : memref<4x16x1xf32, #tpu.memory_space<vmem>>, vector<1x16x1xf32>
    %185 = vector.shape_cast %184 : vector<1x16x1xf32> to vector<16x1xf32>
    %186 = arith.mulf %180, %185 : vector<16x1xf32>
    %cst_68 = arith.constant dense<0.000000e+00> : vector<16xf32>
    %187 = vector.multi_reduction <add>, %183, %cst_68 [1] : vector<16x16xf32> to vector<16xf32>
    %188 = vector.shape_cast %187 : vector<16xf32> to vector<16x1xf32>
    %189 = arith.addf %186, %188 : vector<16x1xf32>
    %c2_69 = arith.constant 2 : index
    %c0_70 = arith.constant 0 : index
    %c0_71 = arith.constant 0 : index
    %190 = vector.load %arg12[%c2_69, %c0_70, %c0_71] : memref<4x16x1xf32, #tpu.memory_space<vmem>>, vector<1x16x1xf32>
    %191 = vector.shape_cast %190 : vector<1x16x1xf32> to vector<16x1xf32>
    %192 = vector.shape_cast %189 : vector<16x1xf32> to vector<1x16x1xf32>
    tpu.vector_store %arg12[%c2_69, %c0_70, %c0_71], %192 {strides = array<i32>} : memref<4x16x1xf32, #tpu.memory_space<vmem>>, vector<1x16x1xf32>,
    %c2_72 = arith.constant 2 : index
    %c0_73 = arith.constant 0 : index
    %c0_74 = arith.constant 0 : index
    %193 = vector.load %arg13[%c2_72, %c0_73, %c0_74] : memref<4x16x32xf32, #tpu.memory_space<vmem>>, vector<1x16x32xf32>
    %194 = vector.shape_cast %193 : vector<1x16x32xf32> to vector<16x32xf32>
    %195 = vector.broadcast %180 : vector<16x1xf32> to vector<16x32xf32>
    %196 = arith.mulf %195, %194 : vector<16x32xf32>
    %197 = arith.truncf %183 : vector<16x16xf32> to vector<16x16xbf16>
    %cst_75 = arith.constant dense<0.000000e+00> : vector<16x32xf32>
    %198 = tpu.matmul %197, %62, %cst_75 {dimension_numbers = #tpu.dot_dimension_numbers<[1], [0], [0], [1], [0, 0, 1, 1], [], []>} : vector<16x16xbf16>, vector<16x32xbf16>, vector<16x32xf32> -> vector<16x32xf32>
    %199 = arith.addf %196, %198 : vector<16x32xf32>
    %c2_76 = arith.constant 2 : index
    %c0_77 = arith.constant 0 : index
    %c0_78 = arith.constant 0 : index
    %200 = vector.load %arg13[%c2_76, %c0_77, %c0_78] : memref<4x16x32xf32, #tpu.memory_space<vmem>>, vector<1x16x32xf32>
    %201 = vector.shape_cast %200 : vector<1x16x32xf32> to vector<16x32xf32>
    %202 = vector.shape_cast %199 : vector<16x32xf32> to vector<1x16x32xf32>
    tpu.vector_store %arg13[%c2_76, %c0_77, %c0_78], %202 {strides = array<i32>} : memref<4x16x32xf32, #tpu.memory_space<vmem>>, vector<1x16x32xf32>,
    %c2_79 = arith.constant 2 : index
    %c0_80 = arith.constant 0 : index
    %c0_81 = arith.constant 0 : index
    %203 = vector.load %arg11[%c2_79, %c0_80, %c0_81] : memref<4x16x1xf32, #tpu.memory_space<vmem>>, vector<1x16x1xf32>
    %204 = vector.shape_cast %203 : vector<1x16x1xf32> to vector<16x1xf32>
    %205 = vector.shape_cast %178 : vector<16x1xf32> to vector<1x16x1xf32>
    tpu.vector_store %arg11[%c2_79, %c0_80, %c0_81], %205 {strides = array<i32>} : memref<4x16x1xf32, #tpu.memory_space<vmem>>, vector<1x16x1xf32>,
    %206 = vector.extract_strided_slice %5 {offsets = [0, 96], sizes = [16, 16], strides = [1, 1]} : vector<16x128xf32> to vector<16x16xf32>
    %207 = vector.extract_strided_slice %5 {offsets = [0, 112], sizes = [16, 16], strides = [1, 1]} : vector<16x128xf32> to vector<16x16xf32>
    %208 = arith.mulf %206, %11 : vector<16x16xf32>
    %209 = arith.mulf %207, %12 : vector<16x16xf32>
    %210 = arith.subf %208, %209 : vector<16x16xf32>
    %211 = arith.mulf %206, %12 : vector<16x16xf32>
    %212 = arith.mulf %207, %11 : vector<16x16xf32>
    %213 = arith.addf %211, %212 : vector<16x16xf32>
    %214 = tpu.concatenate %210, %213 in 1 : vector<16x16xf32>, vector<16x16xf32> -> vector<16x32xf32>
    %215 = arith.truncf %214 : vector<16x32xf32> to vector<16x32xbf16>
    %cst_82 = arith.constant dense<0.000000e+00> : vector<16x16xf32>
    %216 = tpu.matmul %215, %72, %cst_82 {dimension_numbers = #tpu.dot_dimension_numbers<[1], [1], [0], [0], [0, 0, 1, 0], [], []>} : vector<16x32xbf16>, vector<16x32xbf16>, vector<16x16xf32> -> vector<16x16xf32>
    %217 = arith.addf %216, %29 : vector<16x16xf32>
    %c3 = arith.constant 3 : index
    %c0_83 = arith.constant 0 : index
    %c0_84 = arith.constant 0 : index
    %218 = vector.load %arg11[%c3, %c0_83, %c0_84] : memref<4x16x1xf32, #tpu.memory_space<vmem>>, vector<1x16x1xf32>
    %219 = vector.shape_cast %218 : vector<1x16x1xf32> to vector<16x1xf32>
    %cst_85 = arith.constant dense<0xFF800000> : vector<16xf32>
    %220 = vector.multi_reduction <maximumf>, %217, %cst_85 [1] : vector<16x16xf32> to vector<16xf32>
    %221 = vector.shape_cast %220 : vector<16xf32> to vector<16x1xf32>
    %222 = arith.maximumf %219, %221 : vector<16x1xf32>
    %223 = arith.subf %219, %222 : vector<16x1xf32>
    %224 = math.exp %223 : vector<16x1xf32>
    %225 = vector.broadcast %222 : vector<16x1xf32> to vector<16x16xf32>
    %226 = arith.subf %217, %225 : vector<16x16xf32>
    %227 = math.exp %226 : vector<16x16xf32>
    %c3_86 = arith.constant 3 : index
    %c0_87 = arith.constant 0 : index
    %c0_88 = arith.constant 0 : index
    %228 = vector.load %arg12[%c3_86, %c0_87, %c0_88] : memref<4x16x1xf32, #tpu.memory_space<vmem>>, vector<1x16x1xf32>
    %229 = vector.shape_cast %228 : vector<1x16x1xf32> to vector<16x1xf32>
    %230 = arith.mulf %224, %229 : vector<16x1xf32>
    %cst_89 = arith.constant dense<0.000000e+00> : vector<16xf32>
    %231 = vector.multi_reduction <add>, %227, %cst_89 [1] : vector<16x16xf32> to vector<16xf32>
    %232 = vector.shape_cast %231 : vector<16xf32> to vector<16x1xf32>
    %233 = arith.addf %230, %232 : vector<16x1xf32>
    %c3_90 = arith.constant 3 : index
    %c0_91 = arith.constant 0 : index
    %c0_92 = arith.constant 0 : index
    %234 = vector.load %arg12[%c3_90, %c0_91, %c0_92] : memref<4x16x1xf32, #tpu.memory_space<vmem>>, vector<1x16x1xf32>
    %235 = vector.shape_cast %234 : vector<1x16x1xf32> to vector<16x1xf32>
    %236 = vector.shape_cast %233 : vector<16x1xf32> to vector<1x16x1xf32>
    tpu.vector_store %arg12[%c3_90, %c0_91, %c0_92], %236 {strides = array<i32>} : memref<4x16x1xf32, #tpu.memory_space<vmem>>, vector<1x16x1xf32>,
    %c3_93 = arith.constant 3 : index
    %c0_94 = arith.constant 0 : index
    %c0_95 = arith.constant 0 : index
    %237 = vector.load %arg13[%c3_93, %c0_94, %c0_95] : memref<4x16x32xf32, #tpu.memory_space<vmem>>, vector<1x16x32xf32>
    %238 = vector.shape_cast %237 : vector<1x16x32xf32> to vector<16x32xf32>
    %239 = vector.broadcast %224 : vector<16x1xf32> to vector<16x32xf32>
    %240 = arith.mulf %239, %238 : vector<16x32xf32>
    %241 = arith.truncf %227 : vector<16x16xf32> to vector<16x16xbf16>
    %cst_96 = arith.constant dense<0.000000e+00> : vector<16x32xf32>
    %242 = tpu.matmul %241, %73, %cst_96 {dimension_numbers = #tpu.dot_dimension_numbers<[1], [0], [0], [1], [0, 0, 1, 1], [], []>} : vector<16x16xbf16>, vector<16x32xbf16>, vector<16x32xf32> -> vector<16x32xf32>
    %243 = arith.addf %240, %242 : vector<16x32xf32>
    %c3_97 = arith.constant 3 : index
    %c0_98 = arith.constant 0 : index
    %c0_99 = arith.constant 0 : index
    %244 = vector.load %arg13[%c3_97, %c0_98, %c0_99] : memref<4x16x32xf32, #tpu.memory_space<vmem>>, vector<1x16x32xf32>
    %245 = vector.shape_cast %244 : vector<1x16x32xf32> to vector<16x32xf32>
    %246 = vector.shape_cast %243 : vector<16x32xf32> to vector<1x16x32xf32>
    tpu.vector_store %arg13[%c3_97, %c0_98, %c0_99], %246 {strides = array<i32>} : memref<4x16x32xf32, #tpu.memory_space<vmem>>, vector<1x16x32xf32>,
    %c3_100 = arith.constant 3 : index
    %c0_101 = arith.constant 0 : index
    %c0_102 = arith.constant 0 : index
    %247 = vector.load %arg11[%c3_100, %c0_101, %c0_102] : memref<4x16x1xf32, #tpu.memory_space<vmem>>, vector<1x16x1xf32>
    %248 = vector.shape_cast %247 : vector<1x16x1xf32> to vector<16x1xf32>
    %249 = vector.shape_cast %222 : vector<16x1xf32> to vector<1x16x1xf32>
    tpu.vector_store %arg11[%c3_100, %c0_101, %c0_102], %249 {strides = array<i32>} : memref<4x16x1xf32, #tpu.memory_space<vmem>>, vector<1x16x1xf32>,
    %c0_i32_103 = arith.constant 0 : i32
    %250 = arith.cmpi eq, %arg2, %c0_i32_103 : i32
    %251 = arith.extui %250 : i1 to i32
    %c0_i32_104 = arith.constant 0 : i32
    %252 = arith.cmpi ne, %251, %c0_i32_104 : i32
    scf.if %252 {
      %c0_105 = arith.constant 0 : index
      %c0_106 = arith.constant 0 : index
      %c0_107 = arith.constant 0 : index
      %253 = vector.load %arg13[%c0_105, %c0_106, %c0_107] : memref<4x16x32xf32, #tpu.memory_space<vmem>>, vector<1x16x32xf32>
      %254 = vector.shape_cast %253 : vector<1x16x32xf32> to vector<16x32xf32>
      %c0_108 = arith.constant 0 : index
      %c0_109 = arith.constant 0 : index
      %c0_110 = arith.constant 0 : index
      %255 = vector.load %arg12[%c0_108, %c0_109, %c0_110] : memref<4x16x1xf32, #tpu.memory_space<vmem>>, vector<1x16x1xf32>
      %256 = vector.shape_cast %255 : vector<1x16x1xf32> to vector<16x1xf32>
      %257 = tpu.reciprocal %256 {approx = true} : vector<16x1xf32> -> vector<16x1xf32>
      %258 = vector.broadcast %257 : vector<16x1xf32> to vector<16x32xf32>
      %259 = arith.mulf %254, %258 : vector<16x32xf32>
      %c1_111 = arith.constant 1 : index
      %c0_112 = arith.constant 0 : index
      %c0_113 = arith.constant 0 : index
      %260 = vector.load %arg13[%c1_111, %c0_112, %c0_113] : memref<4x16x32xf32, #tpu.memory_space<vmem>>, vector<1x16x32xf32>
      %261 = vector.shape_cast %260 : vector<1x16x32xf32> to vector<16x32xf32>
      %c1_114 = arith.constant 1 : index
      %c0_115 = arith.constant 0 : index
      %c0_116 = arith.constant 0 : index
      %262 = vector.load %arg12[%c1_114, %c0_115, %c0_116] : memref<4x16x1xf32, #tpu.memory_space<vmem>>, vector<1x16x1xf32>
      %263 = vector.shape_cast %262 : vector<1x16x1xf32> to vector<16x1xf32>
      %264 = tpu.reciprocal %263 {approx = true} : vector<16x1xf32> -> vector<16x1xf32>
      %265 = vector.broadcast %264 : vector<16x1xf32> to vector<16x32xf32>
      %266 = arith.mulf %261, %265 : vector<16x32xf32>
      %c2_117 = arith.constant 2 : index
      %c0_118 = arith.constant 0 : index
      %c0_119 = arith.constant 0 : index
      %267 = vector.load %arg13[%c2_117, %c0_118, %c0_119] : memref<4x16x32xf32, #tpu.memory_space<vmem>>, vector<1x16x32xf32>
      %268 = vector.shape_cast %267 : vector<1x16x32xf32> to vector<16x32xf32>
      %c2_120 = arith.constant 2 : index
      %c0_121 = arith.constant 0 : index
      %c0_122 = arith.constant 0 : index
      %269 = vector.load %arg12[%c2_120, %c0_121, %c0_122] : memref<4x16x1xf32, #tpu.memory_space<vmem>>, vector<1x16x1xf32>
      %270 = vector.shape_cast %269 : vector<1x16x1xf32> to vector<16x1xf32>
      %271 = tpu.reciprocal %270 {approx = true} : vector<16x1xf32> -> vector<16x1xf32>
      %272 = vector.broadcast %271 : vector<16x1xf32> to vector<16x32xf32>
      %273 = arith.mulf %268, %272 : vector<16x32xf32>
      %c3_123 = arith.constant 3 : index
      %c0_124 = arith.constant 0 : index
      %c0_125 = arith.constant 0 : index
      %274 = vector.load %arg13[%c3_123, %c0_124, %c0_125] : memref<4x16x32xf32, #tpu.memory_space<vmem>>, vector<1x16x32xf32>
      %275 = vector.shape_cast %274 : vector<1x16x32xf32> to vector<16x32xf32>
      %c3_126 = arith.constant 3 : index
      %c0_127 = arith.constant 0 : index
      %c0_128 = arith.constant 0 : index
      %276 = vector.load %arg12[%c3_126, %c0_127, %c0_128] : memref<4x16x1xf32, #tpu.memory_space<vmem>>, vector<1x16x1xf32>
      %277 = vector.shape_cast %276 : vector<1x16x1xf32> to vector<16x1xf32>
      %278 = tpu.reciprocal %277 {approx = true} : vector<16x1xf32> -> vector<16x1xf32>
      %279 = vector.broadcast %278 : vector<16x1xf32> to vector<16x32xf32>
      %280 = arith.mulf %275, %279 : vector<16x32xf32>
      %281 = tpu.concatenate %259, %266, %273, %280 in 1 : vector<16x32xf32>, vector<16x32xf32>, vector<16x32xf32>, vector<16x32xf32> -> vector<16x128xf32>
      %282 = arith.truncf %281 : vector<16x128xf32> to vector<16x128xbf16>
      %c0_129 = arith.constant 0 : index
      %c0_130 = arith.constant 0 : index
      %c0_131 = arith.constant 0 : index
      %283 = vector.load %arg10[%c0_129, %c0_130, %c0_131] : memref<1x16x128xbf16, #tpu.memory_space<vmem>>, vector<1x16x128xbf16>
      %284 = vector.shape_cast %283 : vector<1x16x128xbf16> to vector<16x128xbf16>
      %285 = vector.shape_cast %282 : vector<16x128xbf16> to vector<1x16x128xbf16>
      tpu.vector_store %arg10[%c0_129, %c0_130, %c0_131], %285 {strides = array<i32>} : memref<1x16x128xbf16, #tpu.memory_space<vmem>>, vector<1x16x128xbf16>,
    } else {
    }
    return
  }
  func.func @transform_0(%arg0: i32, %arg1: i32, %arg2: i32) -> (i32, i32, i32) {
    %c0_i32 = arith.constant 0 : i32
    %c0_i32_0 = arith.constant 0 : i32
    return %arg0, %arg1, %c0_i32 : i32, i32, i32
  }
  func.func @transform_1(%arg0: i32, %arg1: i32, %arg2: i32) -> (i32, i32, i32) {
    %c1_i32 = arith.constant 1 : i32
    %c0_i32 = arith.constant 0 : i32
    return %arg0, %arg2, %c1_i32 : i32, i32, i32
  }
  func.func @transform_2(%arg0: i32, %arg1: i32, %arg2: i32) -> (i32, i32, i32) {
    %c2_i32 = arith.constant 2 : i32
    %c0_i32 = arith.constant 0 : i32
    return %arg0, %arg2, %c2_i32 : i32, i32, i32
  }
  func.func @transform_3(%arg0: i32, %arg1: i32, %arg2: i32) -> (i32, i32) {
    %c0_i32 = arith.constant 0 : i32
    %c0_i32_0 = arith.constant 0 : i32
    return %arg1, %c0_i32 : i32, i32
  }
  func.func @transform_4(%arg0: i32, %arg1: i32, %arg2: i32) -> (i32, i32) {
    %c0_i32 = arith.constant 0 : i32
    %c0_i32_0 = arith.constant 0 : i32
    return %arg1, %c0_i32 : i32, i32
  }
  func.func @transform_5(%arg0: i32, %arg1: i32, %arg2: i32) -> (i32, i32) {
    %c0_i32 = arith.constant 0 : i32
    %c0_i32_0 = arith.constant 0 : i32
    return %arg2, %c0_i32 : i32, i32
  }
  func.func @transform_6(%arg0: i32, %arg1: i32, %arg2: i32) -> (i32, i32) {
    %c0_i32 = arith.constant 0 : i32
    %c0_i32_0 = arith.constant 0 : i32
    return %arg2, %c0_i32 : i32, i32
  }
  func.func @transform_7(%arg0: i32, %arg1: i32, %arg2: i32) -> (i32, i32, i32) {
    %c0_i32 = arith.constant 0 : i32
    %c0_i32_0 = arith.constant 0 : i32
    return %arg0, %arg1, %c0_i32 : i32, i32, i32
  }
}

module attributes {stable_mosaic.version = 11 : i64} {
  func.func @_matmul_kernel(%arg0: i32, %arg1: i32, %arg2: i32, %arg3: memref<32x128xbf16, #tpu.memory_space<vmem>>, %arg4: memref<128x384xbf16, #tpu.memory_space<vmem>>, %arg5: memref<32x384xbf16, #tpu.memory_space<vmem>>, %arg6: memref<32x384xf32, #tpu.memory_space<vmem>>) attributes {dimension_semantics = [#tpu.dimension_semantics<parallel>, #tpu.dimension_semantics<parallel>, #tpu.dimension_semantics<arbitrary>], iteration_bounds = array<i64: 1, 1, 1>, scalar_prefetch = 0 : i64, scratch_operands = 1 : i64, tpu.core_type = #tpu.core_type<tc>, window_params = [{transform_indices = @transform_0, window_bounds = array<i64: 32, 128>}, {transform_indices = @transform_1, window_bounds = array<i64: 128, 384>}, {transform_indices = @transform_2, window_bounds = array<i64: 32, 384>}]} {
    %c0_i32 = arith.constant 0 : i32
    %0 = arith.cmpi eq, %arg2, %c0_i32 : i32
    %1 = arith.extui %0 : i1 to i32
    %c0_i32_0 = arith.constant 0 : i32
    %2 = arith.cmpi ne, %1, %c0_i32_0 : i32
    scf.if %2 {
      %cst_10 = arith.constant 0.000000e+00 : f32
      %12 = vector.broadcast %cst_10 : f32 to vector<32x384xf32>
      %c0_11 = arith.constant 0 : index
      %c0_12 = arith.constant 0 : index
      %13 = vector.load %arg6[%c0_11, %c0_12] : memref<32x384xf32, #tpu.memory_space<vmem>>, vector<32x384xf32>
      tpu.vector_store %arg6[%c0_11, %c0_12], %12 {strides = array<i32>} : memref<32x384xf32, #tpu.memory_space<vmem>>, vector<32x384xf32>,
    } else {
    }
    %c0 = arith.constant 0 : index
    %c0_1 = arith.constant 0 : index
    %3 = vector.load %arg6[%c0, %c0_1] : memref<32x384xf32, #tpu.memory_space<vmem>>, vector<32x384xf32>
    %c0_2 = arith.constant 0 : index
    %c0_3 = arith.constant 0 : index
    %4 = vector.load %arg3[%c0_2, %c0_3] : memref<32x128xbf16, #tpu.memory_space<vmem>>, vector<32x128xbf16>
    %c0_4 = arith.constant 0 : index
    %c0_5 = arith.constant 0 : index
    %5 = vector.load %arg4[%c0_4, %c0_5] : memref<128x384xbf16, #tpu.memory_space<vmem>>, vector<128x384xbf16>
    %cst = arith.constant dense<0.000000e+00> : vector<32x384xf32>
    %6 = tpu.matmul %4, %5, %cst {dimension_numbers = #tpu.dot_dimension_numbers<[1], [0], [0], [1], [0, 0, 1, 1], [], []>} : vector<32x128xbf16>, vector<128x384xbf16>, vector<32x384xf32> -> vector<32x384xf32>
    %7 = arith.addf %3, %6 : vector<32x384xf32>
    %c0_6 = arith.constant 0 : index
    %c0_7 = arith.constant 0 : index
    %8 = vector.load %arg6[%c0_6, %c0_7] : memref<32x384xf32, #tpu.memory_space<vmem>>, vector<32x384xf32>
    tpu.vector_store %arg6[%c0_6, %c0_7], %7 {strides = array<i32>} : memref<32x384xf32, #tpu.memory_space<vmem>>, vector<32x384xf32>,
    %c0_i32_8 = arith.constant 0 : i32
    %9 = arith.cmpi eq, %arg2, %c0_i32_8 : i32
    %10 = arith.extui %9 : i1 to i32
    %c0_i32_9 = arith.constant 0 : i32
    %11 = arith.cmpi ne, %10, %c0_i32_9 : i32
    scf.if %11 {
      %c0_10 = arith.constant 0 : index
      %c0_11 = arith.constant 0 : index
      %12 = vector.load %arg6[%c0_10, %c0_11] : memref<32x384xf32, #tpu.memory_space<vmem>>, vector<32x384xf32>
      %13 = arith.truncf %12 : vector<32x384xf32> to vector<32x384xbf16>
      %c0_12 = arith.constant 0 : index
      %c0_13 = arith.constant 0 : index
      %14 = vector.load %arg5[%c0_12, %c0_13] : memref<32x384xbf16, #tpu.memory_space<vmem>>, vector<32x384xbf16>
      tpu.vector_store %arg5[%c0_12, %c0_13], %13 {strides = array<i32>} : memref<32x384xbf16, #tpu.memory_space<vmem>>, vector<32x384xbf16>,
    } else {
    }
    return
  }
  func.func @transform_0(%arg0: i32, %arg1: i32, %arg2: i32) -> (i32, i32) {
    %c0_i32 = arith.constant 0 : i32
    return %arg0, %arg2 : i32, i32
  }
  func.func @transform_1(%arg0: i32, %arg1: i32, %arg2: i32) -> (i32, i32) {
    %c0_i32 = arith.constant 0 : i32
    return %arg2, %arg1 : i32, i32
  }
  func.func @transform_2(%arg0: i32, %arg1: i32, %arg2: i32) -> (i32, i32) {
    %c0_i32 = arith.constant 0 : i32
    return %arg0, %arg1 : i32, i32
  }
}

module attributes {stable_mosaic.version = 11 : i64} {
  func.func @_rmsnorm_kernel(%arg0: i32, %arg1: memref<32x128xf32, #tpu.memory_space<vmem>>, %arg2: memref<1x128xf32, #tpu.memory_space<vmem>>, %arg3: memref<32x128xbf16, #tpu.memory_space<vmem>>) attributes {dimension_semantics = [#tpu.dimension_semantics<parallel>], iteration_bounds = array<i64: 1>, scalar_prefetch = 0 : i64, scratch_operands = 0 : i64, tpu.core_type = #tpu.core_type<tc>, window_params = [{transform_indices = @transform_0, window_bounds = array<i64: 32, 128>}, {pipeline_mode = #tpu.pipeline_mode<synchronous>, transform_indices = @transform_1, window_bounds = array<i64: 1, 128>}, {transform_indices = @transform_2, window_bounds = array<i64: 32, 128>}]} {
    %c0 = arith.constant 0 : index
    %c0_0 = arith.constant 0 : index
    %0 = vector.load %arg1[%c0, %c0_0] : memref<32x128xf32, #tpu.memory_space<vmem>>, vector<32x128xf32>
    %1 = arith.mulf %0, %0 : vector<32x128xf32>
    %cst = arith.constant dense<0.000000e+00> : vector<32xf32>
    %2 = vector.multi_reduction <add>, %1, %cst [1] : vector<32x128xf32> to vector<32xf32>
    %3 = vector.shape_cast %2 : vector<32xf32> to vector<32x1xf32>
    %cst_1 = arith.constant 1.280000e+02 : f32
    %4 = vector.broadcast %cst_1 : f32 to vector<32x1xf32>
    %5 = arith.divf %3, %4 : vector<32x1xf32>
    %cst_2 = arith.constant 9.99999997E-7 : f32
    %6 = vector.broadcast %cst_2 : f32 to vector<32x1xf32>
    %7 = arith.addf %5, %6 : vector<32x1xf32>
    %8 = math.rsqrt %7 : vector<32x1xf32>
    %9 = vector.broadcast %8 : vector<32x1xf32> to vector<32x128xf32>
    %10 = arith.mulf %0, %9 : vector<32x128xf32>
    %c0_3 = arith.constant 0 : index
    %c0_4 = arith.constant 0 : index
    %11 = vector.load %arg2[%c0_3, %c0_4] : memref<1x128xf32, #tpu.memory_space<vmem>>, vector<1x128xf32>
    %12 = vector.broadcast %11 : vector<1x128xf32> to vector<32x128xf32>
    %13 = arith.mulf %10, %12 : vector<32x128xf32>
    %14 = arith.truncf %13 : vector<32x128xf32> to vector<32x128xbf16>
    %c0_5 = arith.constant 0 : index
    %c0_6 = arith.constant 0 : index
    %15 = vector.load %arg3[%c0_5, %c0_6] : memref<32x128xbf16, #tpu.memory_space<vmem>>, vector<32x128xbf16>
    tpu.vector_store %arg3[%c0_5, %c0_6], %14 {strides = array<i32>} : memref<32x128xbf16, #tpu.memory_space<vmem>>, vector<32x128xbf16>,
    return
  }
  func.func @transform_0(%arg0: i32) -> (i32, i32) {
    %c0_i32 = arith.constant 0 : i32
    %c0_i32_0 = arith.constant 0 : i32
    return %arg0, %c0_i32 : i32, i32
  }
  func.func @transform_1(%arg0: i32) -> (i32, i32) {
    %c0_i32 = arith.constant 0 : i32
    %c0_i32_0 = arith.constant 0 : i32
    %c0_i32_1 = arith.constant 0 : i32
    return %c0_i32, %c0_i32_0 : i32, i32
  }
  func.func @transform_2(%arg0: i32) -> (i32, i32) {
    %c0_i32 = arith.constant 0 : i32
    %c0_i32_0 = arith.constant 0 : i32
    return %arg0, %c0_i32 : i32, i32
  }
}

module attributes {stable_mosaic.version = 11 : i64} {
  func.func @_matmul_res_kernel(%arg0: i32, %arg1: i32, %arg2: i32, %arg3: memref<32x128xbf16, #tpu.memory_space<vmem>>, %arg4: memref<128x128xbf16, #tpu.memory_space<vmem>>, %arg5: memref<32x128xf32, #tpu.memory_space<vmem>>, %arg6: memref<32x128xf32, #tpu.memory_space<vmem>>, %arg7: memref<32x128xf32, #tpu.memory_space<vmem>>) attributes {dimension_semantics = [#tpu.dimension_semantics<parallel>, #tpu.dimension_semantics<parallel>, #tpu.dimension_semantics<arbitrary>], iteration_bounds = array<i64: 1, 1, 1>, scalar_prefetch = 0 : i64, scratch_operands = 1 : i64, tpu.core_type = #tpu.core_type<tc>, window_params = [{transform_indices = @transform_0, window_bounds = array<i64: 32, 128>}, {transform_indices = @transform_1, window_bounds = array<i64: 128, 128>}, {transform_indices = @transform_2, window_bounds = array<i64: 32, 128>}, {transform_indices = @transform_3, window_bounds = array<i64: 32, 128>}]} {
    %c0_i32 = arith.constant 0 : i32
    %0 = arith.cmpi eq, %arg2, %c0_i32 : i32
    %1 = arith.extui %0 : i1 to i32
    %c0_i32_0 = arith.constant 0 : i32
    %2 = arith.cmpi ne, %1, %c0_i32_0 : i32
    scf.if %2 {
      %cst_10 = arith.constant 0.000000e+00 : f32
      %12 = vector.broadcast %cst_10 : f32 to vector<32x128xf32>
      %c0_11 = arith.constant 0 : index
      %c0_12 = arith.constant 0 : index
      %13 = vector.load %arg7[%c0_11, %c0_12] : memref<32x128xf32, #tpu.memory_space<vmem>>, vector<32x128xf32>
      tpu.vector_store %arg7[%c0_11, %c0_12], %12 {strides = array<i32>} : memref<32x128xf32, #tpu.memory_space<vmem>>, vector<32x128xf32>,
    } else {
    }
    %c0 = arith.constant 0 : index
    %c0_1 = arith.constant 0 : index
    %3 = vector.load %arg7[%c0, %c0_1] : memref<32x128xf32, #tpu.memory_space<vmem>>, vector<32x128xf32>
    %c0_2 = arith.constant 0 : index
    %c0_3 = arith.constant 0 : index
    %4 = vector.load %arg3[%c0_2, %c0_3] : memref<32x128xbf16, #tpu.memory_space<vmem>>, vector<32x128xbf16>
    %c0_4 = arith.constant 0 : index
    %c0_5 = arith.constant 0 : index
    %5 = vector.load %arg4[%c0_4, %c0_5] : memref<128x128xbf16, #tpu.memory_space<vmem>>, vector<128x128xbf16>
    %cst = arith.constant dense<0.000000e+00> : vector<32x128xf32>
    %6 = tpu.matmul %4, %5, %cst {dimension_numbers = #tpu.dot_dimension_numbers<[1], [0], [0], [1], [0, 0, 1, 1], [], []>} : vector<32x128xbf16>, vector<128x128xbf16>, vector<32x128xf32> -> vector<32x128xf32>
    %7 = arith.addf %3, %6 : vector<32x128xf32>
    %c0_6 = arith.constant 0 : index
    %c0_7 = arith.constant 0 : index
    %8 = vector.load %arg7[%c0_6, %c0_7] : memref<32x128xf32, #tpu.memory_space<vmem>>, vector<32x128xf32>
    tpu.vector_store %arg7[%c0_6, %c0_7], %7 {strides = array<i32>} : memref<32x128xf32, #tpu.memory_space<vmem>>, vector<32x128xf32>,
    %c0_i32_8 = arith.constant 0 : i32
    %9 = arith.cmpi eq, %arg2, %c0_i32_8 : i32
    %10 = arith.extui %9 : i1 to i32
    %c0_i32_9 = arith.constant 0 : i32
    %11 = arith.cmpi ne, %10, %c0_i32_9 : i32
    scf.if %11 {
      %c0_10 = arith.constant 0 : index
      %c0_11 = arith.constant 0 : index
      %12 = vector.load %arg7[%c0_10, %c0_11] : memref<32x128xf32, #tpu.memory_space<vmem>>, vector<32x128xf32>
      %c0_12 = arith.constant 0 : index
      %c0_13 = arith.constant 0 : index
      %13 = vector.load %arg5[%c0_12, %c0_13] : memref<32x128xf32, #tpu.memory_space<vmem>>, vector<32x128xf32>
      %14 = arith.addf %12, %13 : vector<32x128xf32>
      %c0_14 = arith.constant 0 : index
      %c0_15 = arith.constant 0 : index
      %15 = vector.load %arg6[%c0_14, %c0_15] : memref<32x128xf32, #tpu.memory_space<vmem>>, vector<32x128xf32>
      tpu.vector_store %arg6[%c0_14, %c0_15], %14 {strides = array<i32>} : memref<32x128xf32, #tpu.memory_space<vmem>>, vector<32x128xf32>,
    } else {
    }
    return
  }
  func.func @transform_0(%arg0: i32, %arg1: i32, %arg2: i32) -> (i32, i32) {
    %c0_i32 = arith.constant 0 : i32
    return %arg0, %arg2 : i32, i32
  }
  func.func @transform_1(%arg0: i32, %arg1: i32, %arg2: i32) -> (i32, i32) {
    %c0_i32 = arith.constant 0 : i32
    return %arg2, %arg1 : i32, i32
  }
  func.func @transform_2(%arg0: i32, %arg1: i32, %arg2: i32) -> (i32, i32) {
    %c0_i32 = arith.constant 0 : i32
    return %arg0, %arg1 : i32, i32
  }
  func.func @transform_3(%arg0: i32, %arg1: i32, %arg2: i32) -> (i32, i32) {
    %c0_i32 = arith.constant 0 : i32
    return %arg0, %arg1 : i32, i32
  }
}

module attributes {stable_mosaic.version = 11 : i64} {
  func.func @_gate_up_kernel(%arg0: i32, %arg1: i32, %arg2: i32, %arg3: memref<32x128xbf16, #tpu.memory_space<vmem>>, %arg4: memref<128x256xbf16, #tpu.memory_space<vmem>>, %arg5: memref<128x256xbf16, #tpu.memory_space<vmem>>, %arg6: memref<32x256xbf16, #tpu.memory_space<vmem>>, %arg7: memref<32x256xf32, #tpu.memory_space<vmem>>, %arg8: memref<32x256xf32, #tpu.memory_space<vmem>>) attributes {dimension_semantics = [#tpu.dimension_semantics<parallel>, #tpu.dimension_semantics<parallel>, #tpu.dimension_semantics<arbitrary>], iteration_bounds = array<i64: 1, 1, 1>, scalar_prefetch = 0 : i64, scratch_operands = 2 : i64, tpu.core_type = #tpu.core_type<tc>, window_params = [{transform_indices = @transform_0, window_bounds = array<i64: 32, 128>}, {transform_indices = @transform_1, window_bounds = array<i64: 128, 256>}, {transform_indices = @transform_2, window_bounds = array<i64: 128, 256>}, {transform_indices = @transform_3, window_bounds = array<i64: 32, 256>}]} {
    %c0_i32 = arith.constant 0 : i32
    %0 = arith.cmpi eq, %arg2, %c0_i32 : i32
    %1 = arith.extui %0 : i1 to i32
    %c0_i32_0 = arith.constant 0 : i32
    %2 = arith.cmpi ne, %1, %c0_i32_0 : i32
    scf.if %2 {
      %cst_17 = arith.constant 0.000000e+00 : f32
      %17 = vector.broadcast %cst_17 : f32 to vector<32x256xf32>
      %c0_18 = arith.constant 0 : index
      %c0_19 = arith.constant 0 : index
      %18 = vector.load %arg7[%c0_18, %c0_19] : memref<32x256xf32, #tpu.memory_space<vmem>>, vector<32x256xf32>
      tpu.vector_store %arg7[%c0_18, %c0_19], %17 {strides = array<i32>} : memref<32x256xf32, #tpu.memory_space<vmem>>, vector<32x256xf32>,
      %cst_20 = arith.constant 0.000000e+00 : f32
      %19 = vector.broadcast %cst_20 : f32 to vector<32x256xf32>
      %c0_21 = arith.constant 0 : index
      %c0_22 = arith.constant 0 : index
      %20 = vector.load %arg8[%c0_21, %c0_22] : memref<32x256xf32, #tpu.memory_space<vmem>>, vector<32x256xf32>
      tpu.vector_store %arg8[%c0_21, %c0_22], %19 {strides = array<i32>} : memref<32x256xf32, #tpu.memory_space<vmem>>, vector<32x256xf32>,
    } else {
    }
    %c0 = arith.constant 0 : index
    %c0_1 = arith.constant 0 : index
    %3 = vector.load %arg3[%c0, %c0_1] : memref<32x128xbf16, #tpu.memory_space<vmem>>, vector<32x128xbf16>
    %c0_2 = arith.constant 0 : index
    %c0_3 = arith.constant 0 : index
    %4 = vector.load %arg7[%c0_2, %c0_3] : memref<32x256xf32, #tpu.memory_space<vmem>>, vector<32x256xf32>
    %c0_4 = arith.constant 0 : index
    %c0_5 = arith.constant 0 : index
    %5 = vector.load %arg4[%c0_4, %c0_5] : memref<128x256xbf16, #tpu.memory_space<vmem>>, vector<128x256xbf16>
    %cst = arith.constant dense<0.000000e+00> : vector<32x256xf32>
    %6 = tpu.matmul %3, %5, %cst {dimension_numbers = #tpu.dot_dimension_numbers<[1], [0], [0], [1], [0, 0, 1, 1], [], []>} : vector<32x128xbf16>, vector<128x256xbf16>, vector<32x256xf32> -> vector<32x256xf32>
    %7 = arith.addf %4, %6 : vector<32x256xf32>
    %c0_6 = arith.constant 0 : index
    %c0_7 = arith.constant 0 : index
    %8 = vector.load %arg7[%c0_6, %c0_7] : memref<32x256xf32, #tpu.memory_space<vmem>>, vector<32x256xf32>
    tpu.vector_store %arg7[%c0_6, %c0_7], %7 {strides = array<i32>} : memref<32x256xf32, #tpu.memory_space<vmem>>, vector<32x256xf32>,
    %c0_8 = arith.constant 0 : index
    %c0_9 = arith.constant 0 : index
    %9 = vector.load %arg8[%c0_8, %c0_9] : memref<32x256xf32, #tpu.memory_space<vmem>>, vector<32x256xf32>
    %c0_10 = arith.constant 0 : index
    %c0_11 = arith.constant 0 : index
    %10 = vector.load %arg5[%c0_10, %c0_11] : memref<128x256xbf16, #tpu.memory_space<vmem>>, vector<128x256xbf16>
    %cst_12 = arith.constant dense<0.000000e+00> : vector<32x256xf32>
    %11 = tpu.matmul %3, %10, %cst_12 {dimension_numbers = #tpu.dot_dimension_numbers<[1], [0], [0], [1], [0, 0, 1, 1], [], []>} : vector<32x128xbf16>, vector<128x256xbf16>, vector<32x256xf32> -> vector<32x256xf32>
    %12 = arith.addf %9, %11 : vector<32x256xf32>
    %c0_13 = arith.constant 0 : index
    %c0_14 = arith.constant 0 : index
    %13 = vector.load %arg8[%c0_13, %c0_14] : memref<32x256xf32, #tpu.memory_space<vmem>>, vector<32x256xf32>
    tpu.vector_store %arg8[%c0_13, %c0_14], %12 {strides = array<i32>} : memref<32x256xf32, #tpu.memory_space<vmem>>, vector<32x256xf32>,
    %c0_i32_15 = arith.constant 0 : i32
    %14 = arith.cmpi eq, %arg2, %c0_i32_15 : i32
    %15 = arith.extui %14 : i1 to i32
    %c0_i32_16 = arith.constant 0 : i32
    %16 = arith.cmpi ne, %15, %c0_i32_16 : i32
    scf.if %16 {
      %c0_17 = arith.constant 0 : index
      %c0_18 = arith.constant 0 : index
      %17 = vector.load %arg7[%c0_17, %c0_18] : memref<32x256xf32, #tpu.memory_space<vmem>>, vector<32x256xf32>
      %18 = arith.negf %17 : vector<32x256xf32>
      %19 = math.exp %18 : vector<32x256xf32>
      %cst_19 = arith.constant 1.000000e+00 : f32
      %20 = vector.broadcast %cst_19 : f32 to vector<32x256xf32>
      %21 = arith.addf %20, %19 : vector<32x256xf32>
      %22 = arith.divf %20, %21 : vector<32x256xf32>
      %23 = arith.mulf %17, %22 : vector<32x256xf32>
      %c0_20 = arith.constant 0 : index
      %c0_21 = arith.constant 0 : index
      %24 = vector.load %arg8[%c0_20, %c0_21] : memref<32x256xf32, #tpu.memory_space<vmem>>, vector<32x256xf32>
      %25 = arith.mulf %23, %24 : vector<32x256xf32>
      %26 = arith.truncf %25 : vector<32x256xf32> to vector<32x256xbf16>
      %c0_22 = arith.constant 0 : index
      %c0_23 = arith.constant 0 : index
      %27 = vector.load %arg6[%c0_22, %c0_23] : memref<32x256xbf16, #tpu.memory_space<vmem>>, vector<32x256xbf16>
      tpu.vector_store %arg6[%c0_22, %c0_23], %26 {strides = array<i32>} : memref<32x256xbf16, #tpu.memory_space<vmem>>, vector<32x256xbf16>,
    } else {
    }
    return
  }
  func.func @transform_0(%arg0: i32, %arg1: i32, %arg2: i32) -> (i32, i32) {
    %c0_i32 = arith.constant 0 : i32
    return %arg0, %arg2 : i32, i32
  }
  func.func @transform_1(%arg0: i32, %arg1: i32, %arg2: i32) -> (i32, i32) {
    %c0_i32 = arith.constant 0 : i32
    return %arg2, %arg1 : i32, i32
  }
  func.func @transform_2(%arg0: i32, %arg1: i32, %arg2: i32) -> (i32, i32) {
    %c0_i32 = arith.constant 0 : i32
    return %arg2, %arg1 : i32, i32
  }
  func.func @transform_3(%arg0: i32, %arg1: i32, %arg2: i32) -> (i32, i32) {
    %c0_i32 = arith.constant 0 : i32
    return %arg0, %arg1 : i32, i32
  }
}

module attributes {stable_mosaic.version = 11 : i64} {
  func.func @_matmul_res_kernel(%arg0: i32, %arg1: i32, %arg2: i32, %arg3: memref<32x256xbf16, #tpu.memory_space<vmem>>, %arg4: memref<256x128xbf16, #tpu.memory_space<vmem>>, %arg5: memref<32x128xf32, #tpu.memory_space<vmem>>, %arg6: memref<32x128xf32, #tpu.memory_space<vmem>>, %arg7: memref<32x128xf32, #tpu.memory_space<vmem>>) attributes {dimension_semantics = [#tpu.dimension_semantics<parallel>, #tpu.dimension_semantics<parallel>, #tpu.dimension_semantics<arbitrary>], iteration_bounds = array<i64: 1, 1, 1>, scalar_prefetch = 0 : i64, scratch_operands = 1 : i64, tpu.core_type = #tpu.core_type<tc>, window_params = [{transform_indices = @transform_0, window_bounds = array<i64: 32, 256>}, {transform_indices = @transform_1, window_bounds = array<i64: 256, 128>}, {transform_indices = @transform_2, window_bounds = array<i64: 32, 128>}, {transform_indices = @transform_3, window_bounds = array<i64: 32, 128>}]} {
    %c0_i32 = arith.constant 0 : i32
    %0 = arith.cmpi eq, %arg2, %c0_i32 : i32
    %1 = arith.extui %0 : i1 to i32
    %c0_i32_0 = arith.constant 0 : i32
    %2 = arith.cmpi ne, %1, %c0_i32_0 : i32
    scf.if %2 {
      %cst_10 = arith.constant 0.000000e+00 : f32
      %12 = vector.broadcast %cst_10 : f32 to vector<32x128xf32>
      %c0_11 = arith.constant 0 : index
      %c0_12 = arith.constant 0 : index
      %13 = vector.load %arg7[%c0_11, %c0_12] : memref<32x128xf32, #tpu.memory_space<vmem>>, vector<32x128xf32>
      tpu.vector_store %arg7[%c0_11, %c0_12], %12 {strides = array<i32>} : memref<32x128xf32, #tpu.memory_space<vmem>>, vector<32x128xf32>,
    } else {
    }
    %c0 = arith.constant 0 : index
    %c0_1 = arith.constant 0 : index
    %3 = vector.load %arg7[%c0, %c0_1] : memref<32x128xf32, #tpu.memory_space<vmem>>, vector<32x128xf32>
    %c0_2 = arith.constant 0 : index
    %c0_3 = arith.constant 0 : index
    %4 = vector.load %arg3[%c0_2, %c0_3] : memref<32x256xbf16, #tpu.memory_space<vmem>>, vector<32x256xbf16>
    %c0_4 = arith.constant 0 : index
    %c0_5 = arith.constant 0 : index
    %5 = vector.load %arg4[%c0_4, %c0_5] : memref<256x128xbf16, #tpu.memory_space<vmem>>, vector<256x128xbf16>
    %cst = arith.constant dense<0.000000e+00> : vector<32x128xf32>
    %6 = tpu.matmul %4, %5, %cst {dimension_numbers = #tpu.dot_dimension_numbers<[1], [0], [0], [1], [0, 0, 1, 1], [], []>} : vector<32x256xbf16>, vector<256x128xbf16>, vector<32x128xf32> -> vector<32x128xf32>
    %7 = arith.addf %3, %6 : vector<32x128xf32>
    %c0_6 = arith.constant 0 : index
    %c0_7 = arith.constant 0 : index
    %8 = vector.load %arg7[%c0_6, %c0_7] : memref<32x128xf32, #tpu.memory_space<vmem>>, vector<32x128xf32>
    tpu.vector_store %arg7[%c0_6, %c0_7], %7 {strides = array<i32>} : memref<32x128xf32, #tpu.memory_space<vmem>>, vector<32x128xf32>,
    %c0_i32_8 = arith.constant 0 : i32
    %9 = arith.cmpi eq, %arg2, %c0_i32_8 : i32
    %10 = arith.extui %9 : i1 to i32
    %c0_i32_9 = arith.constant 0 : i32
    %11 = arith.cmpi ne, %10, %c0_i32_9 : i32
    scf.if %11 {
      %c0_10 = arith.constant 0 : index
      %c0_11 = arith.constant 0 : index
      %12 = vector.load %arg7[%c0_10, %c0_11] : memref<32x128xf32, #tpu.memory_space<vmem>>, vector<32x128xf32>
      %c0_12 = arith.constant 0 : index
      %c0_13 = arith.constant 0 : index
      %13 = vector.load %arg5[%c0_12, %c0_13] : memref<32x128xf32, #tpu.memory_space<vmem>>, vector<32x128xf32>
      %14 = arith.addf %12, %13 : vector<32x128xf32>
      %c0_14 = arith.constant 0 : index
      %c0_15 = arith.constant 0 : index
      %15 = vector.load %arg6[%c0_14, %c0_15] : memref<32x128xf32, #tpu.memory_space<vmem>>, vector<32x128xf32>
      tpu.vector_store %arg6[%c0_14, %c0_15], %14 {strides = array<i32>} : memref<32x128xf32, #tpu.memory_space<vmem>>, vector<32x128xf32>,
    } else {
    }
    return
  }
  func.func @transform_0(%arg0: i32, %arg1: i32, %arg2: i32) -> (i32, i32) {
    %c0_i32 = arith.constant 0 : i32
    return %arg0, %arg2 : i32, i32
  }
  func.func @transform_1(%arg0: i32, %arg1: i32, %arg2: i32) -> (i32, i32) {
    %c0_i32 = arith.constant 0 : i32
    return %arg2, %arg1 : i32, i32
  }
  func.func @transform_2(%arg0: i32, %arg1: i32, %arg2: i32) -> (i32, i32) {
    %c0_i32 = arith.constant 0 : i32
    return %arg0, %arg1 : i32, i32
  }
  func.func @transform_3(%arg0: i32, %arg1: i32, %arg2: i32) -> (i32, i32) {
    %c0_i32 = arith.constant 0 : i32
    return %arg0, %arg1 : i32, i32
  }
}

module attributes {stable_mosaic.version = 11 : i64} {
  func.func @_gate_up_kernel(%arg0: i32, %arg1: i32, %arg2: i32, %arg3: memref<32x128xbf16, #tpu.memory_space<vmem>>, %arg4: memref<128x256xbf16, #tpu.memory_space<vmem>>, %arg5: memref<128x256xbf16, #tpu.memory_space<vmem>>, %arg6: memref<32x256xbf16, #tpu.memory_space<vmem>>, %arg7: memref<32x256xf32, #tpu.memory_space<vmem>>, %arg8: memref<32x256xf32, #tpu.memory_space<vmem>>) attributes {dimension_semantics = [#tpu.dimension_semantics<parallel>, #tpu.dimension_semantics<parallel>, #tpu.dimension_semantics<arbitrary>], iteration_bounds = array<i64: 1, 1, 1>, scalar_prefetch = 0 : i64, scratch_operands = 2 : i64, tpu.core_type = #tpu.core_type<tc>, window_params = [{transform_indices = @transform_0, window_bounds = array<i64: 32, 128>}, {transform_indices = @transform_1, window_bounds = array<i64: 128, 256>}, {transform_indices = @transform_2, window_bounds = array<i64: 128, 256>}, {transform_indices = @transform_3, window_bounds = array<i64: 32, 256>}]} {
    %c0_i32 = arith.constant 0 : i32
    %0 = arith.cmpi eq, %arg2, %c0_i32 : i32
    %1 = arith.extui %0 : i1 to i32
    %c0_i32_0 = arith.constant 0 : i32
    %2 = arith.cmpi ne, %1, %c0_i32_0 : i32
    scf.if %2 {
      %cst_17 = arith.constant 0.000000e+00 : f32
      %17 = vector.broadcast %cst_17 : f32 to vector<32x256xf32>
      %c0_18 = arith.constant 0 : index
      %c0_19 = arith.constant 0 : index
      %18 = vector.load %arg7[%c0_18, %c0_19] : memref<32x256xf32, #tpu.memory_space<vmem>>, vector<32x256xf32>
      tpu.vector_store %arg7[%c0_18, %c0_19], %17 {strides = array<i32>} : memref<32x256xf32, #tpu.memory_space<vmem>>, vector<32x256xf32>,
      %cst_20 = arith.constant 0.000000e+00 : f32
      %19 = vector.broadcast %cst_20 : f32 to vector<32x256xf32>
      %c0_21 = arith.constant 0 : index
      %c0_22 = arith.constant 0 : index
      %20 = vector.load %arg8[%c0_21, %c0_22] : memref<32x256xf32, #tpu.memory_space<vmem>>, vector<32x256xf32>
      tpu.vector_store %arg8[%c0_21, %c0_22], %19 {strides = array<i32>} : memref<32x256xf32, #tpu.memory_space<vmem>>, vector<32x256xf32>,
    } else {
    }
    %c0 = arith.constant 0 : index
    %c0_1 = arith.constant 0 : index
    %3 = vector.load %arg3[%c0, %c0_1] : memref<32x128xbf16, #tpu.memory_space<vmem>>, vector<32x128xbf16>
    %c0_2 = arith.constant 0 : index
    %c0_3 = arith.constant 0 : index
    %4 = vector.load %arg7[%c0_2, %c0_3] : memref<32x256xf32, #tpu.memory_space<vmem>>, vector<32x256xf32>
    %c0_4 = arith.constant 0 : index
    %c0_5 = arith.constant 0 : index
    %5 = vector.load %arg4[%c0_4, %c0_5] : memref<128x256xbf16, #tpu.memory_space<vmem>>, vector<128x256xbf16>
    %cst = arith.constant dense<0.000000e+00> : vector<32x256xf32>
    %6 = tpu.matmul %3, %5, %cst {dimension_numbers = #tpu.dot_dimension_numbers<[1], [0], [0], [1], [0, 0, 1, 1], [], []>} : vector<32x128xbf16>, vector<128x256xbf16>, vector<32x256xf32> -> vector<32x256xf32>
    %7 = arith.addf %4, %6 : vector<32x256xf32>
    %c0_6 = arith.constant 0 : index
    %c0_7 = arith.constant 0 : index
    %8 = vector.load %arg7[%c0_6, %c0_7] : memref<32x256xf32, #tpu.memory_space<vmem>>, vector<32x256xf32>
    tpu.vector_store %arg7[%c0_6, %c0_7], %7 {strides = array<i32>} : memref<32x256xf32, #tpu.memory_space<vmem>>, vector<32x256xf32>,
    %c0_8 = arith.constant 0 : index
    %c0_9 = arith.constant 0 : index
    %9 = vector.load %arg8[%c0_8, %c0_9] : memref<32x256xf32, #tpu.memory_space<vmem>>, vector<32x256xf32>
    %c0_10 = arith.constant 0 : index
    %c0_11 = arith.constant 0 : index
    %10 = vector.load %arg5[%c0_10, %c0_11] : memref<128x256xbf16, #tpu.memory_space<vmem>>, vector<128x256xbf16>
    %cst_12 = arith.constant dense<0.000000e+00> : vector<32x256xf32>
    %11 = tpu.matmul %3, %10, %cst_12 {dimension_numbers = #tpu.dot_dimension_numbers<[1], [0], [0], [1], [0, 0, 1, 1], [], []>} : vector<32x128xbf16>, vector<128x256xbf16>, vector<32x256xf32> -> vector<32x256xf32>
    %12 = arith.addf %9, %11 : vector<32x256xf32>
    %c0_13 = arith.constant 0 : index
    %c0_14 = arith.constant 0 : index
    %13 = vector.load %arg8[%c0_13, %c0_14] : memref<32x256xf32, #tpu.memory_space<vmem>>, vector<32x256xf32>
    tpu.vector_store %arg8[%c0_13, %c0_14], %12 {strides = array<i32>} : memref<32x256xf32, #tpu.memory_space<vmem>>, vector<32x256xf32>,
    %c0_i32_15 = arith.constant 0 : i32
    %14 = arith.cmpi eq, %arg2, %c0_i32_15 : i32
    %15 = arith.extui %14 : i1 to i32
    %c0_i32_16 = arith.constant 0 : i32
    %16 = arith.cmpi ne, %15, %c0_i32_16 : i32
    scf.if %16 {
      %c0_17 = arith.constant 0 : index
      %c0_18 = arith.constant 0 : index
      %17 = vector.load %arg7[%c0_17, %c0_18] : memref<32x256xf32, #tpu.memory_space<vmem>>, vector<32x256xf32>
      %18 = arith.negf %17 : vector<32x256xf32>
      %19 = math.exp %18 : vector<32x256xf32>
      %cst_19 = arith.constant 1.000000e+00 : f32
      %20 = vector.broadcast %cst_19 : f32 to vector<32x256xf32>
      %21 = arith.addf %20, %19 : vector<32x256xf32>
      %22 = arith.divf %20, %21 : vector<32x256xf32>
      %23 = arith.mulf %17, %22 : vector<32x256xf32>
      %c0_20 = arith.constant 0 : index
      %c0_21 = arith.constant 0 : index
      %24 = vector.load %arg8[%c0_20, %c0_21] : memref<32x256xf32, #tpu.memory_space<vmem>>, vector<32x256xf32>
      %25 = arith.mulf %23, %24 : vector<32x256xf32>
      %26 = arith.truncf %25 : vector<32x256xf32> to vector<32x256xbf16>
      %c0_22 = arith.constant 0 : index
      %c0_23 = arith.constant 0 : index
      %27 = vector.load %arg6[%c0_22, %c0_23] : memref<32x256xbf16, #tpu.memory_space<vmem>>, vector<32x256xbf16>
      tpu.vector_store %arg6[%c0_22, %c0_23], %26 {strides = array<i32>} : memref<32x256xbf16, #tpu.memory_space<vmem>>, vector<32x256xbf16>,
    } else {
    }
    return
  }
  func.func @transform_0(%arg0: i32, %arg1: i32, %arg2: i32) -> (i32, i32) {
    %c0_i32 = arith.constant 0 : i32
    return %arg0, %arg2 : i32, i32
  }
  func.func @transform_1(%arg0: i32, %arg1: i32, %arg2: i32) -> (i32, i32) {
    %c0_i32 = arith.constant 0 : i32
    return %arg2, %arg1 : i32, i32
  }
  func.func @transform_2(%arg0: i32, %arg1: i32, %arg2: i32) -> (i32, i32) {
    %c0_i32 = arith.constant 0 : i32
    return %arg2, %arg1 : i32, i32
  }
  func.func @transform_3(%arg0: i32, %arg1: i32, %arg2: i32) -> (i32, i32) {
    %c0_i32 = arith.constant 0 : i32
    return %arg0, %arg1 : i32, i32
  }
}

module attributes {stable_mosaic.version = 11 : i64} {
  func.func @_matmul_kernel(%arg0: i32, %arg1: i32, %arg2: i32, %arg3: memref<32x128xbf16, #tpu.memory_space<vmem>>, %arg4: memref<128x256xbf16, #tpu.memory_space<vmem>>, %arg5: memref<32x256xf32, #tpu.memory_space<vmem>>, %arg6: memref<32x256xf32, #tpu.memory_space<vmem>>) attributes {dimension_semantics = [#tpu.dimension_semantics<parallel>, #tpu.dimension_semantics<parallel>, #tpu.dimension_semantics<arbitrary>], iteration_bounds = array<i64: 1, 1, 1>, scalar_prefetch = 0 : i64, scratch_operands = 1 : i64, tpu.core_type = #tpu.core_type<tc>, window_params = [{transform_indices = @transform_0, window_bounds = array<i64: 32, 128>}, {transform_indices = @transform_1, window_bounds = array<i64: 128, 256>}, {transform_indices = @transform_2, window_bounds = array<i64: 32, 256>}]} {
    %c0_i32 = arith.constant 0 : i32
    %0 = arith.cmpi eq, %arg2, %c0_i32 : i32
    %1 = arith.extui %0 : i1 to i32
    %c0_i32_0 = arith.constant 0 : i32
    %2 = arith.cmpi ne, %1, %c0_i32_0 : i32
    scf.if %2 {
      %cst_10 = arith.constant 0.000000e+00 : f32
      %12 = vector.broadcast %cst_10 : f32 to vector<32x256xf32>
      %c0_11 = arith.constant 0 : index
      %c0_12 = arith.constant 0 : index
      %13 = vector.load %arg6[%c0_11, %c0_12] : memref<32x256xf32, #tpu.memory_space<vmem>>, vector<32x256xf32>
      tpu.vector_store %arg6[%c0_11, %c0_12], %12 {strides = array<i32>} : memref<32x256xf32, #tpu.memory_space<vmem>>, vector<32x256xf32>,
    } else {
    }
    %c0 = arith.constant 0 : index
    %c0_1 = arith.constant 0 : index
    %3 = vector.load %arg6[%c0, %c0_1] : memref<32x256xf32, #tpu.memory_space<vmem>>, vector<32x256xf32>
    %c0_2 = arith.constant 0 : index
    %c0_3 = arith.constant 0 : index
    %4 = vector.load %arg3[%c0_2, %c0_3] : memref<32x128xbf16, #tpu.memory_space<vmem>>, vector<32x128xbf16>
    %c0_4 = arith.constant 0 : index
    %c0_5 = arith.constant 0 : index
    %5 = vector.load %arg4[%c0_4, %c0_5] : memref<128x256xbf16, #tpu.memory_space<vmem>>, vector<128x256xbf16>
    %cst = arith.constant dense<0.000000e+00> : vector<32x256xf32>
    %6 = tpu.matmul %4, %5, %cst {dimension_numbers = #tpu.dot_dimension_numbers<[1], [0], [0], [1], [0, 0, 1, 1], [], []>} : vector<32x128xbf16>, vector<128x256xbf16>, vector<32x256xf32> -> vector<32x256xf32>
    %7 = arith.addf %3, %6 : vector<32x256xf32>
    %c0_6 = arith.constant 0 : index
    %c0_7 = arith.constant 0 : index
    %8 = vector.load %arg6[%c0_6, %c0_7] : memref<32x256xf32, #tpu.memory_space<vmem>>, vector<32x256xf32>
    tpu.vector_store %arg6[%c0_6, %c0_7], %7 {strides = array<i32>} : memref<32x256xf32, #tpu.memory_space<vmem>>, vector<32x256xf32>,
    %c0_i32_8 = arith.constant 0 : i32
    %9 = arith.cmpi eq, %arg2, %c0_i32_8 : i32
    %10 = arith.extui %9 : i1 to i32
    %c0_i32_9 = arith.constant 0 : i32
    %11 = arith.cmpi ne, %10, %c0_i32_9 : i32
    scf.if %11 {
      %c0_10 = arith.constant 0 : index
      %c0_11 = arith.constant 0 : index
      %12 = vector.load %arg6[%c0_10, %c0_11] : memref<32x256xf32, #tpu.memory_space<vmem>>, vector<32x256xf32>
      %c0_12 = arith.constant 0 : index
      %c0_13 = arith.constant 0 : index
      %13 = vector.load %arg5[%c0_12, %c0_13] : memref<32x256xf32, #tpu.memory_space<vmem>>, vector<32x256xf32>
      tpu.vector_store %arg5[%c0_12, %c0_13], %12 {strides = array<i32>} : memref<32x256xf32, #tpu.memory_space<vmem>>, vector<32x256xf32>,
    } else {
    }
    return
  }
  func.func @transform_0(%arg0: i32, %arg1: i32, %arg2: i32) -> (i32, i32) {
    %c0_i32 = arith.constant 0 : i32
    return %arg0, %arg2 : i32, i32
  }
  func.func @transform_1(%arg0: i32, %arg1: i32, %arg2: i32) -> (i32, i32) {
    %c0_i32 = arith.constant 0 : i32
    return %arg2, %arg1 : i32, i32
  }
  func.func @transform_2(%arg0: i32, %arg1: i32, %arg2: i32) -> (i32, i32) {
    %c0_i32 = arith.constant 0 : i32
    return %arg0, %arg1 : i32, i32
  }
}

</mosaic_0001>

<bundles_post_ra>
// kernel: deepseek_forward.16
= control target key start
LH: loop header
LB: loop body
LE: loop exit
PB: predicated region body
PF: predicated region fallthrough
CT: control target
= control target key end

     0   :  { %v129_v8 = vmov 128.0   ;;  %s186_s0 = inlined_call_operand.vmem [shape: f32[32,128], index: 0, kind: input, shape index: {}]   ;;  %s187_s1 = inlined_call_operand.vmem [shape: f32[1,128], index: 1, kind: input, shape index: {}]   ;;  %s188_s2 = inlined_call_operand.vmem [shape: bf16[32,128], index: 2, kind: output, shape index: {}]  }
   0x1   :  { %v148_v0 = vld [vmem:[%s186_s0 + $0x10] sm:$0xff]  ;;  %v153_v1 = vld [vmem:[%s186_s0] sm:$0xff]  ;;  %v162_v4 = vld [vmem:[%s186_s0 + $0x18] sm:$0xff]  ;;  %119 = vrcp.f32 %v129_v8 }
   0x2   :  { %v17_v2 = vmul.f32 %v148_v0, %v148_v0  ;;  %v15_v3 = vmul.f32 %v153_v1, %v153_v1  ;;  %v167_v5 = vld [vmem:[%s186_s0 + $0x8] sm:$0xff]  ;;  %v18_v6 = vmul.f32 %v162_v4, %v162_v4  ;;  %v118_v52 = vld [vmem:[%s187_s1] ss:$0 sm:$0xff] }
   0x3   :  { %v16_v7 = vmul.f32 %v167_v5, %v167_v5 }
   0x4   :  { %23 = vadd.xlane.f32.xlu1 %v17_v2  ;;  %19 = vadd.xlane.f32.xlu0 %v15_v3 }
   0x7   :  { %v120_v9 = vpop.eup %119 }
   0x8   :  { %v28_v10 = vmul.f32 128.0, %v120_v9  ;;  %vm32_vm0 = vweird.f32 %v120_v9 }
   0xa   :  { %v29_v11 = vsub.f32 1.0, %v28_v10 }
   0xc   :  { %25 = vadd.xlane.f32.xlu1 %v18_v6  ;;  %21 = vadd.xlane.f32.xlu0 %v16_v7  ;;  %v30_v12 = vmul.f32 %v120_v9, %v29_v11 }
   0xe   :  { %v31_v13 = vadd.f32 %v120_v9, %v30_v12 }
  0x10   :  { %v33_v14 = vsel %vm32_vm0, %v120_v9, %v31_v13 }
  0x77   :  { %v24_v15 = vpop.xlane.xlu1 %23  ;;  %v20_v16 = vpop.xlane.xlu0 %19 }
  0x78   :  { %v36_v17 = vmul.f32 %v33_v14, %v24_v15  ;;  %v34_v18 = vmul.f32 %v33_v14, %v20_v16 }
  0x7a   :  { %v40_v19 = vadd.f32 1e-06, %v36_v17  ;;  %v38_v20 = vadd.f32 1e-06, %v34_v18 }
  0x7c   :  { %121 = vrsqrt.f32 %v40_v19  ;;  %vm68_vm3 = vweird.f32 %v40_v19  ;;  %vm48_vm5 = vweird.f32 %v38_v20 }
  0x7d   :  { %123 = vrsqrt.f32 %v38_v20 }
  0x7f   :  { %v26_v21 = vpop.xlane.xlu1 %25  ;;  %v22_v22 = vpop.xlane.xlu0 %21 }
  0x80   :  { %v37_v23 = vmul.f32 %v33_v14, %v26_v21  ;;  %v35_v24 = vmul.f32 %v33_v14, %v22_v22 }
  0x82   :  { %v122_v25 = vpop.eup %121  ;;  %v41_v26 = vadd.f32 1e-06, %v37_v23  ;;  %v39_v27 = vadd.f32 1e-06, %v35_v24 }
  0x83   :  { %v124_v28 = vpop.eup %123  ;;  %v63_v29 = vmul.f32 %v122_v25, %v40_v19  ;;  %vm69_vm1 = vweird.f32 %v122_v25 }
  0x84   :  { %v43_v30 = vmul.f32 %v124_v28, %v38_v20  ;;  %125 = vrsqrt.f32 %v41_v26  ;;  %vm49_vm2 = vweird.f32 %v124_v28  ;;  %vm70_vm4 = vmor %vm68_vm3, %vm69_vm1  ;;  %vm78_vm9 = vweird.f32 %v41_v26 }
  0x85   :  { %v64_v31 = vmul.f32 %v122_v25, %v63_v29  ;;  %127 = vrsqrt.f32 %v39_v27  ;;  %vm50_vm6 = vmor %vm48_vm5, %vm49_vm2  ;;  %vm58_vm11 = vweird.f32 %v39_v27 }
  0x86   :  { %v44_v32 = vmul.f32 %v124_v28, %v43_v30 }
  0x87   :  { %v65_v33 = vmul.f32 0.5, %v64_v31 }
  0x88   :  { %v45_v34 = vmul.f32 0.5, %v44_v32 }
  0x89   :  { %v66_v35 = vsub.f32 1.5, %v65_v33 }
  0x8a   :  { %v126_v36 = vpop.eup %125  ;;  %v46_v37 = vsub.f32 1.5, %v45_v34 }
  0x8b   :  { %v128_v38 = vpop.eup %127  ;;  %v73_v39 = vmul.f32 %v126_v36, %v41_v26  ;;  %v67_v41 = vmul.f32 %v122_v25, %v66_v35  ;;  %vm79_vm7 = vweird.f32 %v126_v36 }
  0x8c   :  { %v53_v40 = vmul.f32 %v128_v38, %v39_v27  ;;  %v47_v43 = vmul.f32 %v124_v28, %v46_v37  ;;  %vm59_vm8 = vweird.f32 %v128_v38  ;;  %vm80_vm10 = vmor %vm78_vm9, %vm79_vm7 }
  0x8d   :  { %v74_v42 = vmul.f32 %v126_v36, %v73_v39  ;;  %v71_v47 = vsel %vm70_vm4, %v122_v25, %v67_v41  ;;  %vm60_vm12 = vmor %vm58_vm11, %vm59_vm8 }
  0x8e   :  { %v54_v44 = vmul.f32 %v128_v38, %v53_v40  ;;  %v51_v49 = vsel %vm50_vm6, %v124_v28, %v47_v43  ;;  %v84_v53 = vmul.f32 %v71_v47, %v148_v0 }
  0x8f   :  { %v75_v45 = vmul.f32 0.5, %v74_v42  ;;  %v82_v55 = vmul.f32 %v51_v49, %v153_v1 }
  0x90   :  { %v55_v46 = vmul.f32 0.5, %v54_v44  ;;  %v92_v60 = vmul.f32 %v118_v52, %v84_v53 }
  0x91   :  { %v76_v48 = vsub.f32 1.5, %v75_v45  ;;  %v90_v62 = vmul.f32 %v118_v52, %v82_v55 }
  0x92   :  { %v56_v50 = vsub.f32 1.5, %v55_v46 }
  0x93   :  { %v77_v51 = vmul.f32 %v126_v36, %v76_v48 }
  0x94   :  { %v57_v54 = vmul.f32 %v128_v38, %v56_v50 }
  0x95   :  { %v81_v56 = vsel %vm80_vm10, %v126_v36, %v77_v51 }
  0x96   :  { %v85_v57 = vmul.f32 %v81_v56, %v162_v4  ;;  %v61_v58 = vsel %vm60_vm12, %v128_v38, %v57_v54 }
  0x97   :  { %v83_v59 = vmul.f32 %v61_v58, %v167_v5 }
  0x98   :  { %v93_v61 = vmul.f32 %v118_v52, %v85_v57 }
  0x99   :  { %v91_v63 = vmul.f32 %v118_v52, %v83_v59 }
  0x9a   :  { %v114_v2 = vpack.c.bf16 %v93_v61, %v92_v60 }
  0x9b   :  { %v109_v3 = vpack.c.bf16 %v91_v63, %v90_v62 }
  0x9c   :  { %116 = vst [vmem:[%s188_s2 + $0x8] sm:$0xff] %v114_v2  }
  0x9d   :  { %110 = vst [vmem:[%s188_s2] sm:$0xff] %v109_v3  }

// kernel: deepseek_forward.19
= control target key start
LH: loop header
LB: loop body
LE: loop exit
PB: predicated region body
PF: predicated region fallthrough
CT: control target
= control target key end

     0   :  { %s288_s1 = inlined_call_operand.vmem [shape: bf16[128,128], index: 1, kind: input, shape index: {}]   ;;  %s289_s0 = inlined_call_operand.vmem [shape: bf16[32,128], index: 0, kind: input, shape index: {}]   ;;  %s290_s2 = inlined_call_operand.vmem [shape: f32[32,128], index: 2, kind: input, shape index: {}]   ;;  %s291_s3 = inlined_call_operand.vmem [shape: f32[32,128], index: 3, kind: output, shape index: {}]  }
   0x1   :  { %v205_v0 = vld [vmem:[%s288_s1 + $0x38] sm:$0xff]  ;;  %v204_v1 = vld [vmem:[%s288_s1 + $0x30] sm:$0xff]  ;;  %v203_v2 = vld [vmem:[%s288_s1 + $0x28] sm:$0xff] }
   0x2   :  { %106 = vmatpush.bf16.msra.mxu0 %v205_v0  ;;  %206 = vmatpush.bf16.msra.mxu1 %v205_v0  ;;  %v202_v3 = vld [vmem:[%s288_s1 + $0x20] sm:$0xff]  ;;  %v201_v4 = vld [vmem:[%s288_s1 + $0x18] sm:$0xff]  ;;  %v200_v5 = vld [vmem:[%s288_s1 + $0x10] sm:$0xff] }
   0x3   :  { %v199_v6 = vld [vmem:[%s288_s1 + $0x8] sm:$0xff]  ;;  %v198_v7 = vld [vmem:[%s288_s1] sm:$0xff]  ;;  %v142_v11 = vld [vmem:[%s290_s2 + $0x10] sm:$0xff] }
   0x4   :  { %v196_v8 = vld [vmem:[%s289_s0] sm:$0xff]  ;;  %v197_v9 = vld [vmem:[%s289_s0 + $0x8] sm:$0xff]  ;;  %v143_v17 = vld [vmem:[%s290_s2 + $0x18] sm:$0xff] }
   0x5   :  { %v140_v10 = vld [vmem:[%s290_s2] sm:$0xff]  ;;  %v141_v16 = vld [vmem:[%s290_s2 + $0x8] sm:$0xff] }
   0x6   :  { %107 = vmatpush.bf16.msra.mxu0 %v204_v1  ;;  %207 = vmatpush.bf16.msra.mxu1 %v204_v1 }
   0xa   :  { %108 = vmatpush.bf16.msra.mxu0 %v203_v2  ;;  %208 = vmatpush.bf16.msra.mxu1 %v203_v2 }
   0xe   :  { %109 = vmatpush.bf16.msra.mxu0 %v202_v3  ;;  %209 = vmatpush.bf16.msra.mxu1 %v202_v3 }
  0x12   :  { %110 = vmatpush.bf16.msra.mxu0 %v201_v4  ;;  %210 = vmatpush.bf16.msra.mxu1 %v201_v4 }
  0x16   :  { %111 = vmatpush.bf16.msra.mxu0 %v200_v5  ;;  %211 = vmatpush.bf16.msra.mxu1 %v200_v5 }
  0x1a   :  { %112 = vmatpush.bf16.msra.mxu0 %v199_v6  ;;  %212 = vmatpush.bf16.msra.mxu1 %v199_v6 }
  0x1e   :  { %113 = vmatpush.bf16.msra.mxu0 %v198_v7  ;;  %213 = vmatpush.bf16.msra.mxu1 %v198_v7 }
  0x21   :  { %114 = vmatmul.bf16.vlgmr.msra.gmra.mxu0 %v196_v8  ;;  %119 = vmatmul.bf16.vlgmr.msra.gmra.mxu1 %v197_v9 }
  0x9e   :  { %v115_v12 = vpop.f32.mrf.mxu0  ;;  %v120_v13 = vpop.f32.mrf.mxu1 }
  0x9f   :  { %v144_v14 = vadd.f32 %v140_v10, %v115_v12  ;;  %v146_v15 = vadd.f32 %v142_v11, %v120_v13 }
  0xa1   :  { %148 = vst [vmem:[%s291_s3] sm:$0xff] %v144_v14 }
  0xa2   :  { %150 = vst [vmem:[%s291_s3 + $0x10] sm:$0xff] %v146_v15 }
  0xa6   :  { %v117_v18 = vpop.f32.mrf.mxu0  ;;  %v122_v19 = vpop.f32.mrf.mxu1 }
  0xa7   :  { %v145_v20 = vadd.f32 %v141_v16, %v117_v18  ;;  %v147_v21 = vadd.f32 %v143_v17, %v122_v19 }
  0xa9   :  { %149 = vst [vmem:[%s291_s3 + $0x8] sm:$0xff] %v145_v20 }
  0xaa   :  { %151 = vst [vmem:[%s291_s3 + $0x18] sm:$0xff] %v147_v21 }

// kernel: deepseek_forward.17
= control target key start
LH: loop header
LB: loop body
LE: loop exit
PB: predicated region body
PF: predicated region fallthrough
CT: control target
= control target key end

     0   :  { %s658_s1 = inlined_call_operand.vmem [shape: bf16[128,384], index: 1, kind: input, shape index: {}]   ;;  %s659_s0 = inlined_call_operand.vmem [shape: bf16[32,128], index: 0, kind: input, shape index: {}]   ;;  %s660_s2 = inlined_call_operand.vmem [shape: bf16[32,384], index: 2, kind: output, shape index: {}]  }
   0x1   :  { %v425_v0 = vld [vmem:[%s658_s1 + $0xa8] sm:$0xf]  ;;  %v459_v1 = vld [vmem:[%s658_s1 + $0xb0] sm:$0xf0]  ;;  %v458_v2 = vld [vmem:[%s658_s1 + $0xac] sm:$0xf] }
   0x2   :  { %v426_v3 = vor.u32 %v459_v1, %v425_v0  ;;  %v427_v4 = vld [vmem:[%s658_s1 + $0xb4] sm:$0xf0]  ;;  %v433_v5 = vld [vmem:[%s658_s1 + $0xb0] sm:$0xf]  ;;  %v460_v6 = vld [vmem:[%s658_s1 + $0xb8] sm:$0xf0] }
   0x3   :  { %v430_v7 = vor.u32 %v458_v2, %v427_v4  ;;  %v434_v8 = vor.u32 %v460_v6, %v433_v5  ;;  %v413_v9 = vld [vmem:[%s658_s1 + $0x90] sm:$0xf]  ;;  %v456_v10 = vld [vmem:[%s658_s1 + $0x98] sm:$0xf0]  ;;  %v455_v11 = vld [vmem:[%s658_s1 + $0x94] sm:$0xf] }
   0x4   :  { %215 = vmatpush.bf16.msra.mxu0 %v426_v3  ;;  %v414_v12 = vor.u32 %v456_v10, %v413_v9  ;;  %v415_v13 = vld [vmem:[%s658_s1 + $0x9c] sm:$0xf0]  ;;  %v421_v14 = vld [vmem:[%s658_s1 + $0x98] sm:$0xf]  ;;  %v457_v15 = vld [vmem:[%s658_s1 + $0xa0] sm:$0xf0]  ;;  %461 = vmatpush.bf16.msra.mxu3 %v426_v3 }
   0x5   :  { %234 = vmatpush.bf16.msra.mxu1 %v430_v7  ;;  %253 = vmatpush.bf16.msra.mxu2 %v434_v8  ;;  %v418_v16 = vor.u32 %v455_v11, %v415_v13  ;;  %v422_v17 = vor.u32 %v457_v15, %v421_v14  ;;  %v401_v18 = vld [vmem:[%s658_s1 + $0x78] sm:$0xf]  ;;  %v453_v19 = vld [vmem:[%s658_s1 + $0x80] sm:$0xf0]  ;;  %v452_v20 = vld [vmem:[%s658_s1 + $0x7c] sm:$0xf] }
   0x6   :  { %v403_v21 = vld [vmem:[%s658_s1 + $0x84] sm:$0xf0]  ;;  %v409_v22 = vld [vmem:[%s658_s1 + $0x80] sm:$0xf]  ;;  %v454_v23 = vld [vmem:[%s658_s1 + $0x88] sm:$0xf0]  ;;  %v402_v24 = vor.u32 %v453_v19, %v401_v18 }
   0x7   :  { %v406_v25 = vor.u32 %v452_v20, %v403_v21  ;;  %v410_v26 = vor.u32 %v454_v23, %v409_v22  ;;  %v389_v27 = vld [vmem:[%s658_s1 + $0x60] sm:$0xf]  ;;  %v450_v28 = vld [vmem:[%s658_s1 + $0x68] sm:$0xf0]  ;;  %v449_v29 = vld [vmem:[%s658_s1 + $0x64] sm:$0xf] }
   0x8   :  { %216 = vmatpush.bf16.msra.mxu0 %v414_v12  ;;  %462 = vmatpush.bf16.msra.mxu3 %v414_v12  ;;  %v391_v30 = vld [vmem:[%s658_s1 + $0x6c] sm:$0xf0]  ;;  %v397_v31 = vld [vmem:[%s658_s1 + $0x68] sm:$0xf]  ;;  %v451_v32 = vld [vmem:[%s658_s1 + $0x70] sm:$0xf0]  ;;  %v390_v33 = vor.u32 %v450_v28, %v389_v27 }
   0x9   :  { %235 = vmatpush.bf16.msra.mxu1 %v418_v16  ;;  %254 = vmatpush.bf16.msra.mxu2 %v422_v17  ;;  %v394_v34 = vor.u32 %v449_v29, %v391_v30  ;;  %v398_v35 = vor.u32 %v451_v32, %v397_v31  ;;  %v377_v36 = vld [vmem:[%s658_s1 + $0x48] sm:$0xf]  ;;  %v447_v37 = vld [vmem:[%s658_s1 + $0x50] sm:$0xf0]  ;;  %v446_v38 = vld [vmem:[%s658_s1 + $0x4c] sm:$0xf] }
   0xa   :  { %v379_v39 = vld [vmem:[%s658_s1 + $0x54] sm:$0xf0]  ;;  %v385_v40 = vld [vmem:[%s658_s1 + $0x50] sm:$0xf]  ;;  %v448_v41 = vld [vmem:[%s658_s1 + $0x58] sm:$0xf0]  ;;  %v378_v42 = vor.u32 %v447_v37, %v377_v36 }
   0xb   :  { %v382_v43 = vor.u32 %v446_v38, %v379_v39  ;;  %v386_v44 = vor.u32 %v448_v41, %v385_v40  ;;  %v365_v45 = vld [vmem:[%s658_s1 + $0x30] sm:$0xf]  ;;  %v444_v46 = vld [vmem:[%s658_s1 + $0x38] sm:$0xf0]  ;;  %v443_v47 = vld [vmem:[%s658_s1 + $0x34] sm:$0xf] }
   0xc   :  { %217 = vmatpush.bf16.msra.mxu0 %v402_v24  ;;  %463 = vmatpush.bf16.msra.mxu3 %v402_v24  ;;  %v367_v48 = vld [vmem:[%s658_s1 + $0x3c] sm:$0xf0]  ;;  %v373_v49 = vld [vmem:[%s658_s1 + $0x38] sm:$0xf]  ;;  %v445_v50 = vld [vmem:[%s658_s1 + $0x40] sm:$0xf0]  ;;  %v366_v51 = vor.u32 %v444_v46, %v365_v45 }
   0xd   :  { %236 = vmatpush.bf16.msra.mxu1 %v406_v25  ;;  %255 = vmatpush.bf16.msra.mxu2 %v410_v26  ;;  %v370_v52 = vor.u32 %v443_v47, %v367_v48  ;;  %v374_v53 = vor.u32 %v445_v50, %v373_v49  ;;  %v353_v54 = vld [vmem:[%s658_s1 + $0x18] sm:$0xf]  ;;  %v441_v55 = vld [vmem:[%s658_s1 + $0x20] sm:$0xf0]  ;;  %v440_v56 = vld [vmem:[%s658_s1 + $0x1c] sm:$0xf] }
   0xe   :  { %v355_v57 = vld [vmem:[%s658_s1 + $0x24] sm:$0xf0]  ;;  %v361_v58 = vld [vmem:[%s658_s1 + $0x20] sm:$0xf]  ;;  %v442_v59 = vld [vmem:[%s658_s1 + $0x28] sm:$0xf0]  ;;  %v354_v60 = vor.u32 %v441_v55, %v353_v54 }
   0xf   :  { %v358_v61 = vor.u32 %v440_v56, %v355_v57  ;;  %v362_v62 = vor.u32 %v442_v59, %v361_v58  ;;  %v341_v63 = vld [vmem:[%s658_s1] sm:$0xf]  ;;  %v438_v0 = vld [vmem:[%s658_s1 + $0x8] sm:$0xf0]  ;;  %v437_v1 = vld [vmem:[%s658_s1 + $0x4] sm:$0xf] }
  0x10   :  { %218 = vmatpush.bf16.msra.mxu0 %v390_v33  ;;  %464 = vmatpush.bf16.msra.mxu3 %v390_v33  ;;  %v343_v2 = vld [vmem:[%s658_s1 + $0xc] sm:$0xf0]  ;;  %v349_v3 = vld [vmem:[%s658_s1 + $0x8] sm:$0xf]  ;;  %v439_v4 = vld [vmem:[%s658_s1 + $0x10] sm:$0xf0]  ;;  %v342_v5 = vor.u32 %v438_v0, %v341_v63 }
  0x11   :  { %237 = vmatpush.bf16.msra.mxu1 %v394_v34  ;;  %256 = vmatpush.bf16.msra.mxu2 %v398_v35  ;;  %v346_v6 = vor.u32 %v437_v1, %v343_v2  ;;  %v350_v7 = vor.u32 %v439_v4, %v349_v3  ;;  %v435_v8 = vld [vmem:[%s659_s0] sm:$0xff]  ;;  %v436_v9 = vld [vmem:[%s659_s0 + $0x8] sm:$0xff] }
  0x14   :  { %219 = vmatpush.bf16.msra.mxu0 %v378_v42  ;;  %465 = vmatpush.bf16.msra.mxu3 %v378_v42 }
  0x15   :  { %238 = vmatpush.bf16.msra.mxu1 %v382_v43  ;;  %257 = vmatpush.bf16.msra.mxu2 %v386_v44 }
  0x18   :  { %220 = vmatpush.bf16.msra.mxu0 %v366_v51  ;;  %466 = vmatpush.bf16.msra.mxu3 %v366_v51 }
  0x19   :  { %239 = vmatpush.bf16.msra.mxu1 %v370_v52  ;;  %258 = vmatpush.bf16.msra.mxu2 %v374_v53 }
  0x1c   :  { %221 = vmatpush.bf16.msra.mxu0 %v354_v60  ;;  %467 = vmatpush.bf16.msra.mxu3 %v354_v60 }
  0x1d   :  { %240 = vmatpush.bf16.msra.mxu1 %v358_v61  ;;  %259 = vmatpush.bf16.msra.mxu2 %v362_v62 }
  0x20   :  { %222 = vmatpush.bf16.msra.mxu0 %v342_v5  ;;  %468 = vmatpush.bf16.msra.mxu3 %v342_v5 }
  0x21   :  { %241 = vmatpush.bf16.msra.mxu1 %v346_v6  ;;  %260 = vmatpush.bf16.msra.mxu2 %v350_v7 }
  0x23   :  { %223 = vmatmul.bf16.vlgmr.msra.gmra.mxu0 %v435_v8  ;;  %228 = vmatmul.bf16.vlgmr.msra.gmra.mxu3 %v436_v9 }
  0x24   :  { %242 = vmatmul.bf16.vlgmr.msra.gmra.mxu1 %v435_v8  ;;  %261 = vmatmul.bf16.vlgmr.msra.gmra.mxu2 %v435_v8 }
  0x34   :  { %247 = vmatmul.bf16.gmra.mxu1 %v436_v9  ;;  %266 = vmatmul.bf16.gmra.mxu2 %v436_v9 }
  0xa0   :  { %v224_v10 = vpop.f32.mrf.mxu0 }
  0xa1   :  { %v243_v11 = vpop.f32.mrf.mxu1 }
  0xa2   :  { %v311_v12 = vpack.c.bf16 %v243_v11, %v224_v10 }
  0xa4   :  { %319 = vst [vmem:[%s660_s2] sm:$0xff] %v311_v12 }
  0xa6   :  { %v229_v18 = vpop.f32.mrf.mxu3 }
  0xa7   :  { %v262_v13 = vpop.f32.mrf.mxu2 }
  0xa8   :  { %v312_v14 = vpack.c.bf16 %v262_v13, %v262_v13  ;;  %v226_v15 = vpop.f32.mrf.mxu0 }
  0xa9   :  { %v245_v16 = vpop.f32.mrf.mxu1 }
  0xaa   :  { %320 = vst [vmem:[%s660_s2 + $0x8] sm:$0xf] %v312_v14  ;;  %v313_v17 = vpack.c.bf16 %v245_v16, %v226_v15 }
  0xac   :  { %321 = vst [vmem:[%s660_s2 + $0xc] sm:$0xff] %v313_v17 }
  0xae   :  { %v231_v25 = vpop.f32.mrf.mxu3 }
  0xaf   :  { %v264_v19 = vpop.f32.mrf.mxu2 }
  0xb0   :  { %v314_v20 = vpack.c.bf16 %v264_v19, %v264_v19 }
  0xb1   :  { %v248_v21 = vpop.f32.mrf.mxu1 }
  0xb2   :  { %322 = vst [vmem:[%s660_s2 + $0x14] sm:$0xf] %v314_v20  ;;  %v315_v22 = vpack.c.bf16 %v248_v21, %v229_v18 }
  0xb4   :  { %323 = vst [vmem:[%s660_s2 + $0x18] sm:$0xff] %v315_v22 }
  0xb7   :  { %v267_v23 = vpop.f32.mrf.mxu2 }
  0xb8   :  { %v316_v24 = vpack.c.bf16 %v267_v23, %v267_v23 }
  0xb9   :  { %v250_v26 = vpop.f32.mrf.mxu1 }
  0xba   :  { %324 = vst [vmem:[%s660_s2 + $0x20] sm:$0xf] %v316_v24  ;;  %v317_v27 = vpack.c.bf16 %v250_v26, %v231_v25 }
  0xbc   :  { %325 = vst [vmem:[%s660_s2 + $0x24] sm:$0xff] %v317_v27 }
  0xbf   :  { %v269_v28 = vpop.f32.mrf.mxu2 }
  0xc0   :  { %v318_v29 = vpack.c.bf16 %v269_v28, %v269_v28 }
  0xc2   :  { %326 = vst [vmem:[%s660_s2 + $0x2c] sm:$0xf] %v318_v29 }

// kernel: deepseek_forward.18
= control target key start
LH: loop header
LB: loop body
LE: loop exit
PB: predicated region body
PF: predicated region fallthrough
CT: control target
= control target key end

     0   :  { %s2286_s24 = smov 0   ;;  %s2288_s25 = smov 0   ;;  %s2935_s0 = inlined_call_operand.vmem [shape: bf16[2,16,384], index: 0, kind: input, shape index: {}, may-alias: {0,1,2}]   ;;  %s2936_s1 = inlined_call_operand.vmem [shape: bf16[2,16,384], index: 1, kind: input, shape index: {}, may-alias: {0,1,2}]   ;;  %s2937_s2 = inlined_call_operand.vmem [shape: bf16[2,16,384], index: 2, kind: input, shape index: {}, may-alias: {0,1,2}]   ;;  %s2938_s3 = inlined_call_operand.vmem [shape: f32[16,16], index: 3, kind: input, shape index: {}, may-alias: {3,5}]   ;;  %s2939_s4 = inlined_call_operand.vmem [shape: f32[16,16], index: 4, kind: input, shape index: {}, may-alias: {4,6}]   ;;  %s2940_s5 = inlined_call_operand.vmem [shape: f32[16,16], index: 5, kind: input, shape index: {}, may-alias: {3,5}]   ;;  %s2941_s6 = inlined_call_operand.vmem [shape: f32[16,16], index: 6, kind: input, shape index: {}, may-alias: {4,6}]   ;;  %s2942_s7 = inlined_call_operand.vmem [shape: bf16[2,16,128], index: 7, kind: output, shape index: {}]  }
   0x1   :  { %s2290_s26 = smov 0   ;;  %s2292_s27 = smov 0  }
   0x2   :  { %s2294_s28 = smov 0  }
   0x3 LB: > { %s36_s29 = sadd.s32 1, %s2230_s27  ;;  %p52_p1 = scmp.ne.s32.totalorder %s2222_s25, %s2218_s24  ;;  %s2234_s28 = sphi %s2294_s28, %s17_s28   ;;  %s2230_s27 = sphi %s2292_s27, %s2947_s27   ;;  %s2226_s26 = sphi %s2290_s26, %s2946_s26   ;;  %s2222_s25 = sphi %s2288_s25, %s2945_s25   ;;  %s2218_s24 = sphi %s2286_s24, %s2944_s24  }
   0x4   : > { %p38_p0 = scmp.ge.s32.totalorder %s36_s29, 2  ;;  %p53_p2 = scmp.eq.s32.totalorder %s2234_s28, 0 }
   0x5   : > { %s45_s9 = sadd.s32 1, %s2222_s25  ;;  %p1963_p5 = scmp.ge.s32.totalorder %s2234_s28, 2 }
   0x6   : > { %s2949_s29 = smov (%p38_p0, %s36_s29), 0  ;;  %p2317_p3 = por %p53_p2, %p52_p1 }
   0x7   : > { %s40_s8 = ssub.s32 %s2230_s27, %s2949_s29  ;;  %302 = sbr.rel (%p1963_p5) target bundleno = 33 (0x21), region = 32 }
   0x8   : > { %p43_p4 = scmp.eq.s32.totalorder %s40_s8, 0 }
   0xa   : > { %s2325_s10 = scalar_select %p43_p4, %s2222_s25, %s45_s9  }
   0xc   : > { %305 = sbr.rel (!%p2317_p3) target bundleno = 19 (0x13), region = 36  ;;  %s307_s11 = sand.u32 (%p2317_p3), 1, %s2222_s25  }
   0xd   : > { %s2009_s12 = smul.u32 (%p2317_p3), 24, %s2230_s27  ;;  %s1964_s13 = sshll.u32 (%p2317_p3), %s307_s11, 3 }
   0xe   : > { %s309_s17 = scalar_lea.vmem (%p2317_p3), [#allocation5], %s1964_s13 }
   0xf   : > { %s315_s16 = scalar_lea.vmem (%p2317_p3), %s2935_s0, %s2009_s12 }
  0x10   : > { %v332_v0 = vld [vmem:[%s315_s16] sm:$0xf] (%p2317_p3)  ;;  %v334_v1 = vld [vmem:[%s315_s16 + $0xc] sm:$0xf] (%p2317_p3) }
  0x11   : > { %333 = vst [vmem:[%s309_s17] sm:$0xf] %v332_v0 }
  0x12   : > { %335 = vst [vmem:[%s309_s17 + $0x4] sm:$0xf] %v334_v1 }
  0x13 PF: > { %363 = sbr.rel (!%p2317_p3) target bundleno = 26 (0x1a), region = 77  ;;  %s365_s18 = sand.u32 (%p2317_p3), 1, %s2222_s25  }
  0x14   : > { %s1967_s19 = smul.u32 (%p2317_p3), 24, %s2230_s27  ;;  %s1966_s20 = sshll.u32 (%p2317_p3), %s365_s18, 3 }
  0x15   : > { %s367_s8 = scalar_lea.vmem (%p2317_p3), [#allocation6], %s1966_s20 }
  0x16   : > { %s1810_s23 = scalar_lea.vmem (%p2317_p3), %s2936_s1, %s1967_s19 }
  0x17   : > { %v1968_v2 = vld [vmem:[%s1810_s23 + $0x4] sm:$0xf] (%p2317_p3)  ;;  %v1969_v3 = vld [vmem:[%s1810_s23 + $0x10] sm:$0xf] (%p2317_p3) }
  0x18   : > { %392 = vst [vmem:[%s367_s8] sm:$0xf] %v1968_v2 }
  0x19   : > { %394 = vst [vmem:[%s367_s8 + $0x4] sm:$0xf] %v1969_v3 }
  0x1a PF: > { %422 = sbr.rel (!%p2317_p3) target bundleno = 33 (0x21), region = 118  ;;  %s424_s9 = sand.u32 (%p2317_p3), 1, %s2222_s25  }
  0x1b   : > { %s1971_s11 = smul.u32 (%p2317_p3), 24, %s2230_s27  ;;  %s1970_s12 = sshll.u32 (%p2317_p3), %s424_s9, 3 }
  0x1c   : > { %s426_s16 = scalar_lea.vmem (%p2317_p3), [#allocation7], %s1970_s12 }
  0x1d   : > { %s1818_s15 = scalar_lea.vmem (%p2317_p3), %s2937_s2, %s1971_s11 }
  0x1e   : > { %v1972_v4 = vld [vmem:[%s1818_s15 + $0x8] sm:$0xf] (%p2317_p3)  ;;  %v1973_v5 = vld [vmem:[%s1818_s15 + $0x14] sm:$0xf] (%p2317_p3) }
  0x1f   : > { %451 = vst [vmem:[%s426_s16] sm:$0xf] %v1972_v4 }
  0x20   : > { %453 = vst [vmem:[%s426_s16 + $0x4] sm:$0xf] %v1973_v5 }
  0x21 PF: > { %p1974_p6 = scmp.ge.s32.totalorder %s2234_s28, 1  ;;  %p480_p7 = scmp.lt.s32.totalorder %s2234_s28, 3 }
  0x23   : > { %p481_p8 = pnand %p1974_p6, %p480_p7 }
  0x24   : > { %s2236_s20 = smov (!%p481_p8), 16   ;;  %s2237_s17 = smov (!%p481_p8), 48  }
  0x25   : > { %484 = sbr.rel (%p481_p8) target bundleno = 1906 (0x772), region = 159  ;;  %s487_s18 = sand.u32 (!%p481_p8), 1, %s2218_s24  }
  0x26   : > { %s2410_s19 = sshll.u32 (!%p481_p8), %s487_s18, 3  ;;  %s2238_s23 = smov (!%p481_p8), 112  }
  0x27   : > { %s496_s21 = scalar_lea.vmem (!%p481_p8), [#allocation6], %s2410_s19  ;;  %s489_s22 = scalar_lea.vmem (!%p481_p8), [#allocation5], %s2410_s19 }
  0x28   : > { %s2239_s24 = smov (!%p481_p8), 32   ;;  %s2240_s8 = smov (!%p481_p8), 64  }
  0x29   : > { %s2241_s9 = smov (!%p481_p8), 80   ;;  %s503_s11 = scalar_lea.vmem (!%p481_p8), [#allocation7], %s2410_s19 }
  0x2a   : > { %v2354_v6 = vld [vmem:[%s2940_s5] sm:$0xff]  ;;  %v2375_v9 = vld [vmem:[%s2940_s5 + $0x8] sm:$0xff]  ;;  %v2001_v14 = vld [vmem:[%s496_s21] sm:$0xff]   ;;  %vm721_vm0 = vcmask 130048   ;;  %vm623_vm1 = vcmask 261120   ;;  %vm606_vm2 = vcmask 7168  }
  0x2b   : > { %v2359_v7 = vld [vmem:[%s2938_s3] sm:$0xff]  ;;  %695 = vrot.lane.b32.xlu0 %v2354_v6, %s2236_s20  ;;  %v2380_v10 = vld [vmem:[%s2938_s3 + $0x8] sm:$0xff]  ;;  %v2413_v15 = vunpack.c.l.bf16 %v2001_v14  ;;  %v2418_v20 = vunpack.c.h.bf16 %v2001_v14  ;;  %p592_p9 = scmp.lt.s32.totalorder %s2226_s26, 1  ;;  %vm1749_vm3 = vcmask 523264   ;;  %vm1752_vm4 = vcmask 785408  }
  0x2c   : > { %964 = vrot.lane.b32.xlu1 %v2359_v7, %s2236_s20  ;;  %v2368_v8 = vld [vmem:[%s2941_s6] sm:$0xff]  ;;  %v2385_v11 = vld [vmem:[%s2941_s6 + $0x8] sm:$0xff] }
  0x2d   : > { %673 = vrot.lane.b32.xlu2 %v2368_v8, %s2236_s20  ;;  %v2396_v12 = vld [vmem:[%s2939_s4 + $0x8] sm:$0xff]  ;;  %v2401_v13 = vld [vmem:[%s2939_s4] sm:$0xff]  ;;  %v692_v55 = vmul.f32 %v2418_v20, %v2385_v11  ;;  %v691_v57 = vmul.f32 %v2413_v15, %v2368_v8  ;;  %s2951_s26 = smov (!%p592_p9, %s2226_s26), 1 }
  0x2e   : > { %v1997_v19 = vld [vmem:[%s489_s22] sm:$0xff]   ;;  %s1994_s12 = sshll.u32 %s2951_s26, 3 }
  0x2f   : > { %v2420_v21 = vunpack.c.h.bf16 %v1997_v19  ;;  %v2424_v26 = vunpack.c.l.bf16 %v1997_v19  ;;  %s599_s15 = scalar_lea.vmem %s2942_s7, %s1994_s12 }
  0x31   : > { %v961_v59 = vmul.f32 %v2420_v21, %v2396_v12  ;;  %v960_v62 = vmul.f32 %v2424_v26, %v2401_v13 }
  0x33   : > { %697 = vrot.lane.b32.xlu0 %v2375_v9, %s2236_s20 }
  0x34   : > { %966 = vrot.lane.b32.xlu1 %v2380_v10, %s2236_s20 }
  0x35   : > { %675 = vrot.lane.b32.xlu2 %v2385_v11, %s2236_s20 }
  0x3b   : > { %944 = vrot.lane.b32.xlu0 %v2396_v12, %s2236_s20 }
  0x3d   : > { %942 = vrot.lane.b32.xlu2 %v2401_v13, %s2236_s20 }
  0x45   : > { %733 = vrot.lane.b32.xlu2 %v2368_v8, %s2237_s17 }
  0x87   : > { %v674_v28 = vpop.permute.xlu2 %673 }
  0x88   : > { %v679_v30 = vmul.f32 %v2413_v15, %v674_v28 }
  0x8f   : > { %v676_v29 = vpop.permute.xlu2 %675 }
  0x90   : > { %v680_v33 = vmul.f32 %v2418_v20, %v676_v29 }
  0x97   : > { %v943_v31 = vpop.permute.xlu2 %942 }
  0x98   : > { %v948_v32 = vmul.f32 %v2424_v26, %v943_v31  ;;  %v670_v31 = vmul.f32 %v2418_v20, %v2375_v9 }
  0x9d   : > { %v696_v16 = vpop.permute.xlu0 %695 }
  0x9e   : > { %v965_v17 = vpop.permute.xlu1 %964  ;;  %v701_v18 = vmul.f32 %v2413_v15, %v696_v16 }
  0x9f   : > { %v970_v27 = vmul.f32 %v2424_v26, %v965_v17  ;;  %v734_v36 = vpop.permute.xlu2 %733 }
  0xa0   : > { %705 = vrot.lane.b32.xlu0 %v701_v18, %s2238_s23  ;;  %v739_v37 = vmul.f32 %v2413_v15, %v734_v36 }
  0xa5   : > { %v698_v22 = vpop.permute.xlu0 %697 }
  0xa6   : > { %v967_v23 = vpop.permute.xlu1 %966  ;;  %v702_v24 = vmul.f32 %v2418_v20, %v698_v22 }
  0xa7   : > { %v971_v25 = vmul.f32 %v2420_v21, %v967_v23 }
  0xa8   : > { %707 = vrot.lane.b32.xlu1 %v702_v24, %s2238_s23  ;;  %725 = vrot.lane.b32.xlu0 %v2354_v6, %s2239_s24 }
  0xa9   : > { %976 = vrot.lane.b32.xlu2 %v971_v25, %s2238_s23 }
  0xad   : > { %v945_v34 = vpop.permute.xlu0 %944 }
  0xae   : > { %v949_v35 = vmul.f32 %v2420_v21, %v945_v34 }
  0xb0   : > { %735 = vrot.lane.b32.xlu0 %v2385_v11, %s2237_s17  ;;  %974 = vrot.lane.b32.xlu1 %v970_v27, %s2238_s23 }
  0xb1   : > { %759 = vrot.lane.b32.xlu2 %v2354_v6, %s2237_s17 }
  0xb8   : > { %751 = vrot.lane.b32.xlu0 %v2368_v8, %s2239_s24  ;;  %727 = vrot.lane.b32.xlu1 %v2375_v9, %s2239_s24 }
  0xc0   : > { %683 = vrot.lane.b32.xlu0 %v679_v30, %s2238_s23  ;;  %753 = vrot.lane.b32.xlu1 %v2385_v11, %s2239_s24  ;;  %v669_v30 = vmul.f32 %v2413_v15, %v2354_v6 }
  0xc8   : > { %685 = vrot.lane.b32.xlu1 %v680_v33, %s2238_s23  ;;  %952 = vrot.lane.b32.xlu0 %v948_v32, %s2238_s23 }
  0xd0   : > { %954 = vrot.lane.b32.xlu1 %v949_v35, %s2238_s23  ;;  %761 = vrot.lane.b32.xlu0 %v2375_v9, %s2237_s17 }
  0xd8   : > { %743 = vrot.lane.b32.xlu1 %v739_v37, %s2238_s23  ;;  %798 = vrot.lane.b32.xlu0 %v2375_v9, %s2240_s8 }
 0x103   : > { %v977_v38 = vpop.permute.xlu2 %976 }
 0x104   : > { %v981_v2 = vadd.f32 %v977_v38, %v961_v59 }
 0x10b   : > { %v760_v39 = vpop.permute.xlu2 %759 }
 0x10c   : > { %v765_v40 = vmul.f32 %v2413_v15, %v760_v39 }
 0x10e   : > { %769 = vrot.lane.b32.xlu1 %v765_v40, %s2238_s23  ;;  %v938_v40 = vmul.f32 %v2424_v26, %v2359_v7 }
 0x112   : > { %v706_v41 = vpop.permute.xlu0 %705 }
 0x113   : > { %v711_v60 = vadd.f32 %v706_v41, %v691_v57  ;;  %v939_v41 = vmul.f32 %v2420_v21, %v2380_v10 }
 0x116   : > { %804 = vrot.lane.b32.xlu1 %v2368_v8, %s2241_s9 }
 0x11a   : > { %v708_v42 = vpop.permute.xlu1 %707  ;;  %v726_v43 = vpop.permute.xlu0 %725 }
 0x11b   : > { %v712_v58 = vadd.f32 %v708_v42, %v692_v55  ;;  %v731_v61 = vmul.f32 %v2413_v15, %v726_v43 }
 0x11d   : > { %v2060_v0 = vpack.i.bf16 %v712_v58, %v711_v60 }
 0x122   : > { %v736_v44 = vpop.permute.xlu0 %735  ;;  %v975_v45 = vpop.permute.xlu1 %974 }
 0x123   : > { %v740_v46 = vmul.f32 %v2418_v20, %v736_v44  ;;  %v980_v3 = vadd.f32 %v975_v45, %v960_v62 }
 0x125   : > { %745 = vrot.lane.b32.xlu2 %v740_v46, %s2238_s23  ;;  %v2065_v4 = vpack.i.bf16 %v981_v2, %v980_v3 }
 0x12a   : > { %v752_v47 = vpop.permute.xlu0 %751  ;;  %v728_v48 = vpop.permute.xlu1 %727 }
 0x12b   : > { %v732_v5 = vmul.f32 %v2418_v20, %v728_v48  ;;  %v757_v14 = vmul.f32 %v2413_v15, %v752_v47 }
 0x132   : > { %v684_v49 = vpop.permute.xlu0 %683  ;;  %v754_v50 = vpop.permute.xlu1 %753 }
 0x133   : > { %v758_v25 = vmul.f32 %v2418_v20, %v754_v50  ;;  %v689_v33 = vsub.f32 %v669_v30, %v684_v49 }
 0x13a   : > { %v686_v51 = vpop.permute.xlu1 %685  ;;  %v2462_v52 = vpop.permute.xlu0 %952 }
 0x13b   : > { %v690_v34 = vsub.f32 %v670_v31, %v686_v51  ;;  %v958_v44 = vsub.f32 %v938_v40, %v2462_v52 }
 0x142   : > { %v2464_v53 = vpop.permute.xlu1 %954  ;;  %v762_v54 = vpop.permute.xlu0 %761 }
 0x143   : > { %v766_v56 = vmul.f32 %v2418_v20, %v762_v54  ;;  %v959_v45 = vsub.f32 %v939_v41, %v2464_v53 }
 0x145   : > { %771 = vrot.lane.b32.xlu2 %v766_v56, %s2238_s23 }
 0x14a   : > { %v744_v63 = vpop.permute.xlu1 %743  ;;  %v799_v57 = vpop.permute.xlu0 %798 }
 0x14b   : > { %v749_v1 = vsub.f32 %v731_v61, %v744_v63  ;;  %v803_v58 = vmul.f32 %v2418_v20, %v799_v57 }
 0x14d   : > { %2061 = vrot.lane.b32.xlu2 %v2060_v0, %s2236_s20 }
 0x155   : > { %2066 = vrot.lane.b32.xlu2 %v2065_v4, %s2236_s20  ;;  %s2242_s20 = smov 96  }
 0x15d   : > { %796 = vrot.lane.b32.xlu2 %v2354_v6, %s2240_s8 }
 0x165   : > { %806 = vrot.lane.b32.xlu2 %v2385_v11, %s2241_s9 }
 0x16d   : > { %822 = vrot.lane.b32.xlu2 %v2368_v8, %s2240_s8 }
 0x175   : > { %832 = vrot.lane.b32.xlu2 %v2375_v9, %s2241_s9 }
 0x17d   : > { %1139 = vrot.lane.b32.xlu2 %v2359_v7, %s2237_s17 }
 0x17f   : > { %v746_v16 = vpop.permute.xlu2 %745 }
 0x180   : > { %v750_v17 = vsub.f32 %v732_v5, %v746_v16  ;;  %v770_v18 = vpop.permute.xlu1 %769 }
 0x181   : > { %v2491_v19 = vadd.f32 %v770_v18, %v757_v14 }
 0x182   : > { %v2493_v22 = vpack.i.bf16 %v750_v17, %v749_v1 }
 0x185   : > { %877 = vrot.lane.b32.xlu2 %v2385_v11, %s2238_s23 }
 0x188   : > { %v805_v23 = vpop.permute.xlu1 %804 }
 0x189   : > { %v810_v24 = vmul.f32 %v2413_v15, %v805_v23 }
 0x18b   : > { %814 = vrot.lane.b32.xlu0 %v810_v24, %s2238_s23 }
 0x18d   : > { %1294 = vrot.lane.b32.xlu2 %v2401_v13, %s2241_s9 }
 0x193   : > { %824 = vrot.lane.b32.xlu0 %v2385_v11, %s2240_s8 }
 0x195   : > { %1322 = vrot.lane.b32.xlu2 %v2380_v10, %s2241_s9 }
 0x19d   : > { %1501 = vrot.lane.b32.xlu2 %v2359_v7, %s2238_s23 }
 0x19f   : > { %v772_v27 = vpop.permute.xlu2 %771 }
 0x1a0   : > { %v2508_v28 = vadd.f32 %v772_v27, %v758_v25 }
 0x1a2   : > { %v2075_v29 = vpack.i.bf16 %v2508_v28, %v2491_v19 }
 0x1a7   : > { %v2062_v32 = vpop.permute.xlu2 %2061 }
 0x1a8   : > { %v2064_v35 = vunpack.i.h.bf16 %v2062_v32  ;;  %v2063_v36 = vunpack.i.l.bf16 %v2062_v32 }
 0x1aa   : > { %v722_v37 = vsel %vm721_vm0, %v689_v33, %v2063_v36  ;;  %v723_v38 = vsel %vm721_vm0, %v690_v34, %v2064_v35 }
 0x1ab   : > { %v724_v39 = vpack.c.bf16 %v723_v38, %v722_v37 }
 0x1ad   : > { %v998_v42 = vsel %vm623_vm1, %v724_v39, 0 }
 0x1ae   : > { %1007 = vmatpush.bf16.xpose.msra.mxu0 %v998_v42 }
 0x1af   : > { %v2067_v43 = vpop.permute.xlu2 %2066 }
 0x1b0   : > { %v2069_v46 = vunpack.i.h.bf16 %v2067_v43  ;;  %v2068_v47 = vunpack.i.l.bf16 %v2067_v43 }
 0x1b2   : > { %v990_v48 = vsel %vm721_vm0, %v958_v44, %v2068_v47  ;;  %v991_v49 = vsel %vm721_vm0, %v959_v45, %v2069_v46 }
 0x1b3   : > { %v992_v50 = vpack.c.bf16 %v991_v49, %v990_v48  ;;  %v650_v48 = vlaneseq }
 0x1b5   : > { %1980 = vmatmul.msk.bf16.vlgmr.msra.gmra.mxu0 %vm623_vm1, %v992_v50 }
 0x1b7   : > { %v797_v51 = vpop.permute.xlu2 %796 }
 0x1b8   : > { %v802_v60 = vmul.f32 %v2413_v15, %v797_v51 }
 0x1bf   : > { %v807_v54 = vpop.permute.xlu2 %806 }
 0x1c0   : > { %v811_v55 = vmul.f32 %v2418_v20, %v807_v54 }
 0x1c2   : > { %816 = vrot.lane.b32.xlu1 %v811_v55, %s2238_s23  ;;  %v660_v55 = vand.u32 127, %v650_v48 }
 0x1c7   : > { %v823_v52 = vpop.permute.xlu2 %822 }
 0x1c8   : > { %v828_v23 = vmul.f32 %v2413_v15, %v823_v52 }
 0x1ca   : > { %830 = vrot.lane.b32.xlu1 %v2354_v6, %s2241_s9 }
 0x1cf   : > { %v833_v53 = vpop.permute.xlu2 %832 }
 0x1d0   : > { %v837_v56 = vmul.f32 %v2418_v20, %v833_v53  ;;  %v664_v53 = vcvt.s32.f32 %v660_v55  ;;  %v2244_v55 = vmov 0  }
 0x1d1   : > { %2086 = vset.pattern.permute.xlu0 %v2244_v55  ;;  %2085 = vset.pattern.permute.xlu1 %v2244_v55 }
 0x1d2   : > { %842 = vrot.lane.b32.xlu1 %v837_v56, %s2238_s23  ;;  %2132 = vset.pattern.permute.xlu2 %v2244_v55 }
 0x1d7   : > { %v1140_v4 = vpop.permute.xlu2 %1139 }
 0x1d8   : > { %v1145_v5 = vmul.f32 %v2424_v26, %v1140_v4 }
 0x1da   : > { %1115 = vrot.lane.b32.xlu1 %v2396_v12, %s2237_s17 }
 0x1df   : > { %v878_v17 = vpop.permute.xlu2 %877 }
 0x1e0   : > { %v882_v18 = vmul.f32 %v2418_v20, %v878_v17 }
 0x1e2   : > { %875 = vrot.lane.b32.xlu1 %v2368_v8, %s2238_s23 }
 0x1e7   : > { %v1295_v50 = vpop.permute.xlu2 %1294 }
 0x1e8   : > { %v1300_v52 = vmul.f32 %v2424_v26, %v1295_v50 }
 0x1ea   : > { %903 = vrot.lane.b32.xlu1 %v2375_v9, %s2238_s23 }
 0x1f2   : > { %1320 = vrot.lane.b32.xlu1 %v2359_v7, %s2241_s9 }
 0x1fa   : > { %1477 = vrot.lane.b32.xlu1 %v2396_v12, %s2238_s23 }
 0x1fd   : > { %v815_v59 = vpop.permute.xlu0 %814 }
 0x1fe   : > { %v820_v62 = vsub.f32 %v802_v60, %v815_v59  ;;  %v1323_v59 = vpop.permute.xlu2 %1322 }
 0x202   : > { %1149 = vrot.lane.b32.xlu1 %v1145_v5, %s2238_s23 }
 0x20a   : > { %895 = vrot.lane.b32.xlu1 %v2385_v11, %s2242_s20 }
 0x232   : > { %v1009_v51 = vpop.f32.mrf.mxu0 }
 0x234   : > { %v817_v61 = vpop.permute.xlu1 %816 }
 0x235   : > { %v821_v63 = vsub.f32 %v803_v58, %v817_v61  ;;  %v1327_v61 = vmul.f32 %v2420_v21, %v1323_v59 }
 0x237   : > { %v2080_v0 = vpack.i.bf16 %v821_v63, %v820_v62  ;;  %v1502_v62 = vpop.permute.xlu2 %1501 }
 0x238   : > { %v1507_v63 = vmul.f32 %v2424_v26, %v1502_v62 }
 0x23c   : > { %v831_v1 = vpop.permute.xlu1 %830 }
 0x23d   : > { %v836_v2 = vmul.f32 %v2413_v15, %v831_v1 }
 0x23f   : > { %840 = vrot.lane.b32.xlu0 %v836_v2, %s2238_s23 }
 0x244   : > { %v843_v3 = vpop.permute.xlu1 %842 }
 0x247   : > { %1113 = vrot.lane.b32.xlu0 %v2401_v13, %s2237_s17 }
 0x24c   : > { %v1116_v14 = vpop.permute.xlu1 %1115 }
 0x24d   : > { %v1120_v16 = vmul.f32 %v2420_v21, %v1116_v14 }
 0x24f   : > { %1141 = vrot.lane.b32.xlu0 %v2380_v10, %s2237_s17  ;;  %1125 = vrot.lane.b32.xlu2 %v1120_v16, %s2238_s23 }
 0x254   : > { %v876_v37 = vpop.permute.xlu1 %875 }
 0x255   : > { %v881_v40 = vmul.f32 %v2413_v15, %v876_v37 }
 0x257   : > { %901 = vrot.lane.b32.xlu0 %v2354_v6, %s2238_s23  ;;  %893 = vrot.lane.b32.xlu2 %v2368_v8, %s2242_s20  ;;  %v825_v8 = vpop.permute.xlu0 %824 }
 0x258   : > { %v829_v11 = vmul.f32 %v2418_v20, %v825_v8 }
 0x25a   : > { %v2586_v25 = vadd.f32 %v843_v3, %v829_v11 }
 0x25c   : > { %v904_v42 = vpop.permute.xlu1 %903 }
 0x25d   : > { %v908_v45 = vmul.f32 %v2418_v20, %v904_v42 }
 0x25f   : > { %1296 = vrot.lane.b32.xlu0 %v2396_v12, %s2241_s9  ;;  %887 = vrot.lane.b32.xlu2 %v882_v18, %s2238_s23 }
 0x264   : > { %v1321_v43 = vpop.permute.xlu1 %1320 }
 0x265   : > { %v1326_v44 = vmul.f32 %v2424_v26, %v1321_v43 }
 0x267   : > { %1475 = vrot.lane.b32.xlu0 %v2401_v13, %s2238_s23  ;;  %1286 = vrot.lane.b32.xlu2 %v2359_v7, %s2240_s8 }
 0x26f   : > { %1503 = vrot.lane.b32.xlu0 %v2380_v10, %s2238_s23  ;;  %1314 = vrot.lane.b32.xlu2 %v2396_v12, %s2240_s8 }
 0x277   : > { %1105 = vrot.lane.b32.xlu0 %v2359_v7, %s2239_s24  ;;  %1493 = vrot.lane.b32.xlu2 %v2401_v13, %s2242_s20 }
 0x27f   : > { %1107 = vrot.lane.b32.xlu0 %v2380_v10, %s2239_s24 }
 0x287   : > { %1131 = vrot.lane.b32.xlu0 %v2401_v13, %s2239_s24 }
 0x28f   : > { %1133 = vrot.lane.b32.xlu0 %v2396_v12, %s2239_s24 }
 0x2a9   : > { %v1126_v16 = vpop.permute.xlu2 %1125 }
 0x2b1   : > { %v841_v24 = vpop.permute.xlu0 %840 }
 0x2b2   : > { %v2588_v27 = vadd.f32 %v841_v24, %v828_v23 }
 0x2b4   : > { %v2097_v30 = vpack.i.bf16 %v2586_v25, %v2588_v27 }
 0x2b9   : > { %v1114_v31 = vpop.permute.xlu0 %1113 }
 0x2ba   : > { %v1119_v32 = vmul.f32 %v2424_v26, %v1114_v31  ;;  %v894_v31 = vpop.permute.xlu2 %893 }
 0x2bb   : > { %v899_v37 = vmul.f32 %v2413_v15, %v894_v31  ;;  %v2729_v31 = vld [vmem:[%s503_s11] sm:$0xff] }
 0x2bc   : > { %1123 = vrot.lane.b32.xlu0 %v1119_v32, %s2238_s23  ;;  %1092 = vmatpush.bf16.msra.mxu1 %v2729_v31 }
 0x2c1   : > { %v1142_v33 = vpop.permute.xlu0 %1141 }
 0x2c2   : > { %v1146_v34 = vmul.f32 %v2420_v21, %v1142_v33 }
 0x2c4   : > { %1151 = vrot.lane.b32.xlu0 %v1146_v34, %s2238_s23 }
 0x2c9   : > { %v902_v35 = vpop.permute.xlu0 %901 }
 0x2ca   : > { %v907_v36 = vmul.f32 %v2413_v15, %v902_v35 }
 0x2cc   : > { %867 = vrot.lane.b32.xlu0 %v2354_v6, %s2242_s20  ;;  %911 = vrot.lane.b32.xlu1 %v907_v36, %s2238_s23 }
 0x2d1   : > { %v1297_v38 = vpop.permute.xlu0 %1296 }
 0x2d2   : > { %v1301_v39 = vmul.f32 %v2420_v21, %v1297_v38  ;;  %v888_v38 = vpop.permute.xlu2 %887 }
 0x2d4   : > { %869 = vrot.lane.b32.xlu0 %v2375_v9, %s2242_s20  ;;  %1288 = vrot.lane.b32.xlu1 %v2380_v10, %s2240_s8 }
 0x2d5   : > { %1306 = vrot.lane.b32.xlu2 %v1301_v39, %s2238_s23 }
 0x2d9   : > { %v1476_v41 = vpop.permute.xlu0 %1475 }
 0x2da   : > { %v1481_v6 = vmul.f32 %v2424_v26, %v1476_v41  ;;  %v2671_v43 = vpop.permute.xlu2 %1286 }
 0x2dc   : > { %885 = vrot.lane.b32.xlu0 %v881_v40, %s2238_s23  ;;  %1467 = vrot.lane.b32.xlu1 %v2359_v7, %s2242_s20  ;;  %v1478_v7 = vpop.permute.xlu1 %1477 }
 0x2dd   : > { %1485 = vrot.lane.b32.xlu2 %v1481_v6, %s2238_s23  ;;  %v1482_v47 = vmul.f32 %v2420_v21, %v1478_v7 }
 0x2e1   : > { %v1504_v9 = vpop.permute.xlu0 %1503 }
 0x2e2   : > { %v1508_v4 = vmul.f32 %v2420_v21, %v1504_v9 }
 0x2e4   : > { %2071 = vrot.lane.b32.xlu0 %v2493_v22, %s2242_s20  ;;  %1495 = vrot.lane.b32.xlu1 %v2396_v12, %s2242_s20  ;;  %v651_v12 = vshrl.u32 %v650_v48, 7  ;;  %v1150_v60 = vpop.permute.xlu1 %1149 }
 0x2e5   : > { %2081 = vrot.lane.b32.xlu2 %v2080_v0, %s2240_s8 }
 0x2e6   : > { %v652_v22 = vadd.s32 8, %v651_v12  ;;  %v657_v0 = vcvt.s32.f32 %v651_v12  ;;  %v2243_v12 = vmov -inf  }
 0x2e7   : > { %608 = vst.msk [vmem:[#allocation2 + $0x8] sm:$0xff] %vm606_vm2, %v2243_v12 }
 0x2e8   : > { %v658_v54 = vcvt.s32.f32 %v652_v22  ;;  %v665_v1 = vmul.f32 -1e-09, %v657_v0  ;;  %607 = vst.msk [vmem:[#allocation2] sm:$0xff] %vm606_vm2, %v2243_v12 }
 0x2e9   : > { %v1106_v46 = vpop.permute.xlu0 %1105  ;;  %609 = vst.msk [vmem:[#allocation2 + $0x10] sm:$0xff] %vm606_vm2, %v2243_v12 }
 0x2ea   : > { %v2647_v2 = vmul.f32 %v665_v1, %v664_v53  ;;  %v1111_v17 = vmul.f32 %v2424_v26, %v1106_v46  ;;  %610 = vst.msk [vmem:[#allocation2 + $0x18] sm:$0xff] %vm606_vm2, %v2243_v12 }
 0x2eb   : > { %611 = vst.msk [vmem:[#allocation2 + $0x20] sm:$0xff] %vm606_vm2, %v2243_v12 }
 0x2ec   : > { %913 = vrot.lane.b32.xlu0 %v908_v45, %s2238_s23  ;;  %1330 = vrot.lane.b32.xlu1 %v1326_v44, %s2238_s23  ;;  %v2650_v3 = vadd.f32 %v1009_v51, %v2647_v2  ;;  %v896_v33 = vpop.permute.xlu1 %895  ;;  %612 = vst.msk [vmem:[#allocation2 + $0x28] sm:$0xff] %vm606_vm2, %v2243_v12 }
 0x2ed   : > { %613 = vst.msk [vmem:[#allocation2 + $0x30] sm:$0xff] %vm606_vm2, %v2243_v12 }
 0x2ee   : > { %v1016_v14 = vsel %vm721_vm0, %v2650_v3, -inf  ;;  %614 = vst.msk [vmem:[#allocation2 + $0x38] sm:$0xff] %vm606_vm2, %v2243_v12 }
 0x2f1   : > { %v1108_v49 = vpop.permute.xlu0 %1107 }
 0x2f2   : > { %v1112_v18 = vmul.f32 %v2420_v21, %v1108_v49 }
 0x2f4   : > { %1312 = vrot.lane.b32.xlu0 %v2401_v13, %s2240_s8  ;;  %1487 = vrot.lane.b32.xlu1 %v1482_v47, %s2238_s23  ;;  %v666_v13 = vmul.f32 -1e-09, %v658_v54  ;;  %v1130_v11 = vsub.f32 %v1112_v18, %v1126_v16  ;;  %v1292_v16 = vmul.f32 %v2424_v26, %v2671_v43 }
 0x2f6   : > { %v2634_v58 = vmul.f32 %v666_v13, %v664_v53 }
 0x2f9   : > { %v1132_v56 = vpop.permute.xlu0 %1131 }
 0x2fa   : > { %v1137_v57 = vmul.f32 %v2424_v26, %v1132_v56  ;;  %v2245_v56 = vmov 0.0  }
 0x2fb   : > { %624 = vst.msk [vmem:[#allocation4] sm:$0xff] %vm623_vm1, %v2245_v56 }
 0x2fc   : > { %1469 = vrot.lane.b32.xlu0 %v2380_v10, %s2242_s20  ;;  %2076 = vrot.lane.b32.xlu1 %v2075_v29, %s2238_s23  ;;  %v1011_v10 = vpop.f32.mrf.mxu0  ;;  %v2637_v19 = vadd.f32 %v1150_v60, %v1137_v57  ;;  %615 = vst.msk [vmem:[#allocation3] sm:$0xff] %vm606_vm2, %v2245_v56 }
 0x2fd   : > { %v2640_v28 = vadd.f32 %v1011_v10, %v2634_v58  ;;  %616 = vst.msk [vmem:[#allocation3 + $0x8] sm:$0xff] %vm606_vm2, %v2245_v56 }
 0x2fe   : > { %617 = vst.msk [vmem:[#allocation3 + $0x10] sm:$0xff] %vm606_vm2, %v2245_v56 }
 0x2ff   : > { %v1019_v29 = vsel %vm721_vm0, %v2640_v28, -inf  ;;  %618 = vst.msk [vmem:[#allocation3 + $0x18] sm:$0xff] %vm606_vm2, %v2245_v56 }
 0x300   : > { %619 = vst.msk [vmem:[#allocation3 + $0x20] sm:$0xff] %vm606_vm2, %v2245_v56 }
 0x301   : > { %v1134_v5 = vpop.permute.xlu0 %1133  ;;  %620 = vst.msk [vmem:[#allocation3 + $0x28] sm:$0xff] %vm606_vm2, %v2245_v56 }
 0x302   : > { %v1138_v32 = vmul.f32 %v2420_v21, %v1134_v5  ;;  %621 = vst.msk [vmem:[#allocation3 + $0x30] sm:$0xff] %vm606_vm2, %v2245_v56 }
 0x303   : > { %622 = vst.msk [vmem:[#allocation3 + $0x38] sm:$0xff] %vm606_vm2, %v2245_v56 }
 0x304   : > { %1304 = vrot.lane.b32.xlu0 %v1300_v52, %s2238_s23  ;;  %625 = vst.msk [vmem:[#allocation4 + $0x8] sm:$0xff] %vm623_vm1, %v2245_v56 }
 0x305   : > { %626 = vst.msk [vmem:[#allocation4 + $0x10] sm:$0xff] %vm623_vm1, %v2245_v56 }
 0x306   : > { %627 = vst.msk [vmem:[#allocation4 + $0x18] sm:$0xff] %vm623_vm1, %v2245_v56 }
 0x307   : > { %628 = vst.msk [vmem:[#allocation4 + $0x20] sm:$0xff] %vm623_vm1, %v2245_v56 }
 0x308   : > { %629 = vst.msk [vmem:[#allocation4 + $0x28] sm:$0xff] %vm623_vm1, %v2245_v56 }
 0x309   : > { %630 = vst.msk [vmem:[#allocation4 + $0x30] sm:$0xff] %vm623_vm1, %v2245_v56 }
 0x30a   : > { %631 = vst.msk [vmem:[#allocation4 + $0x38] sm:$0xff] %vm623_vm1, %v2245_v56 }
 0x30c   : > { %1332 = vrot.lane.b32.xlu0 %v1327_v61, %s2238_s23 }
 0x30e   : > { %1020 = vmax.xlane.f32.xlu2 %v1019_v29 }
 0x314   : > { %1511 = vrot.lane.b32.xlu0 %v1507_v63, %s2238_s23 }
 0x326   : > { %1017 = vmax.xlane.f32.xlu1 %v1016_v14  ;;  %1513 = vrot.lane.b32.xlu2 %v1508_v4, %s2238_s23 }
 0x32e   : > { %v1124_v8 = vpop.permute.xlu0 %1123 }
 0x32f   : > { %v1129_v23 = vsub.f32 %v1111_v17, %v1124_v8 }
 0x331   : > { %v2087_v24 = vpack.i.bf16 %v1130_v11, %v1129_v23 }
 0x333   : > { %2088 = vrot.lane.b32.xlu2 %v2087_v24, %s2242_s20 }
 0x336   : > { %v1152_v34 = vpop.permute.xlu0 %1151 }
 0x337   : > { %v2660_v35 = vadd.f32 %v1152_v34, %v1138_v32  ;;  %v2731_v34 = vld [vmem:[#allocation2 + $0x8] sm:$0xff] }
 0x339   : > { %v2092_v36 = vpack.i.bf16 %v2660_v35, %v2637_v19 }
 0x33b   : > { %2098 = vrot.lane.b32.xlu2 %v2097_v30, %s2241_s9  ;;  %v2677_v30 = vpop.permute.xlu2 %1314 }
 0x33c   : > { %v1319_v24 = vmul.f32 %v2420_v21, %v2677_v30 }
 0x33e   : > { %v912_v39 = vpop.permute.xlu1 %911  ;;  %v868_v40 = vpop.permute.xlu0 %867 }
 0x33f   : > { %v2669_v41 = vadd.f32 %v912_v39, %v899_v37  ;;  %v873_v9 = vmul.f32 %v2413_v15, %v868_v40  ;;  %v900_v15 = vmul.f32 %v2418_v20, %v896_v33 }
 0x343   : > { %v2684_v22 = vpop.permute.xlu2 %1493 }
 0x346   : > { %v1289_v42 = vpop.permute.xlu1 %1288  ;;  %v870_v6 = vpop.permute.xlu0 %869 }
 0x347   : > { %v874_v44 = vmul.f32 %v2418_v20, %v870_v6  ;;  %v1293_v5 = vmul.f32 %v2420_v21, %v1289_v42  ;;  %v1499_v6 = vmul.f32 %v2424_v26, %v2684_v22 }
 0x349   : > { %v892_v25 = vsub.f32 %v874_v44, %v888_v38 }
 0x34b   : > { %v1307_v20 = vpop.permute.xlu2 %1306 }
 0x34c   : > { %v1311_v18 = vsub.f32 %v1293_v5, %v1307_v20 }
 0x34e   : > { %v2675_v45 = vpop.permute.xlu1 %1467  ;;  %v886_v7 = vpop.permute.xlu0 %885 }
 0x34f   : > { %v891_v27 = vsub.f32 %v873_v9, %v886_v7 }
 0x351   : > { %v2679_v46 = vpack.i.bf16 %v892_v25, %v891_v27  ;;  %v1473_v27 = vmul.f32 %v2424_v26, %v2675_v45 }
 0x353   : > { %v1486_v60 = vpop.permute.xlu2 %1485 }
 0x354   : > { %v1491_v12 = vsub.f32 %v1473_v27, %v1486_v60 }
 0x356   : > { %v2681_v47 = vpop.permute.xlu1 %1495  ;;  %v2072_v48 = vpop.permute.xlu0 %2071 }
 0x357   : > { %v2074_v61 = vunpack.i.h.bf16 %v2072_v48  ;;  %v2073_v29 = vunpack.i.l.bf16 %v2072_v48  ;;  %v1500_v43 = vmul.f32 %v2420_v21, %v2681_v47 }
 0x35b   : > { %v2082_v11 = vpop.permute.xlu2 %2081 }
 0x35c   : > { %v2083_v45 = vunpack.i.l.bf16 %v2082_v11 }
 0x35e   : > { %v1331_v49 = vpop.permute.xlu1 %1330  ;;  %v914_v50 = vpop.permute.xlu0 %913 }
 0x35f   : > { %v2691_v51 = vadd.f32 %v914_v50, %v900_v15  ;;  %v2084_v15 = vunpack.i.h.bf16 %v2082_v11 }
 0x361   : > { %v2107_v54 = vpack.i.bf16 %v2691_v51, %v2669_v41 }
 0x366   : > { %v2698_v52 = vpop.permute.xlu1 %1487  ;;  %v1313_v13 = vpop.permute.xlu0 %1312 }
 0x367   : > { %v1318_v53 = vmul.f32 %v2424_v26, %v1313_v13 }
 0x369   : > { %v2703_v57 = vadd.f32 %v1331_v49, %v1318_v53 }
 0x36e   : > { %v2077_v59 = vpop.permute.xlu1 %2076  ;;  %v1470_v10 = vpop.permute.xlu0 %1469 }
 0x36f   : > { %v2079_v62 = vunpack.i.h.bf16 %v2077_v59  ;;  %v2078_v63 = vunpack.i.l.bf16 %v2077_v59  ;;  %v1474_v44 = vmul.f32 %v2420_v21, %v1470_v10  ;;  %v2757_v21 = vld [vmem:[#allocation2] sm:$0xff] }
 0x371   : > { %v793_v0 = vsel %vm721_vm0, %v2073_v29, %v2078_v63  ;;  %v794_v1 = vsel %vm721_vm0, %v2074_v61, %v2079_v62  ;;  %v1492_v48 = vsub.f32 %v1474_v44, %v2698_v52 }
 0x372   : > { %v795_v4 = vpack.c.bf16 %v794_v1, %v793_v0 }
 0x373   : > { %v2122_v22 = vpack.i.bf16 %v1492_v48, %v1491_v12 }
 0x374   : > { %v1180_v14 = vsel %vm623_vm1, %v795_v4, 0 }
 0x375   : > { %1189 = vmatpush.bf16.xpose.msra.mxu2 %v1180_v14 }
 0x376   : > { %v1305_v17 = vpop.permute.xlu0 %1304 }
 0x377   : > { %v1310_v8 = vsub.f32 %v1292_v16, %v1305_v17 }
 0x379   : > { %v2112_v23 = vpack.i.bf16 %v1311_v18, %v1310_v8 }
 0x37b   : > { %2113 = vrot.lane.b32.xlu2 %v2112_v23, %s2240_s8 }
 0x37e   : > { %v1333_v32 = vpop.permute.xlu0 %1332 }
 0x37f   : > { %v1337_v33 = vadd.f32 %v1333_v32, %v1319_v24 }
 0x381   : > { %v2117_v37 = vpack.i.bf16 %v1337_v33, %v2703_v57  ;;  %v1021_v38 = vpop.xlane.xlu2 %1020 }
 0x382   : > { %v2736_v39 = vmax.f32 %v2731_v34, %v1021_v38 }
 0x384   : > { %v1025_v40 = vsub.f32 %v2731_v34, %v2736_v39  ;;  %1104 = vst.msk [vmem:[#allocation2 + $0x8] sm:$0xff] %vm606_vm2, %v2736_v39  ;;  %1037 = vperm.xlu0 %2086, %v2736_v39  }
 0x386   : > { %v1512_v42 = vpop.permute.xlu0 %1511 }
 0x387   : > { %v1517_v7 = vadd.f32 %v1512_v42, %v1499_v6 }
 0x389   : > { %v1514_v9 = vpop.permute.xlu2 %1513 }
 0x38a   : > { %v1518_v25 = vadd.f32 %v1514_v9, %v1500_v43 }
 0x38c   : > { %v2127_v30 = vpack.i.bf16 %v1518_v25, %v1517_v7  ;;  %2108 = vrot.lane.b32.xlu0 %v2107_v54, %s2237_s17 }
 0x38e   : > { %2128 = vrot.lane.b32.xlu2 %v2127_v30, %s2237_s17 }
 0x391   : > { %v2089_v47 = vpop.permute.xlu2 %2088 }
 0x392   : > { %v2091_v62 = vunpack.i.h.bf16 %v2089_v47  ;;  %v2090_v19 = vunpack.i.l.bf16 %v2089_v47 }
 0x394   : > { %2123 = vrot.lane.b32.xlu0 %v2122_v22, %s2239_s24 }
 0x399   : > { %v2099_v49 = vpop.permute.xlu2 %2098  ;;  %v1018_v26 = vpop.xlane.xlu1 %1017 }
 0x39a   : > { %v2101_v50 = vunpack.i.h.bf16 %v2099_v49  ;;  %v2100_v55 = vunpack.i.l.bf16 %v2099_v49  ;;  %v2760_v41 = vmax.f32 %v2757_v21, %v1018_v26 }
 0x39c   : > { %v1024_v51 = vsub.f32 %v2757_v21, %v2760_v41  ;;  %1103 = vst.msk [vmem:[#allocation2] sm:$0xff] %vm606_vm2, %v2760_v41  ;;  %1032 = vperm.xlu1 %2085, %v2760_v41   ;;  %v864_v54 = vsel %vm721_vm0, %v2083_v45, %v2100_v55  ;;  %v865_v20 = vsel %vm721_vm0, %v2084_v15, %v2101_v50 }
 0x39d   : > { %v866_v52 = vpack.c.bf16 %v865_v20, %v864_v54 }
 0x39f   : > { %v1361_v13 = vsel %vm623_vm1, %v866_v52, 0 }
 0x3a0   : > { %1370 = vmatpush.bf16.xpose.msrb.mxu1 %v1361_v13 }
 0x3a4   : > { %2093 = vrot.lane.b32.xlu1 %v2092_v36, %s2238_s23 }
 0x3ac   : > { %2103 = vrot.lane.b32.xlu1 %v2679_v46, %s2239_s24 }
 0x3b4   : > { %2118 = vrot.lane.b32.xlu1 %v2117_v37, %s2241_s9 }
 0x3d5   : > { %v2114_v1 = vpop.permute.xlu2 %2113 }
 0x3d6   : > { %v2116_v43 = vunpack.i.h.bf16 %v2114_v1  ;;  %v2115_v9 = vunpack.i.l.bf16 %v2114_v1 }
 0x3e8   : > { %v2129_v24 = vpop.permute.xlu2 %2128 }
 0x3e9   : > { %v2131_v42 = vunpack.i.h.bf16 %v2129_v24  ;;  %v2130_v6 = vunpack.i.l.bf16 %v2129_v24  ;;  %v2844_v24 = vld [vmem:[#allocation2 + $0x38] sm:$0xff] }
 0x3f6   : > { %v1038_v53 = vpop.permute.xlu0 %1037 }
 0x3f7   : > { %v1041_v56 = vsub.f32 %v2640_v28, %v1038_v53 }
 0x3f9   : > { %v1044_v57 = vmul.f32 1.442695, %v1041_v56  ;;  %v1026_v56 = vmul.f32 1.442695, %v1024_v51 }
 0x3fb   : > { %2148 = vpow2.f32 %v1044_v57 }
 0x3fe   : > { %v2109_v61 = vpop.permute.xlu0 %2108 }
 0x3ff   : > { %v2111_v14 = vunpack.i.h.bf16 %v2109_v61  ;;  %v2110_v16 = vunpack.i.l.bf16 %v2109_v61 }
 0x401   : > { %v2149_v63 = vpop.eup %2148 }
 0x406   : > { %v2124_v8 = vpop.permute.xlu0 %2123 }
 0x407   : > { %v2126_v33 = vunpack.i.h.bf16 %v2124_v8  ;;  %v2125_v37 = vunpack.i.l.bf16 %v2124_v8  ;;  %v1062_v8 = vld [vmem:[#allocation4 + $0x8] sm:$0xff] }
 0x409   : > { %v1535_v7 = vsel %vm721_vm0, %v2125_v37, %v2130_v6  ;;  %v1536_v25 = vsel %vm721_vm0, %v2126_v33, %v2131_v42 }
 0x40a   : > { %v1537_v47 = vpack.c.bf16 %v1536_v25, %v1535_v7 }
 0x40e   : > { %v1033_v59 = vpop.permute.xlu1 %1032 }
 0x40f   : > { %v1040_v10 = vsub.f32 %v2650_v3, %v1033_v59 }
 0x411   : > { %v1042_v60 = vmul.f32 1.442695, %v1040_v10  ;;  %v1053_v10 = vsel %vm721_vm0, %v2149_v63, 0.0 }
 0x413   : > { %2150 = vpow2.f32 %v1042_v60 }
 0x414   : > { %2152 = vpow2.f32 %v1026_v56 }
 0x416   : > { %v2094_v29 = vpop.permute.xlu1 %2093 }
 0x417   : > { %v2096_v35 = vunpack.i.h.bf16 %v2094_v29  ;;  %v2095_v36 = vunpack.i.l.bf16 %v2094_v29  ;;  %v1028_v29 = vmul.f32 1.442695, %v1025_v40  ;;  %v1197_v40 = vld [vmem:[#allocation2 + $0x10] sm:$0xff] }
 0x419   : > { %v2779_v46 = vpop.eup %2150  ;;  %v1173_v0 = vsel %vm721_vm0, %v2090_v19, %v2095_v36  ;;  %v1174_v28 = vsel %vm721_vm0, %v2091_v62, %v2096_v35  ;;  %2154 = vpow2.f32 %v1028_v29 }
 0x41a   : > { %v1075_v4 = vpack.c.bf16 %v2149_v63, %v2779_v46  ;;  %v1175_v3 = vpack.c.bf16 %v1174_v28, %v1173_v0  ;;  %v2153_v41 = vpop.eup %2152  ;;  %v1050_v62 = vsel %vm721_vm0, %v2779_v46, 0.0  ;;  %v1198_v46 = vld [vmem:[#allocation2 + $0x18] sm:$0xff]  ;;  %v1061_v0 = vld [vmem:[#allocation4] sm:$0xff] }
 0x41c   : > { %1985 = vmatmul.msk.bf16.vlgmr.msra.gmra.mxu1 %vm721_vm0, %v1075_v4  ;;  %1986 = vmatmul.msk.bf16.vlgmr.msra.gmra.mxu2 %vm623_vm1, %v1175_v3  ;;  %v2837_v4 = vld [vmem:[#allocation2 + $0x30] sm:$0xff] }
 0x41e   : > { %v2104_v5 = vpop.permute.xlu1 %2103 }
 0x41f   : > { %v2106_v17 = vunpack.i.h.bf16 %v2104_v5  ;;  %v2105_v18 = vunpack.i.l.bf16 %v2104_v5  ;;  %v2155_v19 = vpop.eup %2154 }
 0x421   : > { %v935_v11 = vsel %vm721_vm0, %v2105_v18, %v2110_v16  ;;  %v936_v23 = vsel %vm721_vm0, %v2106_v17, %v2111_v14 }
 0x422   : > { %v937_v32 = vpack.c.bf16 %v936_v23, %v935_v11  ;;  %v1047_v11 = vld [vmem:[#allocation3 + $0x8] sm:$0xff] }
 0x423   : > { %v1049_v33 = vmul.f32 %v2155_v19, %v1047_v11 }
 0x424   : > { %v1542_v38 = vsel %vm623_vm1, %v937_v32, 0 }
 0x425   : > { %1551 = vmatpush.bf16.xpose.msrb.mxu0 %v1542_v38 }
 0x426   : > { %v2119_v44 = vpop.permute.xlu1 %2118 }
 0x427   : > { %v2121_v27 = vunpack.i.h.bf16 %v2119_v44  ;;  %v2120_v30 = vunpack.i.l.bf16 %v2119_v44  ;;  %v1378_v44 = vld [vmem:[#allocation2 + $0x20] sm:$0xff] }
 0x429   : > { %v1355_v48 = vsel %vm721_vm0, %v2116_v43, %v2121_v27  ;;  %v1354_v12 = vsel %vm721_vm0, %v2115_v9, %v2120_v30  ;;  %v1046_v9 = vld [vmem:[#allocation3] sm:$0xff] }
 0x42a   : > { %v1356_v22 = vpack.c.bf16 %v1355_v48, %v1354_v12  ;;  %v1048_v7 = vmul.f32 %v2153_v41, %v1046_v9 }
 0x42c   : > { %1988 = vmatmul.msk.bf16.vlgmr.msrb.gmra.mxu1 %vm623_vm1, %v1356_v22  ;;  %1990 = vmatmul.msk.bf16.vlgmr.msrb.gmra.mxu0 %vm623_vm1, %v1537_v47  ;;  %v1379_v22 = vld [vmem:[#allocation2 + $0x28] sm:$0xff] }
 0x499   : > { %v1094_v26 = vpop.f32.mrf.mxu1 }
 0x49f   : > { %v1191_v15 = vpop.f32.mrf.mxu2 }
 0x4a0   : > { %v2796_v49 = vadd.f32 %v1191_v15, %v2647_v2 }
 0x4a1   : > { %v1096_v13 = vpop.f32.mrf.mxu1 }
 0x4a2   : > { %v1199_v45 = vsel %vm721_vm0, %v2796_v49, -inf }
 0x4a3   : > { %1200 = vmax.xlane.f32.xlu2 %v1199_v45 }
 0x4a7   : > { %v1193_v50 = vpop.f32.mrf.mxu2 }
 0x4a8   : > { %v2801_v55 = vadd.f32 %v1193_v50, %v2634_v58 }
 0x4a9   : > { %v1553_v54 = vpop.f32.mrf.mxu0  ;;  %v1372_v61 = vpop.f32.mrf.mxu1 }
 0x4aa   : > { %v2804_v20 = vadd.f32 %v1553_v54, %v2647_v2  ;;  %v1202_v52 = vsel %vm721_vm0, %v2801_v55, -inf  ;;  %v2823_v21 = vadd.f32 %v1372_v61, %v2647_v2 }
 0x4ab   : > { %1203 = vmax.xlane.f32.xlu1 %v1202_v52 }
 0x4ac   : > { %v1561_v53 = vsel %vm721_vm0, %v2804_v20, -inf  ;;  %v1380_v51 = vsel %vm721_vm0, %v2823_v21, -inf }
 0x4ad   : > { %1562 = vmax.xlane.f32.xlu0 %v1561_v53 }
 0x4b1   : > { %v1555_v57 = vpop.f32.mrf.mxu0  ;;  %v1374_v34 = vpop.f32.mrf.mxu1 }
 0x4b2   : > { %v2814_v59 = vadd.f32 %v1555_v57, %v2634_v58  ;;  %v2832_v2 = vadd.f32 %v1374_v34, %v2634_v58 }
 0x4b4   : > { %v1564_v60 = vsel %vm721_vm0, %v2814_v59, -inf  ;;  %v1383_v39 = vsel %vm721_vm0, %v2832_v2, -inf }
 0x4b5   : > { %1054 = vadd.xlane.f32.xlu0 %v1053_v10  ;;  %1565 = vmax.xlane.f32.xlu1 %v1564_v60 }
 0x4bb   : > { %1065 = vperm.xlu2 %2132, %v2153_v41  }
 0x4bd   : > { %1381 = vmax.xlane.f32.xlu0 %v1380_v51  ;;  %1051 = vadd.xlane.f32.xlu1 %v1050_v62 }
 0x4c3   : > { %1070 = vperm.xlu2 %2132, %v2155_v19  }
 0x4d6   : > { %1260 = vrot.lane.b32.xlu1 %v2729_v31, %s2242_s20 }
 0x500   : > { %1384 = vmax.xlane.f32.xlu1 %v1383_v39 }
 0x516   : > { %v1201_v35 = vpop.xlane.xlu2 %1200 }
 0x517   : > { %v1205_v36 = vmax.f32 %v1197_v40, %v1201_v35 }
 0x519   : > { %v1207_v63 = vsub.f32 %v1197_v40, %v1205_v36  ;;  %1284 = vst.msk [vmem:[#allocation2 + $0x10] sm:$0xff] %vm606_vm2, %v1205_v36  ;;  %1215 = vperm.xlu0 %2086, %v1205_v36  }
 0x51b   : > { %v1209_v52 = vmul.f32 1.442695, %v1207_v63 }
 0x51e   : > { %v1204_v28 = vpop.xlane.xlu1 %1203  ;;  %v1066_v1 = vpop.permute.xlu2 %1065 }
 0x51f   : > { %v1206_v3 = vmax.f32 %v1198_v46, %v1204_v28  ;;  %v1073_v58 = vmul.f32 %v1066_v1, %v1061_v0 }
 0x520   : > { %v1563_v5 = vpop.xlane.xlu0 %1562 }
 0x521   : > { %v1208_v14 = vsub.f32 %v1198_v46, %v1206_v3  ;;  %1285 = vst.msk [vmem:[#allocation2 + $0x18] sm:$0xff] %vm606_vm2, %v1206_v3  ;;  %v1099_v16 = vadd.f32 %v1094_v26, %v1073_v58  ;;  %v1567_v17 = vmax.f32 %v2837_v4, %v1563_v5  ;;  %1220 = vperm.xlu2 %2132, %v1206_v3  }
 0x523   : > { %1101 = vst.msk [vmem:[#allocation4] sm:$0xff] %vm623_vm1, %v1099_v16  ;;  %v1569_v18 = vsub.f32 %v2837_v4, %v1567_v17  ;;  %v1211_v56 = vmul.f32 1.442695, %v1208_v14 }
 0x524   : > { %1646 = vst.msk [vmem:[#allocation2 + $0x30] sm:$0xff] %vm606_vm2, %v1567_v17 }
 0x525   : > { %v1571_v29 = vmul.f32 1.442695, %v1569_v18 }
 0x526   : > { %v1071_v23 = vpop.permute.xlu2 %1070 }
 0x527   : > { %v1074_v32 = vmul.f32 %v1071_v23, %v1062_v8 }
 0x528   : > { %v1055_v37 = vpop.xlane.xlu0 %1054  ;;  %v1566_v38 = vpop.xlane.xlu1 %1565 }
 0x529   : > { %v1100_v42 = vadd.f32 %v1096_v13, %v1074_v32  ;;  %v1057_v6 = vadd.f32 %v1055_v37, %v1049_v33  ;;  %v2847_v43 = vmax.f32 %v2844_v24, %v1566_v38 }
 0x52b   : > { %1102 = vst.msk [vmem:[#allocation4 + $0x8] sm:$0xff] %vm623_vm1, %v1100_v42  ;;  %v1570_v0 = vsub.f32 %v2844_v24, %v2847_v43  ;;  %v1231_v42 = vld [vmem:[#allocation3 + $0x18] sm:$0xff] }
 0x52c   : > { %1060 = vst.msk [vmem:[#allocation3 + $0x8] sm:$0xff] %vm606_vm2, %v1057_v6 }
 0x52d   : > { %1647 = vst.msk [vmem:[#allocation2 + $0x38] sm:$0xff] %vm606_vm2, %v2847_v43  ;;  %v1573_v28 = vmul.f32 1.442695, %v1570_v0 }
 0x530   : > { %v1382_v25 = vpop.xlane.xlu0 %1381  ;;  %v1052_v27 = vpop.xlane.xlu1 %1051 }
 0x531   : > { %v1386_v30 = vmax.f32 %v1378_v44, %v1382_v25  ;;  %v1056_v48 = vadd.f32 %v1052_v27, %v1048_v7  ;;  %v1230_v27 = vld [vmem:[#allocation3 + $0x10] sm:$0xff] }
 0x533   : > { %v1388_v12 = vsub.f32 %v1378_v44, %v1386_v30  ;;  %1465 = vst.msk [vmem:[#allocation2 + $0x20] sm:$0xff] %vm606_vm2, %v1386_v30  ;;  %1396 = vperm.xlu2 %2132, %v1386_v30  }
 0x534   : > { %1059 = vst.msk [vmem:[#allocation3] sm:$0xff] %vm606_vm2, %v1056_v48 }
 0x535   : > { %v1390_v35 = vmul.f32 1.442695, %v1388_v12 }
 0x53b   : > { %1577 = vperm.xlu2 %2132, %v1567_v17   ;;  %v1653_v4 = vld [vmem:[#allocation3] sm:$0xff] }
 0x543   : > { %1441 = vrot.lane.b32.xlu2 %v2729_v31, %s2240_s8 }
 0x548   : > { %v1261_v47 = vpop.permute.xlu1 %1260 }
 0x549   : > { %1273 = vmatpush.bf16.msra.mxu3 %v1261_v47 }
 0x573   : > { %v1385_v15 = vpop.xlane.xlu1 %1384 }
 0x574   : > { %v1387_v26 = vmax.f32 %v1379_v22, %v1385_v15 }
 0x576   : > { %1466 = vst.msk [vmem:[#allocation2 + $0x28] sm:$0xff] %vm606_vm2, %v1387_v26  ;;  %1401 = vperm.xlu1 %2085, %v1387_v26   ;;  %v1389_v63 = vsub.f32 %v1379_v22, %v1387_v26  ;;  %v1592_v22 = vld [vmem:[#allocation3 + $0x30] sm:$0xff] }
 0x578   : > { %v1392_v46 = vmul.f32 1.442695, %v1389_v63 }
 0x57b   : > { %v1221_v45 = vpop.permute.xlu2 %1220 }
 0x57c   : > { %v1224_v50 = vsub.f32 %v2801_v55, %v1221_v45 }
 0x57e   : > { %v1227_v54 = vmul.f32 1.442695, %v1224_v50  ;;  %1582 = vperm.xlu1 %2085, %v2847_v43  }
 0x580   : > { %2156 = vpow2.f32 %v1227_v54 }
 0x581   : > { %2158 = vpow2.f32 %v1209_v52  ;;  %v1245_v52 = vld [vmem:[#allocation4 + $0x10] sm:$0xff] }
 0x582   : > { %2160 = vpow2.f32 %v1211_v56 }
 0x586   : > { %v2157_v13 = vpop.eup %2156  ;;  %1622 = vrot.lane.b32.xlu1 %v2729_v31, %s2239_s24 }
 0x587   : > { %v1237_v53 = vsel %vm721_vm0, %v2157_v13, 0.0  ;;  %v2864_v60 = vpop.eup %2158 }
 0x588   : > { %1238 = vadd.xlane.f32.xlu2 %v1237_v53  ;;  %v2161_v41 = vpop.eup %2160  ;;  %v1232_v30 = vmul.f32 %v2864_v60, %v1230_v27  ;;  %v1654_v53 = vld [vmem:[#allocation3 + $0x8] sm:$0xff] }
 0x589   : > { %v1233_v43 = vmul.f32 %v2161_v41, %v1231_v42 }
 0x58b   : > { %v1216_v57 = vpop.permute.xlu0 %1215 }
 0x58c   : > { %v1223_v10 = vsub.f32 %v2796_v49, %v1216_v57 }
 0x58d   : > { %v1397_v55 = vpop.permute.xlu2 %1396 }
 0x58e   : > { %v1225_v61 = vmul.f32 1.442695, %v1223_v10  ;;  %1249 = vperm.xlu1 %2085, %v2864_v60   ;;  %v1404_v58 = vsub.f32 %v2823_v21, %v1397_v55  ;;  %v1246_v60 = vld [vmem:[#allocation4 + $0x18] sm:$0xff] }
 0x590   : > { %2162 = vpow2.f32 %v1225_v61  ;;  %v1406_v5 = vmul.f32 1.442695, %v1404_v58 }
 0x591   : > { %2164 = vpow2.f32 %v1571_v29 }
 0x595   : > { %v1578_v51 = vpop.permute.xlu2 %1577 }
 0x596   : > { %v2163_v31 = vpop.eup %2162  ;;  %v1585_v62 = vsub.f32 %v2804_v20, %v1578_v51  ;;  %1254 = vperm.xlu1 %2085, %v2161_v41  }
 0x597   : > { %v1234_v19 = vsel %vm721_vm0, %v2163_v31, 0.0  ;;  %v1259_v34 = vpack.c.bf16 %v2157_v13, %v2163_v31  ;;  %v2870_v39 = vpop.eup %2164 }
 0x598   : > { %v1587_v49 = vmul.f32 1.442695, %v1585_v62  ;;  %1235 = vadd.xlane.f32.xlu0 %v1234_v19  ;;  %v1594_v15 = vmul.f32 %v2870_v39, %v1592_v22  ;;  %v1411_v62 = vld [vmem:[#allocation3 + $0x20] sm:$0xff] }
 0x599   : > { %1987 = vmatmul.msk.bf16.vlgmr.msra.gmra.mxu3 %vm721_vm0, %v1259_v34 }
 0x59a   : > { %2166 = vpow2.f32 %v1587_v49 }
 0x59b   : > { %2168 = vpow2.f32 %v1390_v35 }
 0x59c   : > { %2170 = vpow2.f32 %v1392_v46  ;;  %v1412_v46 = vld [vmem:[#allocation3 + $0x28] sm:$0xff] }
 0x59d   : > { %2172 = vpow2.f32 %v1573_v28  ;;  %v1442_v17 = vpop.permute.xlu2 %1441 }
 0x59e   : > { %1611 = vperm.xlu1 %2085, %v2870_v39   ;;  %2174 = vrcp.f32 %v1653_v4  ;;  %1454 = vmatpush.bf16.msrb.mxu3 %v1442_v17  ;;  %v1426_v17 = vld [vmem:[#allocation4 + $0x20] sm:$0xff] }
 0x59f   : > { %2176 = vpow2.f32 %v1406_v5 }
 0x5a0   : > { %v2167_v40 = vpop.eup %2166 }
 0x5a1   : > { %v1596_v36 = vsel %vm721_vm0, %v2167_v40, 0.0  ;;  %v2874_v20 = vpop.eup %2168 }
 0x5a2   : > { %1597 = vadd.xlane.f32.xlu2 %v1596_v36  ;;  %v2879_v1 = vpop.eup %2170  ;;  %v1413_v19 = vmul.f32 %v2874_v20, %v1411_v62 }
 0x5a3   : > { %v2882_v3 = vpop.eup %2172  ;;  %v1414_v0 = vmul.f32 %v2879_v1, %v1412_v46 }
 0x5a4   : > { %v2175_v14 = vpop.eup %2174 }
 0x5a5   : > { %v2177_v16 = vpop.eup %2176 }
 0x5a6   : > { %v1415_v18 = vsel %vm721_vm0, %v2177_v16, 0.0 }
 0x5ac   : > { %1430 = vperm.xlu0 %2086, %v2874_v20   ;;  %v1593_v20 = vld [vmem:[#allocation3 + $0x38] sm:$0xff] }
 0x5ad   : > { %v1595_v58 = vmul.f32 %v2882_v3, %v1593_v20 }
 0x5ba   : > { %1435 = vperm.xlu2 %2132, %v2879_v1  }
 0x5c2   : > { %1616 = vperm.xlu2 %2132, %v2882_v3  }
 0x5ca   : > { %1659 = vperm.xlu2 %2132, %v2175_v14  }
 0x5d6   : > { %1416 = vadd.xlane.f32.xlu0 %v1415_v18 }
 0x5e8   : > { %v1402_v8 = vpop.permute.xlu1 %1401 }
 0x5e9   : > { %v1405_v11 = vsub.f32 %v2832_v2, %v1402_v8 }
 0x5eb   : > { %v1408_v23 = vmul.f32 1.442695, %v1405_v11 }
 0x5ed   : > { %2178 = vpow2.f32 %v1408_v23 }
 0x5f0   : > { %v1583_v24 = vpop.permute.xlu1 %1582 }
 0x5f1   : > { %v1586_v32 = vsub.f32 %v2814_v59, %v1583_v24 }
 0x5f3   : > { %v2179_v33 = vpop.eup %2178  ;;  %v1589_v21 = vmul.f32 1.442695, %v1586_v32  ;;  %v1607_v32 = vld [vmem:[#allocation4 + $0x30] sm:$0xff] }
 0x5f4   : > { %v1418_v37 = vsel %vm721_vm0, %v2179_v33, 0.0  ;;  %v1440_v38 = vpack.c.bf16 %v2179_v33, %v2177_v16  ;;  %v1427_v33 = vld [vmem:[#allocation4 + $0x28] sm:$0xff] }
 0x5f5   : > { %2180 = vpow2.f32 %v1589_v21  ;;  %1419 = vadd.xlane.f32.xlu1 %v1418_v37 }
 0x5f6   : > { %1989 = vmatmul.msk.bf16.vlgmr.msrb.gmra.mxu3 %vm721_vm0, %v1440_v38 }
 0x5f8   : > { %v1623_v6 = vpop.permute.xlu1 %1622 }
 0x5f9   : > { %1635 = vmatpush.bf16.msrb.mxu2 %v1623_v6 }
 0x5fb   : > { %v2181_v9 = vpop.eup %2180  ;;  %v1239_v2 = vpop.xlane.xlu2 %1238 }
 0x5fc   : > { %v1241_v44 = vadd.f32 %v1239_v2, %v1233_v43  ;;  %v1599_v7 = vsel %vm721_vm0, %v2181_v9, 0.0  ;;  %v1621_v25 = vpack.c.bf16 %v2181_v9, %v2167_v40  ;;  %v1608_v9 = vld [vmem:[#allocation4 + $0x38] sm:$0xff] }
 0x5fd   : > { %1600 = vadd.xlane.f32.xlu0 %v1599_v7 }
 0x5fe   : > { %1243 = vst.msk [vmem:[#allocation3 + $0x18] sm:$0xff] %vm606_vm2, %v1241_v44  ;;  %1991 = vmatmul.msk.bf16.vlgmr.msrb.gmra.mxu2 %vm721_vm0, %v1621_v25 }
 0x600   : > { %v1250_v50 = vpop.permute.xlu1 %1249 }
 0x601   : > { %v1257_v13 = vmul.f32 %v1250_v50, %v1245_v52 }
 0x605   : > { %v1672_v59 = vld [vmem:[#allocation3 + $0x18] sm:$0xff] }
 0x606   : > { %2182 = vrcp.f32 %v1672_v59 }
 0x608   : > { %v1255_v55 = vpop.permute.xlu1 %1254 }
 0x609   : > { %v1258_v61 = vmul.f32 %v1255_v55, %v1246_v60 }
 0x60b   : > { %v1236_v48 = vpop.xlane.xlu0 %1235 }
 0x60c   : > { %v2183_v12 = vpop.eup %2182  ;;  %v1240_v47 = vadd.f32 %v1236_v48, %v1232_v30 }
 0x60e   : > { %1242 = vst.msk [vmem:[#allocation3 + $0x10] sm:$0xff] %vm606_vm2, %v1240_v47  ;;  %1682 = vperm.xlu1 %2085, %v2183_v12  }
 0x610   : > { %v1612_v36 = vpop.permute.xlu1 %1611 }
 0x611   : > { %v1619_v3 = vmul.f32 %v1612_v36, %v1607_v32 }
 0x615   : > { %v1598_v26 = vpop.xlane.xlu2 %1597  ;;  %v1671_v45 = vld [vmem:[#allocation3 + $0x10] sm:$0xff] }
 0x616   : > { %v1602_v54 = vadd.f32 %v1598_v26, %v1594_v15  ;;  %2184 = vrcp.f32 %v1671_v45 }
 0x617   : > { %2186 = vrcp.f32 %v1654_v53 }
 0x618   : > { %1604 = vst.msk [vmem:[#allocation3 + $0x30] sm:$0xff] %vm606_vm2, %v1602_v54 }
 0x61c   : > { %v2185_v56 = vpop.eup %2184  ;;  %v1275_v57 = vpop.f32.mrf.mxu3 }
 0x61d   : > { %v1280_v10 = vadd.f32 %v1275_v57, %v1257_v13  ;;  %1677 = vperm.xlu0 %2086, %v2185_v56   ;;  %v2187_v29 = vpop.eup %2186  ;;  %v1436_v24 = vpop.permute.xlu2 %1435 }
 0x61e   : > { %v1431_v31 = vpop.permute.xlu0 %1430  ;;  %v1439_v21 = vmul.f32 %v1436_v24, %v1427_v33 }
 0x61f   : > { %1282 = vst.msk [vmem:[#allocation4 + $0x10] sm:$0xff] %vm623_vm1, %v1280_v10  ;;  %v1707_v40 = vld [vmem:[#allocation3 + $0x30] sm:$0xff]  ;;  %v1438_v18 = vmul.f32 %v1431_v31, %v1426_v17 }
 0x624   : > { %v1277_v41 = vpop.f32.mrf.mxu3 }
 0x625   : > { %v1281_v51 = vadd.f32 %v1277_v41, %v1258_v61  ;;  %1664 = vperm.xlu0 %2086, %v2187_v29   ;;  %v1617_v2 = vpop.permute.xlu2 %1616 }
 0x626   : > { %v1620_v44 = vmul.f32 %v1617_v2, %v1608_v9  ;;  %v1669_v30 = vld [vmem:[#allocation4 + $0x10] sm:$0xff] }
 0x627   : > { %1283 = vst.msk [vmem:[#allocation4 + $0x18] sm:$0xff] %vm623_vm1, %v1281_v51 }
 0x62d   : > { %v1660_v15 = vpop.permute.xlu2 %1659 }
 0x62e   : > { %v1670_v27 = vld [vmem:[#allocation4 + $0x18] sm:$0xff] }
 0x649   : > { %v1417_v34 = vpop.xlane.xlu0 %1416 }
 0x64a   : > { %v1421_v49 = vadd.f32 %v1417_v34, %v1413_v19  ;;  %v1651_v34 = vld [vmem:[#allocation4] sm:$0xff] }
 0x64c   : > { %1423 = vst.msk [vmem:[#allocation3 + $0x20] sm:$0xff] %vm606_vm2, %v1421_v49  ;;  %v1652_v49 = vld [vmem:[#allocation4 + $0x8] sm:$0xff] }
 0x653   : > { %v1689_v39 = vld [vmem:[#allocation3 + $0x20] sm:$0xff] }
 0x654   : > { %2188 = vrcp.f32 %v1689_v39 }
 0x655   : > { %2190 = vrcp.f32 %v1707_v40 }
 0x65a   : > { %v2189_v35 = vpop.eup %2188 }
 0x65b   : > { %1695 = vperm.xlu2 %2132, %v2189_v35   ;;  %v2191_v63 = vpop.eup %2190  ;;  %v1667_v35 = vmul.f32 %v1660_v15, %v1651_v34 }
 0x663   : > { %1713 = vperm.xlu2 %2132, %v2191_v63  }
 0x668   : > { %v1420_v28 = vpop.xlane.xlu1 %1419 }
 0x669   : > { %v1422_v4 = vadd.f32 %v1420_v28, %v1414_v0 }
 0x66b   : > { %1424 = vst.msk [vmem:[#allocation3 + $0x28] sm:$0xff] %vm606_vm2, %v1422_v4 }
 0x670   : > { %v1601_v5 = vpop.xlane.xlu0 %1600 }
 0x671   : > { %v1603_v14 = vadd.f32 %v1601_v5, %v1595_v58 }
 0x672   : > { %v1690_v16 = vld [vmem:[#allocation3 + $0x28] sm:$0xff] }
 0x673   : > { %1605 = vst.msk [vmem:[#allocation3 + $0x38] sm:$0xff] %vm606_vm2, %v1603_v14  ;;  %2192 = vrcp.f32 %v1690_v16 }
 0x679   : > { %v2193_v8 = vpop.eup %2192  ;;  %v1456_v11 = vpop.f32.mrf.mxu3 }
 0x67a   : > { %v1461_v23 = vadd.f32 %v1456_v11, %v1438_v18  ;;  %1700 = vperm.xlu1 %2085, %v2193_v8   ;;  %v1708_v1 = vld [vmem:[#allocation3 + $0x38] sm:$0xff] }
 0x67b   : > { %2194 = vrcp.f32 %v1708_v1 }
 0x67c   : > { %1463 = vst.msk [vmem:[#allocation4 + $0x20] sm:$0xff] %vm623_vm1, %v1461_v23 }
 0x680   : > { %v1683_v59 = vpop.permute.xlu1 %1682 }
 0x681   : > { %v2195_v37 = vpop.eup %2194  ;;  %v1458_v38 = vpop.f32.mrf.mxu3  ;;  %v1686_v12 = vmul.f32 %v1683_v59, %v1670_v27 }
 0x682   : > { %v1637_v42 = vpop.f32.mrf.mxu2  ;;  %v1462_v6 = vadd.f32 %v1458_v38, %v1439_v21  ;;  %1718 = vperm.xlu1 %2085, %v2195_v37  }
 0x683   : > { %v1642_v43 = vadd.f32 %v1637_v42, %v1619_v3  ;;  %v1687_v45 = vld [vmem:[#allocation4 + $0x20] sm:$0xff] }
 0x684   : > { %1464 = vst.msk [vmem:[#allocation4 + $0x28] sm:$0xff] %vm623_vm1, %v1462_v6 }
 0x685   : > { %1644 = vst.msk [vmem:[#allocation4 + $0x30] sm:$0xff] %vm623_vm1, %v1642_v43 }
 0x68a   : > { %v1639_v7 = vpop.f32.mrf.mxu2 }
 0x68b   : > { %v1643_v25 = vadd.f32 %v1639_v7, %v1620_v44  ;;  %v1688_v54 = vld [vmem:[#allocation4 + $0x28] sm:$0xff] }
 0x68c   : > { %v1705_v57 = vld [vmem:[#allocation4 + $0x30] sm:$0xff] }
 0x68d   : > { %1645 = vst.msk [vmem:[#allocation4 + $0x38] sm:$0xff] %vm623_vm1, %v1643_v25 }
 0x68f   : > { %v1678_v48 = vpop.permute.xlu0 %1677 }
 0x690   : > { %v1685_v47 = vmul.f32 %v1678_v48, %v1669_v30 }
 0x692   : > { %v2133_v22 = vpack.i.bf16 %v1686_v12, %v1685_v47 }
 0x694   : > { %2134 = vrot.lane.b32.xlu2 %v2133_v22, %s2239_s24  ;;  %v1706_v60 = vld [vmem:[#allocation4 + $0x38] sm:$0xff] }
 0x697   : > { %v1665_v41 = vpop.permute.xlu0 %1664 }
 0x698   : > { %v1668_v36 = vmul.f32 %v1665_v41, %v1652_v49 }
 0x6b5   : > { %v1696_v26 = vpop.permute.xlu2 %1695 }
 0x6b6   : > { %v1703_v52 = vmul.f32 %v1696_v26, %v1687_v45 }
 0x6bd   : > { %v1714_v56 = vpop.permute.xlu2 %1713 }
 0x6be   : > { %v1721_v55 = vmul.f32 %v1714_v56, %v1705_v57 }
 0x6ec   : > { %v1701_v50 = vpop.permute.xlu1 %1700 }
 0x6ed   : > { %v1704_v13 = vmul.f32 %v1701_v50, %v1688_v54 }
 0x6ee   : > { %v2135_v51 = vpop.permute.xlu2 %2134 }
 0x6ef   : > { %v2138_v53 = vpack.i.bf16 %v1704_v13, %v1703_v52  ;;  %v2137_v62 = vunpack.i.h.bf16 %v2135_v51  ;;  %v2136_v19 = vunpack.i.l.bf16 %v2135_v51 }
 0x6f1   : > { %2139 = vrot.lane.b32.xlu1 %v2138_v53, %s2240_s8  ;;  %v1748_v46 = vsel %vm623_vm1, %v1668_v36, %v2137_v62  ;;  %v1747_v0 = vsel %vm623_vm1, %v1667_v35, %v2136_v19 }
 0x6f4   : > { %v1719_v10 = vpop.permute.xlu1 %1718 }
 0x6f5   : > { %v1722_v61 = vmul.f32 %v1719_v10, %v1706_v60 }
 0x6f7   : > { %v2143_v29 = vpack.i.bf16 %v1722_v61, %v1721_v55 }
 0x6f9   : > { %2144 = vrot.lane.b32.xlu0 %v2143_v29, %s2242_s20 }
 0x763   : > { %v2140_v31 = vpop.permute.xlu1 %2139 }
 0x764   : > { %v2142_v39 = vunpack.i.h.bf16 %v2140_v31  ;;  %v2141_v40 = vunpack.i.l.bf16 %v2140_v31 }
 0x766   : > { %v1750_v20 = vsel %vm1749_vm3, %v1747_v0, %v2141_v40  ;;  %v1751_v58 = vsel %vm1749_vm3, %v1748_v46, %v2142_v39 }
 0x76b   : > { %v2145_v63 = vpop.permute.xlu0 %2144 }
 0x76c   : > { %v2147_v28 = vunpack.i.h.bf16 %v2145_v63  ;;  %v2146_v4 = vunpack.i.l.bf16 %v2145_v63 }
 0x76e   : > { %v1753_v5 = vsel %vm1752_vm4, %v1750_v20, %v2146_v4  ;;  %v1754_v14 = vsel %vm1752_vm4, %v1751_v58, %v2147_v28 }
 0x76f   : > { %v2007_v16 = vpack.c.bf16 %v1754_v14, %v1753_v5 }
 0x771   : > { %2008 = vst [vmem:[%s599_s15] sm:$0xff] %v2007_v16  }
 0x772 PF: > { %s17_s28 = sadd.s32 1, %s2234_s28   ;;  %s2944_s24 = smov %s2222_s25 }
 0x773   : > { %p14_p10 = scmp.ge.s32.totalorder %s17_s28, 4   ;;  %s2945_s25 = smov %s2325_s10 }
 0x774   : > { %s2946_s26 = smov %s2230_s27  ;;  %s2947_s27 = smov %s2949_s29 }
 0x775   :  { %16 = sbr.rel (!%p14_p10) target bundleno = 3 (0x3), region = 251 }

// kernel: deepseek_forward.21
= control target key start
LH: loop header
LB: loop body
LE: loop exit
PB: predicated region body
PF: predicated region fallthrough
CT: control target
= control target key end

     0   :  { %s1076_s1 = inlined_call_operand.vmem [shape: bf16[128,256], index: 1, kind: input, shape index: {}]   ;;  %s1077_s2 = inlined_call_operand.vmem [shape: bf16[128,256], index: 2, kind: input, shape index: {}]   ;;  %s1078_s0 = inlined_call_operand.vmem [shape: bf16[32,128], index: 0, kind: input, shape index: {}]   ;;  %s1079_s3 = inlined_call_operand.vmem [shape: bf16[32,256], index: 3, kind: output, shape index: {}]  }
   0x1   :  { %v631_v0 = vld [vmem:[%s1076_s1 + $0x70] sm:$0xf]  ;;  %v726_v1 = vld [vmem:[%s1076_s1 + $0x74] sm:$0xf0]  ;;  %v725_v2 = vld [vmem:[%s1076_s1 + $0x74] sm:$0xf] }
   0x2   :  { %v632_v3 = vor.u32 %v726_v1, %v631_v0  ;;  %v633_v4 = vld [vmem:[%s1076_s1 + $0x78] sm:$0xf0]  ;;  %v623_v5 = vld [vmem:[%s1076_s1 + $0x60] sm:$0xf]  ;;  %v724_v6 = vld [vmem:[%s1076_s1 + $0x64] sm:$0xf0] }
   0x3   :  { %v636_v7 = vor.u32 %v725_v2, %v633_v4  ;;  %v723_v8 = vld [vmem:[%s1076_s1 + $0x64] sm:$0xf]  ;;  %v625_v9 = vld [vmem:[%s1076_s1 + $0x68] sm:$0xf0]  ;;  %v624_v10 = vor.u32 %v724_v6, %v623_v5  ;;  %v615_v12 = vld [vmem:[%s1076_s1 + $0x50] sm:$0xf] }
   0x4   :  { %154 = vmatpush.bf16.msra.mxu0 %v632_v3  ;;  %v628_v11 = vor.u32 %v723_v8, %v625_v9  ;;  %v722_v13 = vld [vmem:[%s1076_s1 + $0x54] sm:$0xf0]  ;;  %v721_v14 = vld [vmem:[%s1076_s1 + $0x54] sm:$0xf]  ;;  %v617_v15 = vld [vmem:[%s1076_s1 + $0x58] sm:$0xf0] }
   0x5   :  { %173 = vmatpush.bf16.msra.mxu1 %v636_v7  ;;  %v695_v16 = vld [vmem:[%s1077_s2 + $0x70] sm:$0xf]  ;;  %v616_v17 = vor.u32 %v722_v13, %v615_v12  ;;  %v742_v18 = vld [vmem:[%s1077_s2 + $0x74] sm:$0xf0]  ;;  %v741_v19 = vld [vmem:[%s1077_s2 + $0x74] sm:$0xf]  ;;  %v620_v21 = vor.u32 %v721_v14, %v617_v15 }
   0x6   :  { %v697_v20 = vld [vmem:[%s1077_s2 + $0x78] sm:$0xf0]  ;;  %v607_v22 = vld [vmem:[%s1076_s1 + $0x40] sm:$0xf]  ;;  %v720_v23 = vld [vmem:[%s1076_s1 + $0x44] sm:$0xf0]  ;;  %v696_v25 = vor.u32 %v742_v18, %v695_v16 }
   0x7   :  { %v719_v24 = vld [vmem:[%s1076_s1 + $0x44] sm:$0xf]  ;;  %v700_v26 = vor.u32 %v741_v19, %v697_v20  ;;  %v609_v27 = vld [vmem:[%s1076_s1 + $0x48] sm:$0xf0]  ;;  %v687_v28 = vld [vmem:[%s1077_s2 + $0x60] sm:$0xf]  ;;  %v608_v33 = vor.u32 %v720_v23, %v607_v22 }
   0x8   :  { %155 = vmatpush.bf16.msra.mxu0 %v624_v10  ;;  %v740_v29 = vld [vmem:[%s1077_s2 + $0x64] sm:$0xf0]  ;;  %312 = vmatpush.bf16.msra.mxu2 %v696_v25  ;;  %v739_v31 = vld [vmem:[%s1077_s2 + $0x64] sm:$0xf]  ;;  %v689_v32 = vld [vmem:[%s1077_s2 + $0x68] sm:$0xf0]  ;;  %v612_v37 = vor.u32 %v719_v24, %v609_v27 }
   0x9   :  { %174 = vmatpush.bf16.msra.mxu1 %v628_v11  ;;  %331 = vmatpush.bf16.msra.mxu3 %v700_v26  ;;  %v688_v30 = vor.u32 %v740_v29, %v687_v28  ;;  %v599_v34 = vld [vmem:[%s1076_s1 + $0x30] sm:$0xf]  ;;  %v718_v35 = vld [vmem:[%s1076_s1 + $0x34] sm:$0xf0]  ;;  %v692_v36 = vor.u32 %v739_v31, %v689_v32  ;;  %v737_v40 = vld [vmem:[%s1077_s2 + $0x54] sm:$0xf] }
   0xa   :  { %v679_v38 = vld [vmem:[%s1077_s2 + $0x50] sm:$0xf]  ;;  %v738_v39 = vld [vmem:[%s1077_s2 + $0x54] sm:$0xf0]  ;;  %v717_v41 = vld [vmem:[%s1076_s1 + $0x34] sm:$0xf]  ;;  %v600_v47 = vor.u32 %v718_v35, %v599_v34 }
   0xb   :  { %v601_v42 = vld [vmem:[%s1076_s1 + $0x38] sm:$0xf0]  ;;  %v680_v44 = vor.u32 %v738_v39, %v679_v38  ;;  %v671_v46 = vld [vmem:[%s1077_s2 + $0x40] sm:$0xf]  ;;  %v736_v48 = vld [vmem:[%s1077_s2 + $0x44] sm:$0xf0] }
   0xc   :  { %156 = vmatpush.bf16.msra.mxu0 %v616_v17  ;;  %v681_v43 = vld [vmem:[%s1077_s2 + $0x58] sm:$0xf0]  ;;  %313 = vmatpush.bf16.msra.mxu2 %v688_v30  ;;  %v735_v49 = vld [vmem:[%s1077_s2 + $0x44] sm:$0xf]  ;;  %v673_v50 = vld [vmem:[%s1077_s2 + $0x48] sm:$0xf0]  ;;  %v604_v51 = vor.u32 %v717_v41, %v601_v42  ;;  %v672_v56 = vor.u32 %v736_v48, %v671_v46 }
   0xd   :  { %175 = vmatpush.bf16.msra.mxu1 %v620_v21  ;;  %332 = vmatpush.bf16.msra.mxu3 %v692_v36  ;;  %v684_v45 = vor.u32 %v737_v40, %v681_v43  ;;  %v591_v52 = vld [vmem:[%s1076_s1 + $0x20] sm:$0xf]  ;;  %v716_v53 = vld [vmem:[%s1076_s1 + $0x24] sm:$0xf0]  ;;  %v715_v54 = vld [vmem:[%s1076_s1 + $0x24] sm:$0xf]  ;;  %v676_v57 = vor.u32 %v735_v49, %v673_v50 }
   0xe   :  { %v593_v55 = vld [vmem:[%s1076_s1 + $0x28] sm:$0xf0]  ;;  %v663_v58 = vld [vmem:[%s1077_s2 + $0x30] sm:$0xf]  ;;  %v592_v59 = vor.u32 %v716_v53, %v591_v52  ;;  %v734_v60 = vld [vmem:[%s1077_s2 + $0x34] sm:$0xf0] }
   0xf   :  { %v733_v61 = vld [vmem:[%s1077_s2 + $0x34] sm:$0xf]  ;;  %v665_v62 = vld [vmem:[%s1077_s2 + $0x38] sm:$0xf0]  ;;  %v596_v63 = vor.u32 %v715_v54, %v593_v55  ;;  %v583_v0 = vld [vmem:[%s1076_s1 + $0x10] sm:$0xf]  ;;  %v664_v4 = vor.u32 %v734_v60, %v663_v58 }
  0x10   :  { %157 = vmatpush.bf16.msra.mxu0 %v608_v33  ;;  %314 = vmatpush.bf16.msra.mxu2 %v680_v44  ;;  %v714_v1 = vld [vmem:[%s1076_s1 + $0x14] sm:$0xf0]  ;;  %v713_v2 = vld [vmem:[%s1076_s1 + $0x14] sm:$0xf]  ;;  %v585_v3 = vld [vmem:[%s1076_s1 + $0x18] sm:$0xf0]  ;;  %v668_v5 = vor.u32 %v733_v61, %v665_v62 }
  0x11   :  { %176 = vmatpush.bf16.msra.mxu1 %v612_v37  ;;  %333 = vmatpush.bf16.msra.mxu3 %v684_v45  ;;  %v655_v6 = vld [vmem:[%s1077_s2 + $0x20] sm:$0xf]  ;;  %v584_v7 = vor.u32 %v714_v1, %v583_v0  ;;  %v732_v8 = vld [vmem:[%s1077_s2 + $0x24] sm:$0xf0]  ;;  %v731_v9 = vld [vmem:[%s1077_s2 + $0x24] sm:$0xf]  ;;  %v588_v11 = vor.u32 %v713_v2, %v585_v3 }
  0x12   :  { %v657_v10 = vld [vmem:[%s1077_s2 + $0x28] sm:$0xf0]  ;;  %v575_v12 = vld [vmem:[%s1076_s1] sm:$0xf]  ;;  %v712_v13 = vld [vmem:[%s1076_s1 + $0x4] sm:$0xf0]  ;;  %v656_v16 = vor.u32 %v732_v8, %v655_v6 }
  0x13   :  { %v711_v14 = vld [vmem:[%s1076_s1 + $0x4] sm:$0xf]  ;;  %v577_v15 = vld [vmem:[%s1076_s1 + $0x8] sm:$0xf0]  ;;  %v660_v17 = vor.u32 %v731_v9, %v657_v10  ;;  %v576_v18 = vor.u32 %v712_v13, %v575_v12  ;;  %v647_v19 = vld [vmem:[%s1077_s2 + $0x10] sm:$0xf] }
  0x14   :  { %158 = vmatpush.bf16.msra.mxu0 %v600_v47  ;;  %315 = vmatpush.bf16.msra.mxu2 %v672_v56  ;;  %v730_v20 = vld [vmem:[%s1077_s2 + $0x14] sm:$0xf0]  ;;  %v580_v21 = vor.u32 %v711_v14, %v577_v15  ;;  %v729_v22 = vld [vmem:[%s1077_s2 + $0x14] sm:$0xf]  ;;  %v649_v23 = vld [vmem:[%s1077_s2 + $0x18] sm:$0xf0] }
  0x15   :  { %177 = vmatpush.bf16.msra.mxu1 %v604_v51  ;;  %334 = vmatpush.bf16.msra.mxu3 %v676_v57  ;;  %v709_v24 = vld [vmem:[%s1078_s0] sm:$0xff]  ;;  %v648_v25 = vor.u32 %v730_v20, %v647_v19  ;;  %v652_v26 = vor.u32 %v729_v22, %v649_v23  ;;  %v728_v28 = vld [vmem:[%s1077_s2 + $0x4] sm:$0xf0]  ;;  %v641_v30 = vld [vmem:[%s1077_s2 + $0x8] sm:$0xf0] }
  0x16   :  { %v639_v27 = vld [vmem:[%s1077_s2] sm:$0xf]  ;;  %v727_v29 = vld [vmem:[%s1077_s2 + $0x4] sm:$0xf]  ;;  %v710_v33 = vld [vmem:[%s1078_s0 + $0x8] sm:$0xff] }
  0x17   :  { %v640_v31 = vor.u32 %v728_v28, %v639_v27  ;;  %v644_v32 = vor.u32 %v727_v29, %v641_v30 }
  0x18   :  { %159 = vmatpush.bf16.msra.mxu0 %v592_v59  ;;  %316 = vmatpush.bf16.msra.mxu2 %v664_v4 }
  0x19   :  { %178 = vmatpush.bf16.msra.mxu1 %v596_v63  ;;  %335 = vmatpush.bf16.msra.mxu3 %v668_v5 }
  0x1c   :  { %160 = vmatpush.bf16.msra.mxu0 %v584_v7  ;;  %317 = vmatpush.bf16.msra.mxu2 %v656_v16 }
  0x1d   :  { %179 = vmatpush.bf16.msra.mxu1 %v588_v11  ;;  %336 = vmatpush.bf16.msra.mxu3 %v660_v17 }
  0x20   :  { %161 = vmatpush.bf16.msra.mxu0 %v576_v18  ;;  %318 = vmatpush.bf16.msra.mxu2 %v648_v25 }
  0x21   :  { %180 = vmatpush.bf16.msra.mxu1 %v580_v21  ;;  %337 = vmatpush.bf16.msra.mxu3 %v652_v26 }
  0x23   :  { %162 = vmatmul.bf16.vlgmr.msra.gmra.mxu0 %v709_v24 }
  0x24   :  { %181 = vmatmul.bf16.vlgmr.msra.gmra.mxu1 %v709_v24  ;;  %319 = vmatpush.bf16.msra.mxu2 %v640_v31 }
  0x25   :  { %338 = vmatpush.bf16.msra.mxu3 %v644_v32 }
  0x27   :  { %320 = vmatmul.bf16.vlgmr.msra.gmra.mxu2 %v709_v24 }
  0x28   :  { %339 = vmatmul.bf16.vlgmr.msra.gmra.mxu3 %v709_v24 }
  0x33   :  { %167 = vmatmul.bf16.gmra.mxu0 %v710_v33 }
  0x34   :  { %186 = vmatmul.bf16.gmra.mxu1 %v710_v33 }
  0x37   :  { %325 = vmatmul.bf16.gmra.mxu2 %v710_v33 }
  0x38   :  { %344 = vmatmul.bf16.gmra.mxu3 %v710_v33 }
  0xa0   :  { %v993_v34 = vpop.f32.mrf.mxu0 }
  0xa1   :  { %v701_v35 = vmul.f32 -1.442695, %v993_v34  ;;  %v996_v36 = vpop.f32.mrf.mxu1 }
  0xa2   :  { %v702_v37 = vmul.f32 -1.442695, %v996_v36 }
  0xa3   :  { %743 = vpow2.f32 %v701_v35 }
  0xa4   :  { %745 = vpow2.f32 %v702_v37 }
  0xa8   :  { %v999_v38 = vpop.f32.mrf.mxu0 }
  0xa9   :  { %v744_v39 = vpop.eup %743  ;;  %v703_v40 = vmul.f32 -1.442695, %v999_v38  ;;  %v1002_v41 = vpop.f32.mrf.mxu1 }
  0xaa   :  { %v746_v42 = vpop.eup %745  ;;  %v401_v43 = vadd.f32 1.0, %v744_v39  ;;  %v704_v44 = vmul.f32 -1.442695, %v1002_v41  ;;  %v321_v21 = vpop.f32.mrf.mxu2 }
  0xab   :  { %v402_v45 = vadd.f32 1.0, %v746_v42  ;;  %747 = vpow2.f32 %v703_v40  ;;  %v340_v28 = vpop.f32.mrf.mxu3 }
  0xac   :  { %749 = vrcp.f32 %v401_v43  ;;  %v418_v58 = vand.u32 2147483647, %v401_v43  ;;  %v420_v60 = vand.u32 2147483648, %v401_v43  ;;  %vm414_vm1 = vweird.f32 %v401_v43 }
  0xad   :  { %751 = vrcp.f32 %v402_v45  ;;  %v433_v62 = vand.u32 2147483647, %v402_v45  ;;  %v435_v0 = vand.u32 2147483648, %v402_v45  ;;  %vm429_vm4 = vweird.f32 %v402_v45 }
  0xae   :  { %753 = vpow2.f32 %v704_v44  ;;  %vm419_vm3 = vcmp.eq.f32.partialorder %v418_v58, 8.507059e+37  ;;  %v421_v7 = vor.u32 1.1754944e-38, %v420_v60 }
  0xaf   :  { %vm434_vm6 = vcmp.eq.f32.partialorder %v433_v62, 8.507059e+37  ;;  %v436_v11 = vor.u32 1.1754944e-38, %v435_v0 }
  0xb0   :  { %v1005_v46 = vpop.f32.mrf.mxu0 }
  0xb1   :  { %v748_v47 = vpop.eup %747  ;;  %v705_v48 = vmul.f32 -1.442695, %v1005_v46  ;;  %v1008_v49 = vpop.f32.mrf.mxu1 }
  0xb2   :  { %v750_v50 = vpop.eup %749  ;;  %v1010_v51 = vadd.f32 1.0, %v748_v47  ;;  %v706_v52 = vmul.f32 -1.442695, %v1008_v49 }
  0xb3   :  { %v752_v53 = vpop.eup %751  ;;  %v410_v54 = vmul.f32 %v750_v50, %v401_v43  ;;  %755 = vpow2.f32 %v705_v48  ;;  %vm415_vm0 = vweird.f32 %v750_v50 }
  0xb4   :  { %v754_v55 = vpop.eup %753  ;;  %v425_v56 = vmul.f32 %v752_v53, %v402_v45  ;;  %757 = vrcp.f32 %v1010_v51  ;;  %vm430_vm2 = vweird.f32 %v752_v53  ;;  %vm416_vm5 = vmor %vm414_vm1, %vm415_vm0  ;;  %v450_v16 = vand.u32 2147483648, %v1010_v51 }
  0xb5   :  { %v411_v57 = vsub.f32 1.0, %v410_v54  ;;  %v1014_v59 = vadd.f32 1.0, %v754_v55  ;;  %759 = vpow2.f32 %v706_v52  ;;  %vm431_vm7 = vmor %vm429_vm4, %vm430_vm2  ;;  %vm444_vm8 = vweird.f32 %v1010_v51 }
  0xb6   :  { %v426_v61 = vsub.f32 1.0, %v425_v56  ;;  %v448_v23 = vand.u32 2147483647, %v1010_v51  ;;  %v451_v30 = vor.u32 1.1754944e-38, %v450_v16 }
  0xb7   :  { %v412_v63 = vmul.f32 %v750_v50, %v411_v57  ;;  %761 = vrcp.f32 %v1014_v59  ;;  %v463_v32 = vand.u32 2147483647, %v1014_v59  ;;  %vm459_vm13 = vweird.f32 %v1014_v59 }
  0xb8   :  { %v427_v1 = vmul.f32 %v752_v53, %v426_v61  ;;  %v1017_v2 = vpop.f32.mrf.mxu0  ;;  %vm449_vm12 = vcmp.eq.f32.partialorder %v448_v23, 8.507059e+37 }
  0xb9   :  { %v756_v3 = vpop.eup %755  ;;  %v413_v4 = vadd.f32 %v750_v50, %v412_v63  ;;  %v707_v5 = vmul.f32 -1.442695, %v1017_v2  ;;  %v1032_v29 = vpop.f32.mrf.mxu1  ;;  %vm464_vm15 = vcmp.eq.f32.partialorder %v463_v32, 8.507059e+37 }
  0xba   :  { %v758_v6 = vpop.eup %757  ;;  %v428_v8 = vadd.f32 %v752_v53, %v427_v1  ;;  %v1020_v9 = vadd.f32 1.0, %v756_v3  ;;  %v708_v43 = vmul.f32 -1.442695, %v1032_v29  ;;  %v342_v63 = vpop.f32.mrf.mxu3 }
  0xbb   :  { %v417_v10 = vsel %vm416_vm5, %v750_v50, %v413_v4  ;;  %v440_v12 = vmul.f32 %v758_v6, %v1010_v51  ;;  %763 = vpow2.f32 %v707_v5  ;;  %v760_v13 = vpop.eup %759  ;;  %vm445_vm9 = vweird.f32 %v758_v6 }
  0xbc   :  { %v422_v14 = vsel %vm419_vm3, %v421_v7, %v417_v10  ;;  %v432_v15 = vsel %vm431_vm7, %v752_v53, %v428_v8  ;;  %765 = vrcp.f32 %v1020_v9  ;;  %v1030_v26 = vadd.f32 1.0, %v760_v13  ;;  %vm446_vm11 = vmor %vm444_vm8, %vm445_vm9 }
  0xbd   :  { %v762_v17 = vpop.eup %761  ;;  %v529_v18 = vmul.f32 %v422_v14, %v993_v34  ;;  %v437_v19 = vsel %vm434_vm6, %v436_v11, %v432_v15  ;;  %v441_v20 = vsub.f32 1.0, %v440_v12  ;;  %v478_v54 = vand.u32 2147483647, %v1020_v9 }
  0xbe   :  { %v530_v22 = vmul.f32 %v437_v19, %v996_v36  ;;  %v455_v24 = vmul.f32 %v762_v17, %v1014_v59  ;;  %vm460_vm10 = vweird.f32 %v762_v17  ;;  %v465_v36 = vand.u32 2147483648, %v1014_v59  ;;  %v323_v59 = vpop.f32.mrf.mxu2 }
  0xbf   :  { %v442_v25 = vmul.f32 %v758_v6, %v441_v20  ;;  %v545_v27 = vmul.f32 %v529_v18, %v321_v21  ;;  %767 = vrcp.f32 %v1030_v26  ;;  %vm461_vm14 = vmor %vm459_vm13, %vm460_vm10  ;;  %v480_v55 = vand.u32 2147483648, %v1020_v9 }
  0xc0   :  { %v456_v31 = vsub.f32 1.0, %v455_v24  ;;  %v546_v33 = vmul.f32 %v530_v22, %v340_v28  ;;  %v466_v51 = vor.u32 1.1754944e-38, %v465_v36  ;;  %vm474_vm1 = vweird.f32 %v1020_v9 }
  0xc1   :  { %v764_v34 = vpop.eup %763  ;;  %v443_v35 = vadd.f32 %v758_v6, %v442_v25  ;;  %vm479_vm3 = vcmp.eq.f32.partialorder %v478_v54, 8.507059e+37  ;;  %v481_v1 = vor.u32 1.1754944e-38, %v480_v55  ;;  %v495_v7 = vand.u32 2147483648, %v1030_v26 }
  0xc2   :  { %v766_v37 = vpop.eup %765  ;;  %v457_v39 = vmul.f32 %v762_v17, %v456_v31  ;;  %v553_v40 = vpack.c.bf16 %v546_v33, %v545_v27  ;;  %v1040_v42 = vadd.f32 1.0, %v764_v34  ;;  %vm489_vm5 = vweird.f32 %v1030_v26  ;;  %v345_v24 = vpop.f32.mrf.mxu3 }
  0xc3   :  { %v447_v44 = vsel %vm446_vm11, %v758_v6, %v443_v35  ;;  %v470_v45 = vmul.f32 %v766_v37, %v1020_v9  ;;  %vm475_vm0 = vweird.f32 %v766_v37  ;;  %v493_v6 = vand.u32 2147483647, %v1030_v26 }
  0xc4   :  { %v452_v47 = vsel %vm449_vm12, %v451_v30, %v447_v44  ;;  %v458_v48 = vadd.f32 %v762_v17, %v457_v39  ;;  %557 = vst [vmem:[%s1079_s3] sm:$0xff] %v553_v40  ;;  %769 = vrcp.f32 %v1040_v42  ;;  %vm476_vm2 = vmor %vm474_vm1, %vm475_vm0  ;;  %v496_v16 = vor.u32 1.1754944e-38, %v495_v7 }
  0xc5   :  { %v531_v50 = vmul.f32 %v452_v47, %v999_v38  ;;  %v471_v52 = vsub.f32 1.0, %v470_v45  ;;  %771 = vpow2.f32 %v708_v43  ;;  %v768_v56 = vpop.eup %767  ;;  %vm494_vm7 = vcmp.eq.f32.partialorder %v493_v6, 8.507059e+37 }
  0xc6   :  { %v462_v53 = vsel %vm461_vm14, %v762_v17, %v458_v48  ;;  %v485_v38 = vmul.f32 %v768_v56, %v1030_v26  ;;  %vm490_vm4 = vweird.f32 %v768_v56  ;;  %v326_v20 = vpop.f32.mrf.mxu2  ;;  %v510_v23 = vand.u32 2147483648, %v1040_v42 }
  0xc7   :  { %v467_v57 = vsel %vm464_vm15, %v466_v51, %v462_v53  ;;  %v472_v58 = vmul.f32 %v766_v37, %v471_v52  ;;  %v547_v61 = vmul.f32 %v531_v50, %v323_v59  ;;  %vm491_vm6 = vmor %vm489_vm5, %vm490_vm4  ;;  %vm504_vm9 = vweird.f32 %v1040_v42 }
  0xc8   :  { %v532_v60 = vmul.f32 %v467_v57, %v1002_v41  ;;  %v486_v3 = vsub.f32 1.0, %v485_v38  ;;  %v508_v25 = vand.u32 2147483647, %v1040_v42  ;;  %v511_v32 = vor.u32 1.1754944e-38, %v510_v23 }
  0xc9   :  { %v473_v62 = vadd.f32 %v766_v37, %v472_v58 }
  0xca   :  { %v770_v0 = vpop.eup %769  ;;  %v548_v4 = vmul.f32 %v532_v60, %v342_v63  ;;  %v487_v11 = vmul.f32 %v768_v56, %v486_v3  ;;  %vm509_vm11 = vcmp.eq.f32.partialorder %v508_v25, 8.507059e+37  ;;  %v347_v48 = vpop.f32.mrf.mxu3 }
  0xcb   :  { %v477_v5 = vsel %vm476_vm2, %v766_v37, %v473_v62  ;;  %v500_v41 = vmul.f32 %v770_v0, %v1040_v42  ;;  %v772_v8 = vpop.eup %771  ;;  %vm505_vm8 = vweird.f32 %v770_v0 }
  0xcc   :  { %v482_v10 = vsel %vm479_vm3, %v481_v1, %v477_v5  ;;  %v554_v12 = vpack.c.bf16 %v548_v4, %v547_v61  ;;  %v408_v13 = vadd.f32 1.0, %v772_v8  ;;  %v488_v15 = vadd.f32 %v768_v56, %v487_v11  ;;  %vm506_vm10 = vmor %vm504_vm9, %vm505_vm8 }
  0xcd   :  { %v501_v9 = vsub.f32 1.0, %v500_v41  ;;  %v533_v14 = vmul.f32 %v482_v10, %v1005_v46 }
  0xce   :  { %558 = vst [vmem:[%s1079_s3 + $0x8] sm:$0xff] %v554_v12  ;;  %773 = vrcp.f32 %v408_v13  ;;  %v492_v18 = vsel %vm491_vm6, %v768_v56, %v488_v15  ;;  %v525_v34 = vand.u32 2147483648, %v408_v13  ;;  %v523_v36 = vand.u32 2147483647, %v408_v13  ;;  %v328_v44 = vpop.f32.mrf.mxu2 }
  0xcf   :  { %v502_v17 = vmul.f32 %v770_v0, %v501_v9  ;;  %v497_v19 = vsel %vm494_vm7, %v496_v16, %v492_v18  ;;  %v549_v46 = vmul.f32 %v533_v14, %v326_v20  ;;  %vm519_vm13 = vweird.f32 %v408_v13 }
  0xd0   :  { %v534_v21 = vmul.f32 %v497_v19, %v1008_v49  ;;  %v526_v40 = vor.u32 1.1754944e-38, %v525_v34  ;;  %vm524_vm15 = vcmp.eq.f32.partialorder %v523_v36, 8.507059e+37 }
  0xd1   :  { %v503_v22 = vadd.f32 %v770_v0, %v502_v17 }
  0xd2   :  { %v550_v26 = vmul.f32 %v534_v21, %v345_v24 }
  0xd3   :  { %v507_v28 = vsel %vm506_vm10, %v770_v0, %v503_v22 }
  0xd4   :  { %v774_v27 = vpop.eup %773  ;;  %v555_v31 = vpack.c.bf16 %v550_v26, %v549_v46  ;;  %v512_v49 = vsel %vm509_vm11, %v511_v32, %v507_v28 }
  0xd5   :  { %v515_v30 = vmul.f32 %v774_v27, %v408_v13  ;;  %vm520_vm12 = vweird.f32 %v774_v27  ;;  %v535_v37 = vmul.f32 %v512_v49, %v1017_v2 }
  0xd6   :  { %559 = vst [vmem:[%s1079_s3 + $0x10] sm:$0xff] %v555_v31  ;;  %vm521_vm14 = vmor %vm519_vm13, %vm520_vm12 }
  0xd7   :  { %v516_v33 = vsub.f32 1.0, %v515_v30  ;;  %v551_v47 = vmul.f32 %v535_v37, %v328_v44 }
  0xd9   :  { %v517_v35 = vmul.f32 %v774_v27, %v516_v33 }
  0xdb   :  { %v518_v39 = vadd.f32 %v774_v27, %v517_v35 }
  0xdd   :  { %v522_v42 = vsel %vm521_vm14, %v774_v27, %v518_v39 }
  0xde   :  { %v527_v43 = vsel %vm524_vm15, %v526_v40, %v522_v42 }
  0xdf   :  { %v536_v45 = vmul.f32 %v527_v43, %v1032_v29 }
  0xe1   :  { %v552_v50 = vmul.f32 %v536_v45, %v347_v48 }
  0xe3   :  { %v556_v51 = vpack.c.bf16 %v552_v50, %v551_v47 }
  0xe5   :  { %560 = vst [vmem:[%s1079_s3 + $0x18] sm:$0xff] %v556_v51 }

// kernel: deepseek_forward.22
= control target key start
LH: loop header
LB: loop body
LE: loop exit
PB: predicated region body
PF: predicated region fallthrough
CT: control target
= control target key end

     0   :  { %s479_s1 = inlined_call_operand.vmem [shape: bf16[256,128], index: 1, kind: input, shape index: {}]   ;;  %s480_s0 = inlined_call_operand.vmem [shape: bf16[32,256], index: 0, kind: input, shape index: {}]   ;;  %s481_s2 = inlined_call_operand.vmem [shape: f32[32,128], index: 2, kind: input, shape index: {}]   ;;  %s482_s3 = inlined_call_operand.vmem [shape: f32[32,128], index: 3, kind: output, shape index: {}]  }
   0x1   :  { %v338_v0 = vld [vmem:[%s479_s1 + $0x38] sm:$0xff]  ;;  %v337_v2 = vld [vmem:[%s479_s1 + $0x30] sm:$0xff]  ;;  %v336_v4 = vld [vmem:[%s479_s1 + $0x28] sm:$0xff] }
   0x2   :  { %v346_v1 = vld [vmem:[%s479_s1 + $0x78] sm:$0xff]  ;;  %178 = vmatpush.bf16.msra.mxu0 %v338_v0  ;;  %347 = vmatpush.bf16.msra.mxu2 %v338_v0  ;;  %v345_v3 = vld [vmem:[%s479_s1 + $0x70] sm:$0xff]  ;;  %v344_v5 = vld [vmem:[%s479_s1 + $0x68] sm:$0xff] }
   0x3   :  { %197 = vmatpush.bf16.msra.mxu1 %v346_v1  ;;  %355 = vmatpush.bf16.msra.mxu3 %v346_v1  ;;  %v335_v6 = vld [vmem:[%s479_s1 + $0x20] sm:$0xff]  ;;  %v334_v8 = vld [vmem:[%s479_s1 + $0x18] sm:$0xff]  ;;  %v333_v10 = vld [vmem:[%s479_s1 + $0x10] sm:$0xff] }
   0x4   :  { %v343_v7 = vld [vmem:[%s479_s1 + $0x60] sm:$0xff]  ;;  %v342_v9 = vld [vmem:[%s479_s1 + $0x58] sm:$0xff]  ;;  %v341_v11 = vld [vmem:[%s479_s1 + $0x50] sm:$0xff] }
   0x5   :  { %v332_v12 = vld [vmem:[%s479_s1 + $0x8] sm:$0xff]  ;;  %v331_v14 = vld [vmem:[%s479_s1] sm:$0xff]  ;;  %v257_v18 = vld [vmem:[%s480_s0 + $0x10] sm:$0xf] }
   0x6   :  { %179 = vmatpush.bf16.msra.mxu0 %v337_v2  ;;  %348 = vmatpush.bf16.msra.mxu2 %v337_v2  ;;  %v340_v13 = vld [vmem:[%s479_s1 + $0x48] sm:$0xff]  ;;  %v339_v15 = vld [vmem:[%s479_s1 + $0x40] sm:$0xff]  ;;  %v330_v19 = vld [vmem:[%s480_s0 + $0x14] sm:$0xf0] }
   0x7   :  { %198 = vmatpush.bf16.msra.mxu1 %v345_v3  ;;  %356 = vmatpush.bf16.msra.mxu3 %v345_v3  ;;  %v249_v16 = vld [vmem:[%s480_s0] sm:$0xf]  ;;  %v328_v17 = vld [vmem:[%s480_s0 + $0x4] sm:$0xf0]  ;;  %v327_v20 = vld [vmem:[%s480_s0 + $0x4] sm:$0xf]  ;;  %v258_v25 = vor.u32 %v330_v19, %v257_v18 }
   0x8   :  { %v251_v21 = vld [vmem:[%s480_s0 + $0x8] sm:$0xf0]  ;;  %v329_v22 = vld [vmem:[%s480_s0 + $0x14] sm:$0xf]  ;;  %v259_v23 = vld [vmem:[%s480_s0 + $0x18] sm:$0xf0]  ;;  %v250_v24 = vor.u32 %v328_v17, %v249_v16 }
   0x9   :  { %v254_v26 = vor.u32 %v327_v20, %v251_v21  ;;  %v262_v27 = vor.u32 %v329_v22, %v259_v23  ;;  %v231_v30 = vld [vmem:[%s481_s2] sm:$0xff]  ;;  %v233_v35 = vld [vmem:[%s481_s2 + $0x10] sm:$0xff]  ;;  %v232_v39 = vld [vmem:[%s481_s2 + $0x8] sm:$0xff] }
   0xa   :  { %180 = vmatpush.bf16.msra.mxu0 %v336_v4  ;;  %349 = vmatpush.bf16.msra.mxu2 %v336_v4  ;;  %v234_v45 = vld [vmem:[%s481_s2 + $0x18] sm:$0xff] }
   0xb   :  { %199 = vmatpush.bf16.msra.mxu1 %v344_v5  ;;  %357 = vmatpush.bf16.msra.mxu3 %v344_v5 }
   0xe   :  { %181 = vmatpush.bf16.msra.mxu0 %v335_v6  ;;  %350 = vmatpush.bf16.msra.mxu2 %v335_v6 }
   0xf   :  { %200 = vmatpush.bf16.msra.mxu1 %v343_v7  ;;  %358 = vmatpush.bf16.msra.mxu3 %v343_v7 }
  0x12   :  { %182 = vmatpush.bf16.msra.mxu0 %v334_v8  ;;  %351 = vmatpush.bf16.msra.mxu2 %v334_v8 }
  0x13   :  { %201 = vmatpush.bf16.msra.mxu1 %v342_v9  ;;  %359 = vmatpush.bf16.msra.mxu3 %v342_v9 }
  0x16   :  { %183 = vmatpush.bf16.msra.mxu0 %v333_v10  ;;  %352 = vmatpush.bf16.msra.mxu2 %v333_v10 }
  0x17   :  { %202 = vmatpush.bf16.msra.mxu1 %v341_v11  ;;  %360 = vmatpush.bf16.msra.mxu3 %v341_v11 }
  0x1a   :  { %184 = vmatpush.bf16.msra.mxu0 %v332_v12  ;;  %353 = vmatpush.bf16.msra.mxu2 %v332_v12 }
  0x1b   :  { %203 = vmatpush.bf16.msra.mxu1 %v340_v13  ;;  %361 = vmatpush.bf16.msra.mxu3 %v340_v13 }
  0x1e   :  { %185 = vmatpush.bf16.msra.mxu0 %v331_v14  ;;  %354 = vmatpush.bf16.msra.mxu2 %v331_v14 }
  0x1f   :  { %204 = vmatpush.bf16.msra.mxu1 %v339_v15  ;;  %362 = vmatpush.bf16.msra.mxu3 %v339_v15 }
  0x21   :  { %186 = vmatmul.bf16.vlgmr.msra.gmra.mxu0 %v250_v24  ;;  %191 = vmatmul.bf16.vlgmr.msra.gmra.mxu2 %v258_v25 }
  0x22   :  { %205 = vmatmul.bf16.vlgmr.msra.gmra.mxu1 %v254_v26  ;;  %210 = vmatmul.bf16.vlgmr.msra.gmra.mxu3 %v262_v27 }
  0x9e   :  { %v187_v28 = vpop.f32.mrf.mxu0 }
  0x9f   :  { %v206_v29 = vpop.f32.mrf.mxu1 }
  0xa0   :  { %v207_v31 = vadd.f32 %v206_v29, %v187_v28 }
  0xa2   :  { %v235_v32 = vadd.f32 %v231_v30, %v207_v31 }
  0xa4   :  { %239 = vst [vmem:[%s482_s3] sm:$0xff] %v235_v32  ;;  %v192_v33 = vpop.f32.mrf.mxu2 }
  0xa5   :  { %v211_v34 = vpop.f32.mrf.mxu3 }
  0xa6   :  { %v212_v36 = vadd.f32 %v211_v34, %v192_v33  ;;  %v189_v37 = vpop.f32.mrf.mxu0 }
  0xa7   :  { %v208_v38 = vpop.f32.mrf.mxu1 }
  0xa8   :  { %v237_v40 = vadd.f32 %v233_v35, %v212_v36  ;;  %v209_v41 = vadd.f32 %v208_v38, %v189_v37 }
  0xaa   :  { %241 = vst [vmem:[%s482_s3 + $0x10] sm:$0xff] %v237_v40  ;;  %v236_v42 = vadd.f32 %v232_v39, %v209_v41 }
  0xac   :  { %240 = vst [vmem:[%s482_s3 + $0x8] sm:$0xff] %v236_v42  ;;  %v194_v43 = vpop.f32.mrf.mxu2 }
  0xad   :  { %v213_v44 = vpop.f32.mrf.mxu3 }
  0xae   :  { %v214_v46 = vadd.f32 %v213_v44, %v194_v43 }
  0xb0   :  { %v238_v47 = vadd.f32 %v234_v45, %v214_v46 }
  0xb2   :  { %242 = vst [vmem:[%s482_s3 + $0x18] sm:$0xff] %v238_v47 }

// kernel: deepseek_forward.28
= control target key start
LH: loop header
LB: loop body
LE: loop exit
PB: predicated region body
PF: predicated region fallthrough
CT: control target
= control target key end

     0   :  { %8 = vsyncpa [#allocation5], 0  ;;  %s821_s15 = smov [#allocation4]   ;;  %s822_s17 = smov 128   ;;  %s1032_s0 = inlined_call_operand.vmem [shape: bf16[32,128], index: 0, kind: input, shape index: {}]   ;;  %s1033_s1 = inlined_call_operand.vmem [shape: bf16[128,256], index: 1, kind: input, shape index: {}]   ;;  %s1034_s2 = inlined_call_operand.hbm [shape: bf16[128,256], index: 2, kind: input, shape index: {}]   ;;  %s1035_s3 = inlined_call_operand.vmem [shape: bf16[32,256], index: 3, kind: output, shape index: {}]  }
   0x1   :  { %s17_s14 = sshll.u32 %s1034_s2, 4  ;;  %s19_s16 = sshll.u32 %s821_s15, 4  ;;  %s18_s14 = int_to_ptr.hbm [resolvable:$true] %s17_s14  ;;  %s20_s16 = int_to_ptr.vmem [resolvable:$true] %s19_s16 }
   0x2   :  { %s823_s18 = smov 8  }
   0x3   :  { %25 = dma.hbm_to_vmem [thread:$0]  %s18_s14, 2048, %s20_s16, [#allocation5], %s822_s17, %s822_s17, %s823_s18  }
   0x4   :  { %819 = dma.done.wait [#allocation5], 2048  }
   0x5   :  { %820 = vsyncadd [#allocation5], 4294965248  ;;  %v648_v0 = vld [vmem:[%s1033_s1 + $0x70] sm:$0xf]  ;;  %v743_v1 = vld [vmem:[%s1033_s1 + $0x74] sm:$0xf0] }
   0x6   :  { %v742_v2 = vld [vmem:[%s1033_s1 + $0x74] sm:$0xf]  ;;  %v649_v3 = vor.u32 %v743_v1, %v648_v0  ;;  %v650_v4 = vld [vmem:[%s1033_s1 + $0x78] sm:$0xf0]  ;;  %v640_v5 = vld [vmem:[%s1033_s1 + $0x60] sm:$0xf] }
   0x7   :  { %v741_v6 = vld [vmem:[%s1033_s1 + $0x64] sm:$0xf0]  ;;  %v653_v7 = vor.u32 %v742_v2, %v650_v4  ;;  %v740_v8 = vld [vmem:[%s1033_s1 + $0x64] sm:$0xf]  ;;  %v642_v9 = vld [vmem:[%s1033_s1 + $0x68] sm:$0xf0] }
   0x8   :  { %170 = vmatpush.bf16.msra.mxu0 %v649_v3  ;;  %v641_v10 = vor.u32 %v741_v6, %v640_v5  ;;  %v645_v11 = vor.u32 %v740_v8, %v642_v9  ;;  %v632_v12 = vld [vmem:[%s1033_s1 + $0x50] sm:$0xf]  ;;  %v739_v13 = vld [vmem:[%s1033_s1 + $0x54] sm:$0xf0]  ;;  %v738_v14 = vld [vmem:[%s1033_s1 + $0x54] sm:$0xf] }
   0x9   :  { %189 = vmatpush.bf16.msra.mxu1 %v653_v7  ;;  %v634_v15 = vld [vmem:[%s1033_s1 + $0x58] sm:$0xf0]  ;;  %v712_v16 = vld [vmem:[#allocation4 + $0x70] sm:$0xf]  ;;  %v633_v17 = vor.u32 %v739_v13, %v632_v12  ;;  %v759_v18 = vld [vmem:[#allocation4 + $0x74] sm:$0xf0] }
   0xa   :  { %v758_v19 = vld [vmem:[#allocation4 + $0x74] sm:$0xf]  ;;  %v714_v20 = vld [vmem:[#allocation4 + $0x78] sm:$0xf0]  ;;  %v637_v21 = vor.u32 %v738_v14, %v634_v15  ;;  %v624_v22 = vld [vmem:[%s1033_s1 + $0x40] sm:$0xf]  ;;  %v713_v25 = vor.u32 %v759_v18, %v712_v16 }
   0xb   :  { %v737_v23 = vld [vmem:[%s1033_s1 + $0x44] sm:$0xf0]  ;;  %v736_v24 = vld [vmem:[%s1033_s1 + $0x44] sm:$0xf]  ;;  %v717_v26 = vor.u32 %v758_v19, %v714_v20  ;;  %v626_v27 = vld [vmem:[%s1033_s1 + $0x48] sm:$0xf0] }
   0xc   :  { %171 = vmatpush.bf16.msra.mxu0 %v641_v10  ;;  %v704_v28 = vld [vmem:[#allocation4 + $0x60] sm:$0xf]  ;;  %v757_v29 = vld [vmem:[#allocation4 + $0x64] sm:$0xf0]  ;;  %328 = vmatpush.bf16.msra.mxu2 %v713_v25  ;;  %v756_v31 = vld [vmem:[#allocation4 + $0x64] sm:$0xf]  ;;  %v625_v33 = vor.u32 %v737_v23, %v624_v22  ;;  %v629_v37 = vor.u32 %v736_v24, %v626_v27 }
   0xd   :  { %190 = vmatpush.bf16.msra.mxu1 %v645_v11  ;;  %347 = vmatpush.bf16.msra.mxu3 %v717_v26  ;;  %v705_v30 = vor.u32 %v757_v29, %v704_v28  ;;  %v706_v32 = vld [vmem:[#allocation4 + $0x68] sm:$0xf0]  ;;  %v616_v34 = vld [vmem:[%s1033_s1 + $0x30] sm:$0xf]  ;;  %v735_v35 = vld [vmem:[%s1033_s1 + $0x34] sm:$0xf0] }
   0xe   :  { %v709_v36 = vor.u32 %v756_v31, %v706_v32  ;;  %v696_v38 = vld [vmem:[#allocation4 + $0x50] sm:$0xf]  ;;  %v755_v39 = vld [vmem:[#allocation4 + $0x54] sm:$0xf0]  ;;  %v754_v40 = vld [vmem:[#allocation4 + $0x54] sm:$0xf]  ;;  %v617_v47 = vor.u32 %v735_v35, %v616_v34 }
   0xf   :  { %v734_v41 = vld [vmem:[%s1033_s1 + $0x34] sm:$0xf]  ;;  %v618_v42 = vld [vmem:[%s1033_s1 + $0x38] sm:$0xf0]  ;;  %v697_v44 = vor.u32 %v755_v39, %v696_v38  ;;  %v688_v46 = vld [vmem:[#allocation4 + $0x40] sm:$0xf] }
  0x10   :  { %172 = vmatpush.bf16.msra.mxu0 %v633_v17  ;;  %v698_v43 = vld [vmem:[#allocation4 + $0x58] sm:$0xf0]  ;;  %329 = vmatpush.bf16.msra.mxu2 %v705_v30  ;;  %v753_v48 = vld [vmem:[#allocation4 + $0x44] sm:$0xf0]  ;;  %v752_v49 = vld [vmem:[#allocation4 + $0x44] sm:$0xf]  ;;  %v621_v51 = vor.u32 %v734_v41, %v618_v42 }
  0x11   :  { %191 = vmatpush.bf16.msra.mxu1 %v637_v21  ;;  %348 = vmatpush.bf16.msra.mxu3 %v709_v36  ;;  %v701_v45 = vor.u32 %v754_v40, %v698_v43  ;;  %v690_v50 = vld [vmem:[#allocation4 + $0x48] sm:$0xf0]  ;;  %v608_v52 = vld [vmem:[%s1033_s1 + $0x20] sm:$0xf]  ;;  %v733_v53 = vld [vmem:[%s1033_s1 + $0x24] sm:$0xf0]  ;;  %v689_v56 = vor.u32 %v753_v48, %v688_v46 }
  0x12   :  { %v732_v54 = vld [vmem:[%s1033_s1 + $0x24] sm:$0xf]  ;;  %v610_v55 = vld [vmem:[%s1033_s1 + $0x28] sm:$0xf0]  ;;  %v693_v57 = vor.u32 %v752_v49, %v690_v50  ;;  %v680_v58 = vld [vmem:[#allocation4 + $0x30] sm:$0xf]  ;;  %v609_v59 = vor.u32 %v733_v53, %v608_v52 }
  0x13   :  { %v751_v60 = vld [vmem:[#allocation4 + $0x34] sm:$0xf0]  ;;  %v750_v61 = vld [vmem:[#allocation4 + $0x34] sm:$0xf]  ;;  %v682_v62 = vld [vmem:[#allocation4 + $0x38] sm:$0xf0]  ;;  %v613_v63 = vor.u32 %v732_v54, %v610_v55 }
  0x14   :  { %173 = vmatpush.bf16.msra.mxu0 %v625_v33  ;;  %330 = vmatpush.bf16.msra.mxu2 %v697_v44  ;;  %v600_v0 = vld [vmem:[%s1033_s1 + $0x10] sm:$0xf]  ;;  %v731_v1 = vld [vmem:[%s1033_s1 + $0x14] sm:$0xf0]  ;;  %v730_v2 = vld [vmem:[%s1033_s1 + $0x14] sm:$0xf]  ;;  %v681_v4 = vor.u32 %v751_v60, %v680_v58  ;;  %v685_v5 = vor.u32 %v750_v61, %v682_v62 }
  0x15   :  { %192 = vmatpush.bf16.msra.mxu1 %v629_v37  ;;  %349 = vmatpush.bf16.msra.mxu3 %v701_v45  ;;  %v602_v3 = vld [vmem:[%s1033_s1 + $0x18] sm:$0xf0]  ;;  %v672_v6 = vld [vmem:[#allocation4 + $0x20] sm:$0xf]  ;;  %v601_v7 = vor.u32 %v731_v1, %v600_v0  ;;  %v749_v8 = vld [vmem:[#allocation4 + $0x24] sm:$0xf0] }
  0x16   :  { %v748_v9 = vld [vmem:[#allocation4 + $0x24] sm:$0xf]  ;;  %v674_v10 = vld [vmem:[#allocation4 + $0x28] sm:$0xf0]  ;;  %v605_v11 = vor.u32 %v730_v2, %v602_v3  ;;  %v592_v12 = vld [vmem:[%s1033_s1] sm:$0xf]  ;;  %v673_v16 = vor.u32 %v749_v8, %v672_v6 }
  0x17   :  { %v729_v13 = vld [vmem:[%s1033_s1 + $0x4] sm:$0xf0]  ;;  %v728_v14 = vld [vmem:[%s1033_s1 + $0x4] sm:$0xf]  ;;  %v594_v15 = vld [vmem:[%s1033_s1 + $0x8] sm:$0xf0]  ;;  %v677_v17 = vor.u32 %v748_v9, %v674_v10 }
  0x18   :  { %174 = vmatpush.bf16.msra.mxu0 %v617_v47  ;;  %331 = vmatpush.bf16.msra.mxu2 %v689_v56  ;;  %v593_v18 = vor.u32 %v729_v13, %v592_v12  ;;  %v664_v19 = vld [vmem:[#allocation4 + $0x10] sm:$0xf]  ;;  %v747_v20 = vld [vmem:[#allocation4 + $0x14] sm:$0xf0]  ;;  %v597_v21 = vor.u32 %v728_v14, %v594_v15  ;;  %v746_v22 = vld [vmem:[#allocation4 + $0x14] sm:$0xf] }
  0x19   :  { %193 = vmatpush.bf16.msra.mxu1 %v621_v51  ;;  %350 = vmatpush.bf16.msra.mxu3 %v693_v57  ;;  %v666_v23 = vld [vmem:[#allocation4 + $0x18] sm:$0xf0]  ;;  %v726_v24 = vld [vmem:[%s1032_s0] sm:$0xff]  ;;  %v665_v25 = vor.u32 %v747_v20, %v664_v19  ;;  %v745_v28 = vld [vmem:[#allocation4 + $0x4] sm:$0xf0] }
  0x1a   :  { %v669_v26 = vor.u32 %v746_v22, %v666_v23  ;;  %v656_v27 = vld [vmem:[#allocation4] sm:$0xf]  ;;  %v744_v29 = vld [vmem:[#allocation4 + $0x4] sm:$0xf]  ;;  %v658_v30 = vld [vmem:[#allocation4 + $0x8] sm:$0xf0] }
  0x1b   :  { %v657_v31 = vor.u32 %v745_v28, %v656_v27  ;;  %v661_v32 = vor.u32 %v744_v29, %v658_v30  ;;  %v727_v33 = vld [vmem:[%s1032_s0 + $0x8] sm:$0xff] }
  0x1c   :  { %175 = vmatpush.bf16.msra.mxu0 %v609_v59  ;;  %332 = vmatpush.bf16.msra.mxu2 %v681_v4 }
  0x1d   :  { %194 = vmatpush.bf16.msra.mxu1 %v613_v63  ;;  %351 = vmatpush.bf16.msra.mxu3 %v685_v5 }
  0x20   :  { %176 = vmatpush.bf16.msra.mxu0 %v601_v7  ;;  %333 = vmatpush.bf16.msra.mxu2 %v673_v16 }
  0x21   :  { %195 = vmatpush.bf16.msra.mxu1 %v605_v11  ;;  %352 = vmatpush.bf16.msra.mxu3 %v677_v17 }
  0x24   :  { %177 = vmatpush.bf16.msra.mxu0 %v593_v18  ;;  %334 = vmatpush.bf16.msra.mxu2 %v665_v25 }
  0x25   :  { %196 = vmatpush.bf16.msra.mxu1 %v597_v21  ;;  %353 = vmatpush.bf16.msra.mxu3 %v669_v26 }
  0x27   :  { %178 = vmatmul.bf16.vlgmr.msra.gmra.mxu0 %v726_v24 }
  0x28   :  { %197 = vmatmul.bf16.vlgmr.msra.gmra.mxu1 %v726_v24  ;;  %335 = vmatpush.bf16.msra.mxu2 %v657_v31 }
  0x29   :  { %354 = vmatpush.bf16.msra.mxu3 %v661_v32 }
  0x2b   :  { %336 = vmatmul.bf16.vlgmr.msra.gmra.mxu2 %v726_v24 }
  0x2c   :  { %355 = vmatmul.bf16.vlgmr.msra.gmra.mxu3 %v726_v24 }
  0x37   :  { %183 = vmatmul.bf16.gmra.mxu0 %v727_v33 }
  0x38   :  { %202 = vmatmul.bf16.gmra.mxu1 %v727_v33 }
  0x3b   :  { %341 = vmatmul.bf16.gmra.mxu2 %v727_v33 }
  0x3c   :  { %360 = vmatmul.bf16.gmra.mxu3 %v727_v33 }
  0xa4   :  { %v949_v34 = vpop.f32.mrf.mxu0 }
  0xa5   :  { %v718_v35 = vmul.f32 -1.442695, %v949_v34  ;;  %v952_v36 = vpop.f32.mrf.mxu1 }
  0xa6   :  { %v719_v37 = vmul.f32 -1.442695, %v952_v36 }
  0xa7   :  { %763 = vpow2.f32 %v718_v35 }
  0xa8   :  { %765 = vpow2.f32 %v719_v37 }
  0xac   :  { %v955_v38 = vpop.f32.mrf.mxu0 }
  0xad   :  { %v764_v39 = vpop.eup %763  ;;  %v720_v40 = vmul.f32 -1.442695, %v955_v38  ;;  %v958_v41 = vpop.f32.mrf.mxu1 }
  0xae   :  { %v766_v42 = vpop.eup %765  ;;  %v417_v43 = vadd.f32 1.0, %v764_v39  ;;  %v721_v44 = vmul.f32 -1.442695, %v958_v41  ;;  %v337_v21 = vpop.f32.mrf.mxu2 }
  0xaf   :  { %v418_v45 = vadd.f32 1.0, %v766_v42  ;;  %767 = vpow2.f32 %v720_v40  ;;  %v356_v28 = vpop.f32.mrf.mxu3 }
  0xb0   :  { %769 = vrcp.f32 %v417_v43  ;;  %v434_v58 = vand.u32 2147483647, %v417_v43  ;;  %v436_v60 = vand.u32 2147483648, %v417_v43  ;;  %vm430_vm1 = vweird.f32 %v417_v43 }
  0xb1   :  { %771 = vrcp.f32 %v418_v45  ;;  %v449_v62 = vand.u32 2147483647, %v418_v45  ;;  %v451_v0 = vand.u32 2147483648, %v418_v45  ;;  %vm445_vm4 = vweird.f32 %v418_v45 }
  0xb2   :  { %773 = vpow2.f32 %v721_v44  ;;  %vm435_vm3 = vcmp.eq.f32.partialorder %v434_v58, 8.507059e+37  ;;  %v437_v7 = vor.u32 1.1754944e-38, %v436_v60 }
  0xb3   :  { %vm450_vm6 = vcmp.eq.f32.partialorder %v449_v62, 8.507059e+37  ;;  %v452_v11 = vor.u32 1.1754944e-38, %v451_v0 }
  0xb4   :  { %v961_v46 = vpop.f32.mrf.mxu0 }
  0xb5   :  { %v768_v47 = vpop.eup %767  ;;  %v722_v48 = vmul.f32 -1.442695, %v961_v46  ;;  %v964_v49 = vpop.f32.mrf.mxu1 }
  0xb6   :  { %v770_v50 = vpop.eup %769  ;;  %v966_v51 = vadd.f32 1.0, %v768_v47  ;;  %v723_v52 = vmul.f32 -1.442695, %v964_v49 }
  0xb7   :  { %v772_v53 = vpop.eup %771  ;;  %v426_v54 = vmul.f32 %v770_v50, %v417_v43  ;;  %775 = vpow2.f32 %v722_v48  ;;  %vm431_vm0 = vweird.f32 %v770_v50 }
  0xb8   :  { %v774_v55 = vpop.eup %773  ;;  %v441_v56 = vmul.f32 %v772_v53, %v418_v45  ;;  %777 = vrcp.f32 %v966_v51  ;;  %vm446_vm2 = vweird.f32 %v772_v53  ;;  %vm432_vm5 = vmor %vm430_vm1, %vm431_vm0  ;;  %v466_v16 = vand.u32 2147483648, %v966_v51 }
  0xb9   :  { %v427_v57 = vsub.f32 1.0, %v426_v54  ;;  %v970_v59 = vadd.f32 1.0, %v774_v55  ;;  %779 = vpow2.f32 %v723_v52  ;;  %vm447_vm7 = vmor %vm445_vm4, %vm446_vm2  ;;  %vm460_vm8 = vweird.f32 %v966_v51 }
  0xba   :  { %v442_v61 = vsub.f32 1.0, %v441_v56  ;;  %v464_v23 = vand.u32 2147483647, %v966_v51  ;;  %v467_v30 = vor.u32 1.1754944e-38, %v466_v16 }
  0xbb   :  { %v428_v63 = vmul.f32 %v770_v50, %v427_v57  ;;  %781 = vrcp.f32 %v970_v59  ;;  %v479_v32 = vand.u32 2147483647, %v970_v59  ;;  %vm475_vm13 = vweird.f32 %v970_v59 }
  0xbc   :  { %v443_v1 = vmul.f32 %v772_v53, %v442_v61  ;;  %v973_v2 = vpop.f32.mrf.mxu0  ;;  %vm465_vm12 = vcmp.eq.f32.partialorder %v464_v23, 8.507059e+37 }
  0xbd   :  { %v776_v3 = vpop.eup %775  ;;  %v429_v4 = vadd.f32 %v770_v50, %v428_v63  ;;  %v724_v5 = vmul.f32 -1.442695, %v973_v2  ;;  %v988_v29 = vpop.f32.mrf.mxu1  ;;  %vm480_vm15 = vcmp.eq.f32.partialorder %v479_v32, 8.507059e+37 }
  0xbe   :  { %v778_v6 = vpop.eup %777  ;;  %v444_v8 = vadd.f32 %v772_v53, %v443_v1  ;;  %v976_v9 = vadd.f32 1.0, %v776_v3  ;;  %v725_v43 = vmul.f32 -1.442695, %v988_v29  ;;  %v358_v63 = vpop.f32.mrf.mxu3 }
  0xbf   :  { %v433_v10 = vsel %vm432_vm5, %v770_v50, %v429_v4  ;;  %v456_v12 = vmul.f32 %v778_v6, %v966_v51  ;;  %783 = vpow2.f32 %v724_v5  ;;  %v780_v13 = vpop.eup %779  ;;  %vm461_vm9 = vweird.f32 %v778_v6 }
  0xc0   :  { %v438_v14 = vsel %vm435_vm3, %v437_v7, %v433_v10  ;;  %v448_v15 = vsel %vm447_vm7, %v772_v53, %v444_v8  ;;  %785 = vrcp.f32 %v976_v9  ;;  %v986_v26 = vadd.f32 1.0, %v780_v13  ;;  %vm462_vm11 = vmor %vm460_vm8, %vm461_vm9 }
  0xc1   :  { %v782_v17 = vpop.eup %781  ;;  %v545_v18 = vmul.f32 %v438_v14, %v949_v34  ;;  %v453_v19 = vsel %vm450_vm6, %v452_v11, %v448_v15  ;;  %v457_v20 = vsub.f32 1.0, %v456_v12  ;;  %v494_v54 = vand.u32 2147483647, %v976_v9 }
  0xc2   :  { %v546_v22 = vmul.f32 %v453_v19, %v952_v36  ;;  %v471_v24 = vmul.f32 %v782_v17, %v970_v59  ;;  %vm476_vm10 = vweird.f32 %v782_v17  ;;  %v481_v36 = vand.u32 2147483648, %v970_v59  ;;  %v339_v59 = vpop.f32.mrf.mxu2 }
  0xc3   :  { %v458_v25 = vmul.f32 %v778_v6, %v457_v20  ;;  %v561_v27 = vmul.f32 %v545_v18, %v337_v21  ;;  %787 = vrcp.f32 %v986_v26  ;;  %vm477_vm14 = vmor %vm475_vm13, %vm476_vm10  ;;  %v496_v55 = vand.u32 2147483648, %v976_v9 }
  0xc4   :  { %v472_v31 = vsub.f32 1.0, %v471_v24  ;;  %v562_v33 = vmul.f32 %v546_v22, %v356_v28  ;;  %v482_v51 = vor.u32 1.1754944e-38, %v481_v36  ;;  %vm490_vm1 = vweird.f32 %v976_v9 }
  0xc5   :  { %v784_v34 = vpop.eup %783  ;;  %v459_v35 = vadd.f32 %v778_v6, %v458_v25  ;;  %vm495_vm3 = vcmp.eq.f32.partialorder %v494_v54, 8.507059e+37  ;;  %v497_v1 = vor.u32 1.1754944e-38, %v496_v55  ;;  %v511_v7 = vand.u32 2147483648, %v986_v26 }
  0xc6   :  { %v786_v37 = vpop.eup %785  ;;  %v473_v39 = vmul.f32 %v782_v17, %v472_v31  ;;  %v569_v40 = vpack.c.bf16 %v562_v33, %v561_v27  ;;  %v996_v42 = vadd.f32 1.0, %v784_v34  ;;  %vm505_vm5 = vweird.f32 %v986_v26  ;;  %v361_v24 = vpop.f32.mrf.mxu3 }
  0xc7   :  { %v463_v44 = vsel %vm462_vm11, %v778_v6, %v459_v35  ;;  %v486_v45 = vmul.f32 %v786_v37, %v976_v9  ;;  %vm491_vm0 = vweird.f32 %v786_v37  ;;  %v509_v6 = vand.u32 2147483647, %v986_v26 }
  0xc8   :  { %v468_v47 = vsel %vm465_vm12, %v467_v30, %v463_v44  ;;  %v474_v48 = vadd.f32 %v782_v17, %v473_v39  ;;  %573 = vst [vmem:[%s1035_s3] sm:$0xff] %v569_v40  ;;  %789 = vrcp.f32 %v996_v42  ;;  %vm492_vm2 = vmor %vm490_vm1, %vm491_vm0  ;;  %v512_v16 = vor.u32 1.1754944e-38, %v511_v7 }
  0xc9   :  { %v547_v50 = vmul.f32 %v468_v47, %v955_v38  ;;  %v487_v52 = vsub.f32 1.0, %v486_v45  ;;  %791 = vpow2.f32 %v725_v43  ;;  %v788_v56 = vpop.eup %787  ;;  %vm510_vm7 = vcmp.eq.f32.partialorder %v509_v6, 8.507059e+37 }
  0xca   :  { %v478_v53 = vsel %vm477_vm14, %v782_v17, %v474_v48  ;;  %v501_v38 = vmul.f32 %v788_v56, %v986_v26  ;;  %vm506_vm4 = vweird.f32 %v788_v56  ;;  %v342_v20 = vpop.f32.mrf.mxu2  ;;  %v526_v23 = vand.u32 2147483648, %v996_v42 }
  0xcb   :  { %v483_v57 = vsel %vm480_vm15, %v482_v51, %v478_v53  ;;  %v488_v58 = vmul.f32 %v786_v37, %v487_v52  ;;  %v563_v61 = vmul.f32 %v547_v50, %v339_v59  ;;  %vm507_vm6 = vmor %vm505_vm5, %vm506_vm4  ;;  %vm520_vm9 = vweird.f32 %v996_v42 }
  0xcc   :  { %v548_v60 = vmul.f32 %v483_v57, %v958_v41  ;;  %v502_v3 = vsub.f32 1.0, %v501_v38  ;;  %v524_v25 = vand.u32 2147483647, %v996_v42  ;;  %v527_v32 = vor.u32 1.1754944e-38, %v526_v23 }
  0xcd   :  { %v489_v62 = vadd.f32 %v786_v37, %v488_v58 }
  0xce   :  { %v790_v0 = vpop.eup %789  ;;  %v564_v4 = vmul.f32 %v548_v60, %v358_v63  ;;  %v503_v11 = vmul.f32 %v788_v56, %v502_v3  ;;  %vm525_vm11 = vcmp.eq.f32.partialorder %v524_v25, 8.507059e+37  ;;  %v363_v48 = vpop.f32.mrf.mxu3 }
  0xcf   :  { %v493_v5 = vsel %vm492_vm2, %v786_v37, %v489_v62  ;;  %v516_v41 = vmul.f32 %v790_v0, %v996_v42  ;;  %v792_v8 = vpop.eup %791  ;;  %vm521_vm8 = vweird.f32 %v790_v0 }
  0xd0   :  { %v498_v10 = vsel %vm495_vm3, %v497_v1, %v493_v5  ;;  %v570_v12 = vpack.c.bf16 %v564_v4, %v563_v61  ;;  %v424_v13 = vadd.f32 1.0, %v792_v8  ;;  %v504_v15 = vadd.f32 %v788_v56, %v503_v11  ;;  %vm522_vm10 = vmor %vm520_vm9, %vm521_vm8 }
  0xd1   :  { %v517_v9 = vsub.f32 1.0, %v516_v41  ;;  %v549_v14 = vmul.f32 %v498_v10, %v961_v46 }
  0xd2   :  { %574 = vst [vmem:[%s1035_s3 + $0x8] sm:$0xff] %v570_v12  ;;  %793 = vrcp.f32 %v424_v13  ;;  %v508_v18 = vsel %vm507_vm6, %v788_v56, %v504_v15  ;;  %v541_v34 = vand.u32 2147483648, %v424_v13  ;;  %v539_v36 = vand.u32 2147483647, %v424_v13  ;;  %v344_v44 = vpop.f32.mrf.mxu2 }
  0xd3   :  { %v518_v17 = vmul.f32 %v790_v0, %v517_v9  ;;  %v513_v19 = vsel %vm510_vm7, %v512_v16, %v508_v18  ;;  %v565_v46 = vmul.f32 %v549_v14, %v342_v20  ;;  %vm535_vm13 = vweird.f32 %v424_v13 }
  0xd4   :  { %v550_v21 = vmul.f32 %v513_v19, %v964_v49  ;;  %v542_v40 = vor.u32 1.1754944e-38, %v541_v34  ;;  %vm540_vm15 = vcmp.eq.f32.partialorder %v539_v36, 8.507059e+37 }
  0xd5   :  { %v519_v22 = vadd.f32 %v790_v0, %v518_v17 }
  0xd6   :  { %v566_v26 = vmul.f32 %v550_v21, %v361_v24 }
  0xd7   :  { %v523_v28 = vsel %vm522_vm10, %v790_v0, %v519_v22 }
  0xd8   :  { %v794_v27 = vpop.eup %793  ;;  %v571_v31 = vpack.c.bf16 %v566_v26, %v565_v46  ;;  %v528_v49 = vsel %vm525_vm11, %v527_v32, %v523_v28 }
  0xd9   :  { %v531_v30 = vmul.f32 %v794_v27, %v424_v13  ;;  %vm536_vm12 = vweird.f32 %v794_v27  ;;  %v551_v37 = vmul.f32 %v528_v49, %v973_v2 }
  0xda   :  { %575 = vst [vmem:[%s1035_s3 + $0x10] sm:$0xff] %v571_v31  ;;  %vm537_vm14 = vmor %vm535_vm13, %vm536_vm12 }
  0xdb   :  { %v532_v33 = vsub.f32 1.0, %v531_v30  ;;  %v567_v47 = vmul.f32 %v551_v37, %v344_v44 }
  0xdd   :  { %v533_v35 = vmul.f32 %v794_v27, %v532_v33 }
  0xdf   :  { %v534_v39 = vadd.f32 %v794_v27, %v533_v35 }
  0xe1   :  { %v538_v42 = vsel %vm537_vm14, %v794_v27, %v534_v39 }
  0xe2   :  { %v543_v43 = vsel %vm540_vm15, %v542_v40, %v538_v42 }
  0xe3   :  { %v552_v45 = vmul.f32 %v543_v43, %v988_v29 }
  0xe5   :  { %v568_v50 = vmul.f32 %v552_v45, %v363_v48 }
  0xe7   :  { %v572_v51 = vpack.c.bf16 %v568_v50, %v567_v47 }
  0xe9   :  { %576 = vst [vmem:[%s1035_s3 + $0x18] sm:$0xff] %v572_v51 }
  0xea   :  { %581 = vsyncpa [#allocation5], 1 }

// kernel: deepseek_forward.31
= control target key start
LH: loop header
LB: loop body
LE: loop exit
PB: predicated region body
PF: predicated region fallthrough
CT: control target
= control target key end

     0   :  { %s493_s0 = inlined_call_operand.vmem [shape: bf16[32,128], index: 0, kind: input, shape index: {}]   ;;  %s494_s1 = inlined_call_operand.vmem [shape: bf16[128,256], index: 1, kind: input, shape index: {}]   ;;  %s495_s2 = inlined_call_operand.hbm [shape: f32[32,256], index: 2, kind: output, shape index: {}]  }
   0x1   :  { %v301_v0 = vld [vmem:[%s494_s1 + $0x70] sm:$0xf]  ;;  %v324_v1 = vld [vmem:[%s494_s1 + $0x74] sm:$0xf0]  ;;  %v323_v2 = vld [vmem:[%s494_s1 + $0x74] sm:$0xf] }
   0x2   :  { %v302_v3 = vor.u32 %v324_v1, %v301_v0  ;;  %v303_v4 = vld [vmem:[%s494_s1 + $0x78] sm:$0xf0]  ;;  %v293_v5 = vld [vmem:[%s494_s1 + $0x60] sm:$0xf]  ;;  %v322_v6 = vld [vmem:[%s494_s1 + $0x64] sm:$0xf0] }
   0x3   :  { %v306_v7 = vor.u32 %v323_v2, %v303_v4  ;;  %v321_v8 = vld [vmem:[%s494_s1 + $0x64] sm:$0xf]  ;;  %v295_v9 = vld [vmem:[%s494_s1 + $0x68] sm:$0xf0]  ;;  %v294_v10 = vor.u32 %v322_v6, %v293_v5  ;;  %v285_v12 = vld [vmem:[%s494_s1 + $0x50] sm:$0xf] }
   0x4   :  { %144 = vmatpush.bf16.msra.mxu0 %v302_v3  ;;  %325 = vmatpush.bf16.msra.mxu2 %v302_v3  ;;  %v298_v11 = vor.u32 %v321_v8, %v295_v9  ;;  %v320_v13 = vld [vmem:[%s494_s1 + $0x54] sm:$0xf0]  ;;  %v319_v14 = vld [vmem:[%s494_s1 + $0x54] sm:$0xf]  ;;  %v287_v15 = vld [vmem:[%s494_s1 + $0x58] sm:$0xf0] }
   0x5   :  { %163 = vmatpush.bf16.msra.mxu1 %v306_v7  ;;  %333 = vmatpush.bf16.msra.mxu3 %v306_v7  ;;  %v286_v16 = vor.u32 %v320_v13, %v285_v12  ;;  %v290_v17 = vor.u32 %v319_v14, %v287_v15  ;;  %v277_v18 = vld [vmem:[%s494_s1 + $0x40] sm:$0xf]  ;;  %v318_v19 = vld [vmem:[%s494_s1 + $0x44] sm:$0xf0]  ;;  %v317_v20 = vld [vmem:[%s494_s1 + $0x44] sm:$0xf] }
   0x6   :  { %v279_v21 = vld [vmem:[%s494_s1 + $0x48] sm:$0xf0]  ;;  %v278_v22 = vor.u32 %v318_v19, %v277_v18 }
   0x8   :  { %145 = vmatpush.bf16.msra.mxu0 %v294_v10  ;;  %326 = vmatpush.bf16.msra.mxu2 %v294_v10 }
   0x9   :  { %164 = vmatpush.bf16.msra.mxu1 %v298_v11  ;;  %334 = vmatpush.bf16.msra.mxu3 %v298_v11 }
   0xc   :  { %146 = vmatpush.bf16.msra.mxu0 %v286_v16  ;;  %327 = vmatpush.bf16.msra.mxu2 %v286_v16 }
   0xd   :  { %7 = vsyncpa [#allocation4], 0  ;;  %165 = vmatpush.bf16.msra.mxu1 %v290_v17  ;;  %335 = vmatpush.bf16.msra.mxu3 %v290_v17  ;;  %v282_v23 = vor.u32 %v317_v20, %v279_v21  ;;  %v269_v24 = vld [vmem:[%s494_s1 + $0x30] sm:$0xf]  ;;  %v316_v25 = vld [vmem:[%s494_s1 + $0x34] sm:$0xf0] }
   0xe   :  { %v315_v26 = vld [vmem:[%s494_s1 + $0x34] sm:$0xf]  ;;  %v271_v27 = vld [vmem:[%s494_s1 + $0x38] sm:$0xf0]  ;;  %v270_v28 = vor.u32 %v316_v25, %v269_v24  ;;  %v261_v30 = vld [vmem:[%s494_s1 + $0x20] sm:$0xf] }
   0xf   :  { %v274_v29 = vor.u32 %v315_v26, %v271_v27  ;;  %v314_v31 = vld [vmem:[%s494_s1 + $0x24] sm:$0xf0]  ;;  %v313_v32 = vld [vmem:[%s494_s1 + $0x24] sm:$0xf]  ;;  %v263_v33 = vld [vmem:[%s494_s1 + $0x28] sm:$0xf0] }
  0x10   :  { %147 = vmatpush.bf16.msra.mxu0 %v278_v22  ;;  %328 = vmatpush.bf16.msra.mxu2 %v278_v22  ;;  %v262_v34 = vor.u32 %v314_v31, %v261_v30  ;;  %v266_v35 = vor.u32 %v313_v32, %v263_v33  ;;  %v253_v36 = vld [vmem:[%s494_s1 + $0x10] sm:$0xf]  ;;  %v312_v37 = vld [vmem:[%s494_s1 + $0x14] sm:$0xf0]  ;;  %v311_v38 = vld [vmem:[%s494_s1 + $0x14] sm:$0xf] }
  0x11   :  { %166 = vmatpush.bf16.msra.mxu1 %v282_v23  ;;  %336 = vmatpush.bf16.msra.mxu3 %v282_v23  ;;  %v255_v39 = vld [vmem:[%s494_s1 + $0x18] sm:$0xf0]  ;;  %v254_v40 = vor.u32 %v312_v37, %v253_v36  ;;  %v245_v42 = vld [vmem:[%s494_s1] sm:$0xf]  ;;  %v310_v43 = vld [vmem:[%s494_s1 + $0x4] sm:$0xf0] }
  0x12   :  { %v258_v41 = vor.u32 %v311_v38, %v255_v39  ;;  %v309_v44 = vld [vmem:[%s494_s1 + $0x4] sm:$0xf]  ;;  %v247_v45 = vld [vmem:[%s494_s1 + $0x8] sm:$0xf0]  ;;  %v246_v46 = vor.u32 %v310_v43, %v245_v42  ;;  %s223_s23 = sshll.u32 %s495_s2, 4  ;;  %s371_s24 = smov 256   ;;  %s224_s23 = int_to_ptr.hbm [resolvable:$true] %s223_s23 }
  0x13   :  { %v250_v47 = vor.u32 %v309_v44, %v247_v45  ;;  %v307_v48 = vld [vmem:[%s493_s0] sm:$0xff]  ;;  %v308_v49 = vld [vmem:[%s493_s0 + $0x8] sm:$0xff]  ;;  %s370_s0 = smov [#allocation3]   ;;  %s372_s25 = smov 16  }
  0x14   :  { %148 = vmatpush.bf16.msra.mxu0 %v270_v28  ;;  %329 = vmatpush.bf16.msra.mxu2 %v270_v28  ;;  %s221_s1 = sshll.u32 %s370_s0, 4  ;;  %s222_s1 = int_to_ptr.vmem [resolvable:$true] %s221_s1 }
  0x15   :  { %167 = vmatpush.bf16.msra.mxu1 %v274_v29  ;;  %337 = vmatpush.bf16.msra.mxu3 %v274_v29 }
  0x18   :  { %149 = vmatpush.bf16.msra.mxu0 %v262_v34  ;;  %330 = vmatpush.bf16.msra.mxu2 %v262_v34 }
  0x19   :  { %168 = vmatpush.bf16.msra.mxu1 %v266_v35  ;;  %338 = vmatpush.bf16.msra.mxu3 %v266_v35 }
  0x1c   :  { %150 = vmatpush.bf16.msra.mxu0 %v254_v40  ;;  %331 = vmatpush.bf16.msra.mxu2 %v254_v40 }
  0x1d   :  { %169 = vmatpush.bf16.msra.mxu1 %v258_v41  ;;  %339 = vmatpush.bf16.msra.mxu3 %v258_v41 }
  0x20   :  { %151 = vmatpush.bf16.msra.mxu0 %v246_v46  ;;  %332 = vmatpush.bf16.msra.mxu2 %v246_v46 }
  0x21   :  { %170 = vmatpush.bf16.msra.mxu1 %v250_v47  ;;  %340 = vmatpush.bf16.msra.mxu3 %v250_v47 }
  0x23   :  { %152 = vmatmul.bf16.vlgmr.msra.gmra.mxu0 %v307_v48  ;;  %157 = vmatmul.bf16.vlgmr.msra.gmra.mxu2 %v308_v49 }
  0x24   :  { %171 = vmatmul.bf16.vlgmr.msra.gmra.mxu1 %v307_v48  ;;  %176 = vmatmul.bf16.vlgmr.msra.gmra.mxu3 %v308_v49 }
  0xa0   :  { %v153_v50 = vpop.f32.mrf.mxu0 }
  0xa1   :  { %209 = vst [vmem:[#allocation3] sm:$0xff] %v153_v50  ;;  %v172_v51 = vpop.f32.mrf.mxu1 }
  0xa2   :  { %210 = vst [vmem:[#allocation3 + $0x8] sm:$0xff] %v172_v51 }
  0xa6   :  { %v158_v52 = vpop.f32.mrf.mxu2 }
  0xa7   :  { %213 = vst [vmem:[#allocation3 + $0x20] sm:$0xff] %v158_v52  ;;  %v177_v53 = vpop.f32.mrf.mxu3 }
  0xa8   :  { %214 = vst [vmem:[#allocation3 + $0x28] sm:$0xff] %v177_v53  ;;  %v155_v54 = vpop.f32.mrf.mxu0 }
  0xa9   :  { %211 = vst [vmem:[#allocation3 + $0x10] sm:$0xff] %v155_v54  ;;  %v174_v55 = vpop.f32.mrf.mxu1 }
  0xaa   :  { %212 = vst [vmem:[#allocation3 + $0x18] sm:$0xff] %v174_v55 }
  0xae   :  { %v160_v56 = vpop.f32.mrf.mxu2 }
  0xaf   :  { %215 = vst [vmem:[#allocation3 + $0x30] sm:$0xff] %v160_v56  ;;  %v179_v57 = vpop.f32.mrf.mxu3 }
  0xb0   :  { %216 = vst [vmem:[#allocation3 + $0x38] sm:$0xff] %v179_v57 }
  0xb1   :  { %229 = dma.vmem_to_hbm [thread:$0]  %s222_s1, 1024, %s224_s23, [#allocation4], %s371_s24, %s371_s24, %s372_s25  }
  0xb2   :  { %368 = dma.done.wait [#allocation4], 1024  }
  0xb3   :  { %369 = vsyncadd [#allocation4], 4294966272 }
  0xb4   :  { %234 = vsyncpa [#allocation4], 1 }

</bundles_post_ra>
